<compile_context>
chip_gen: v7x
topology: tpu7x:2x2x1
jax: 0.10.0
libtpu: 0.0.40
codegen_flags: <defaults>
</compile_context>

<pallas_src>
import functools
import math

import jax
import jax.numpy as jnp
from jax import lax
from jax.experimental import pallas as pl
from jax.experimental.pallas import tpu as pltpu

_VMEM_LIMIT = 32 * 1024 * 1024  # above v5e's 16 MiB default, safe on v6e/v7x


# ----------------------------------------------------------------------------
# Generic tiled linear kernel: (M,K) @ (K,N) + bias, optional ReLU.
# ----------------------------------------------------------------------------
def _matmul_bias_kernel(a_ref, b_ref, bias_ref, o_ref, *, activation):
    acc = jnp.dot(a_ref[...], b_ref[...], preferred_element_type=jnp.float32)
    acc = acc + bias_ref[...]
    if activation == "relu":
        acc = jnp.maximum(acc, 0.0)
    o_ref[...] = acc.astype(o_ref.dtype)


def pallas_linear(a, w, b, activation="none", block_m=512, block_n=512):
    """a: (M, K) @ w: (K, N) + b: (N,).  Tiled over M and N ("parallel")."""
    M, K = a.shape
    K2, N = w.shape
    assert K == K2
    bm = block_m if (M > block_m and M % block_m == 0) else M
    bn = block_n if (N > block_n and N % block_n == 0) else N
    grid = (M // bm, N // bn)
    # TODO(synk): add K-tiling with an f32 VMEM accumulator ("arbitrary" K
    # axis + pl.when init/finalize) once K no longer fits next to the tiles.
    return pl.pallas_call(
        functools.partial(_matmul_bias_kernel, activation=activation),
        out_shape=jax.ShapeDtypeStruct((M, N), jnp.float32),
        grid=grid,
        in_specs=[
            pl.BlockSpec((bm, K), lambda i, j: (i, 0)),
            pl.BlockSpec((K, bn), lambda i, j: (0, j)),
            pl.BlockSpec((1, bn), lambda i, j: (0, j)),
        ],
        out_specs=pl.BlockSpec((bm, bn), lambda i, j: (i, j)),
        compiler_params=pltpu.CompilerParams(
            dimension_semantics=("parallel", "parallel"),
            vmem_limit_bytes=_VMEM_LIMIT),
    )(a, w, b.reshape(1, N))


# ----------------------------------------------------------------------------
# Encoder 3x3 conv + ReLU: padded image is read from HBM ONCE per batch
# element; the 9 taps are windowed in VMEM (no HBM im2col materialization).
# ----------------------------------------------------------------------------
def _conv3x3_relu_kernel(x_ref, w_ref, b_ref, o_ref, *, Hh, Ww, C):
    f32 = jnp.float32
    bf16 = jnp.bfloat16
    x = x_ref[...]                                    # (Hh+2, Ww+2, C) f32
    C_out = o_ref.shape[-1]
    acc = jnp.zeros((Hh * Ww, C_out), f32)
    for dy in range(3):
        for dx in range(3):
            k = dy * 3 + dx
            patch = x[dy:dy + Hh, dx:dx + Ww, :].reshape(Hh * Ww, C)
            acc = acc + jnp.dot(patch.astype(bf16), w_ref[k],
                                preferred_element_type=f32)
    acc = acc + b_ref[...]
    o_ref[...] = jnp.maximum(acc, 0.0)


def pallas_conv3x3_relu(x_padded, w, b):
    """x_padded: (B, H+2, W+2, C) f32, w: (9, C, C_out) bf16, b: (C_out,)."""
    B, Hp, Wp, C = x_padded.shape
    Hh, Ww = Hp - 2, Wp - 2
    C_out = w.shape[-1]
    kernel = functools.partial(_conv3x3_relu_kernel, Hh=Hh, Ww=Ww, C=C)
    return pl.pallas_call(
        kernel,
        out_shape=jax.ShapeDtypeStruct((B, Hh * Ww, C_out), jnp.float32),
        grid=(B,),
        in_specs=[
            pl.BlockSpec((None, Hp, Wp, C), lambda i: (i, 0, 0, 0)),
            pl.BlockSpec((9, C, C_out), lambda i: (0, 0, 0)),
            pl.BlockSpec((1, C_out), lambda i: (0, 0)),
        ],
        out_specs=pl.BlockSpec((None, Hh * Ww, C_out), lambda i: (i, 0, 0)),
        compiler_params=pltpu.CompilerParams(
            dimension_semantics=("parallel",), vmem_limit_bytes=_VMEM_LIMIT),
    )(x_padded, w, b.reshape(1, C_out))


# ----------------------------------------------------------------------------
# Fully fused greedy transformer decode: one kernel, grid over batch.
# ----------------------------------------------------------------------------
def _greedy_decode_kernel(
    mem_k_ref, mem_v_ref, tok_emb_ref, pos_ref,
    w_qkv_ref, b_qkv_ref, wo_s_ref, bo_s_ref,
    wq_c_ref, bq_c_ref, wo_c_ref, bo_c_ref,
    ln1_g_ref, ln1_b_ref, ln2_g_ref, ln2_b_ref, ln3_g_ref, ln3_b_ref,
    ffn_w1_ref, ffn_b1_ref, ffn_w2_ref, ffn_b2_ref,
    out_w_ref, out_b_ref, hsum_ref, hexp_ref,
    sent_ref,
    k_cache, v_cache,
    *, T, D, V, bos_id, emb_scale,
):
    f32 = jnp.float32
    bf16 = jnp.bfloat16

    # Zero the persistent scratch: rows > t are masked out of the scores, but
    # the V rows must be finite because 0 * NaN = NaN in the weighted sum.
    k_cache[...] = jnp.zeros_like(k_cache)
    v_cache[...] = jnp.zeros_like(v_cache)

    # ---- loop-invariant loads, hoisted out of the decode loop --------------
    mem_k = mem_k_ref[...]                 # (Lm, D) cross-attn K (precomputed)
    mem_v = mem_v_ref[...]                 # (Lm, D) cross-attn V (precomputed)
    hsum = hsum_ref[...]                   # (D, H) block-diag head indicator
    hexp = hexp_ref[...]                   # (H, D)
    ln1_g, ln1_b = ln1_g_ref[...], ln1_b_ref[...]
    ln2_g, ln2_b = ln2_g_ref[...], ln2_b_ref[...]
    ln3_g, ln3_b = ln3_g_ref[...], ln3_b_ref[...]

    v_iota = lax.broadcasted_iota(jnp.int32, (1, V), 1)
    v_iota_f = v_iota.astype(f32)
    t_iota = lax.broadcasted_iota(jnp.int32, (T, 1), 0)

    def layernorm(x, g, b):
        mu = jnp.mean(x, axis=-1, keepdims=True)
        xc = x - mu
        var = jnp.mean(xc * xc, axis=-1, keepdims=True)
        return xc * lax.rsqrt(var + 1e-5) * g + b

    def attend(q, keys, vals, mask):
        # q: (1, D); keys/vals: (L, D).  Heads are folded via block-diagonal
        # indicator matmuls -> no per-head slicing or concatenation.
        qk = q * keys                                            # (L, D)  VPU
        s = jnp.dot(qk, hsum, preferred_element_type=f32)        # (L, H)  MXU
        if mask is not None:
            s = jnp.where(mask, s, -1e30)
        m = jnp.max(s, axis=0, keepdims=True)
        p = jnp.exp(s - m)
        denom = jnp.sum(p, axis=0, keepdims=True)
        p = p * pl.reciprocal(denom, approx=True)                # EUP slot
        p_full = jnp.dot(p, hexp, preferred_element_type=f32)    # (L, D)
        return jnp.sum(p_full * vals, axis=0, keepdims=True)     # (1, D)

    def step(t, cur_onehot):
        # token embedding via one-hot bf16 matmul.
        # TODO(synk): replace with a scalar-indexed pl.ds gather once the
        # greedily-chosen token is staged through SMEM (vreg -> sreg route).
        x = jnp.dot(cur_onehot.astype(bf16), tok_emb_ref[...],
                    preferred_element_type=f32) * emb_scale      # (1, D)
        x = x + pos_ref[pl.ds(t, 1), :]                          # row gather

        # ---- self-attention with KV-cache scratch (O(D) update per step) --
        qkv = (jnp.dot(x.astype(bf16), w_qkv_ref[...],
                       preferred_element_type=f32) + b_qkv_ref[...])  # (1,3D)
        q_s = qkv[:, :D]
        k_cache[pl.ds(t, 1), :] = qkv[:, D:2 * D]
        v_cache[pl.ds(t, 1), :] = qkv[:, 2 * D:]
        sa = attend(q_s, k_cache[...], v_cache[...], t_iota <= t)
        sa = (jnp.dot(sa.astype(bf16), wo_s_ref[...],
                      preferred_element_type=f32) + bo_s_ref[...])
        x = layernorm(x + sa, ln1_g, ln1_b)

        # ---- cross-attention over precomputed encoder memory K/V ----------
        q_c = (jnp.dot(x.astype(bf16), wq_c_ref[...],
                       preferred_element_type=f32) + bq_c_ref[...])
        ca = attend(q_c, mem_k, mem_v, None)
        ca = (jnp.dot(ca.astype(bf16), wo_c_ref[...],
                      preferred_element_type=f32) + bo_c_ref[...])
        x = layernorm(x + ca, ln2_g, ln2_b)

        # ---- feed-forward ---------------------------------------------------
        hdn = jnp.maximum(
            jnp.dot(x.astype(bf16), ffn_w1_ref[...],
                    preferred_element_type=f32) + ffn_b1_ref[...], 0.0)
        ff = (jnp.dot(hdn.astype(bf16), ffn_w2_ref[...],
                      preferred_element_type=f32) + ffn_b2_ref[...])
        x = layernorm(x + ff, ln3_g, ln3_b)

        # ---- single-row vocab projection + greedy argmax --------------------
        logits = (jnp.dot(x.astype(bf16), out_w_ref[...],
                          preferred_element_type=f32) + out_b_ref[...])  # (1,V)
        mx = jnp.max(logits, axis=-1, keepdims=True)
        next_f = jnp.min(jnp.where(logits == mx, v_iota_f, float(V)),
                         axis=-1, keepdims=True)
        next_tok = next_f.astype(jnp.int32)                      # (1, 1)
        sent_ref[pl.ds(t, 1), :] = next_tok                      # direct store
        return (v_iota == next_tok).astype(f32)                  # next one-hot

    lax.fori_loop(0, T, step, (v_iota == bos_id).astype(jnp.float32))


def pallas_greedy_decode(memory, p, max_tokens, num_heads, head_dim, bos_id=1):
    """decoder.evaluate(features, max_tokens): greedy argmax decode."""
    B, Lm, D = memory.shape
    T = max_tokens
    V = p["tok_emb"].shape[0]
    F = p["ffn_w1"].shape[1]
    assert num_heads * head_dim == D
    scale = 1.0 / math.sqrt(head_dim)
    f32, bf16 = jnp.float32, jnp.bfloat16

    sa, ca = p["self_attn"], p["cross_attn"]
    # fused QKV; 1/sqrt(Dh) folded into W_q; bf16 MXU weights, f32 biases.
    w_qkv_s = jnp.concatenate([sa["wq"] * scale, sa["wk"], sa["wv"]],
                              axis=1).astype(bf16)
    b_qkv_s = jnp.concatenate([sa["bq"] * scale, sa["bk"],
                               sa["bv"]]).reshape(1, 3 * D).astype(f32)
    wq_c = (ca["wq"] * scale).astype(bf16)
    bq_c = (ca["bq"] * scale).reshape(1, D).astype(f32)

    # cross-attention K/V computed ONCE, outside the decode loop, by the tiled
    # linear kernel on the pre-flattened (B*Lm, D) memory.
    w_kv_c = jnp.concatenate([ca["wk"], ca["wv"]], axis=1).astype(bf16)
    b_kv_c = jnp.concatenate([ca["bk"], ca["bv"]]).astype(f32)
    kv = pallas_linear(memory.reshape(B * Lm, D).astype(bf16), w_kv_c, b_kv_c)
    mem_k = kv[:, :D].reshape(B, Lm, D)
    mem_v = kv[:, D:].reshape(B, Lm, D)

    pos = sinusoidal_pos(T, D)

    # block-diagonal head indicator matrices (fold heads into one contraction)
    head_of = jnp.arange(D, dtype=jnp.int32) // head_dim
    hsum = (head_of[:, None] ==
            jnp.arange(num_heads, dtype=jnp.int32)[None, :]).astype(f32)
    hexp = hsum.T

    args = [
        mem_k, mem_v, p["tok_emb"].astype(bf16), pos,
        w_qkv_s, b_qkv_s, sa["wo"].astype(bf16), sa["bo"].reshape(1, D),
        wq_c, bq_c, ca["wo"].astype(bf16), ca["bo"].reshape(1, D),
        p["ln1_g"].reshape(1, D), p["ln1_b"].reshape(1, D),
        p["ln2_g"].reshape(1, D), p["ln2_b"].reshape(1, D),
        p["ln3_g"].reshape(1, D), p["ln3_b"].reshape(1, D),
        p["ffn_w1"].astype(bf16), p["ffn_b1"].reshape(1, F),
        p["ffn_w2"].astype(bf16), p["ffn_b2"].reshape(1, D),
        p["out_w"].astype(bf16), p["out_b"].reshape(1, V),
        hsum, hexp,
    ]
    in_specs = [
        pl.BlockSpec((None, Lm, D), lambda b: (b, 0, 0)),   # mem_k
        pl.BlockSpec((None, Lm, D), lambda b: (b, 0, 0)),   # mem_v
    ] + [pl.BlockSpec(a.shape, lambda b: (0, 0)) for a in args[2:]]

    kernel = functools.partial(
        _greedy_decode_kernel, T=T, D=D, V=V,
        bos_id=bos_id, emb_scale=math.sqrt(D))

    sent = pl.pallas_call(
        kernel,
        out_shape=jax.ShapeDtypeStruct((B, T, 1), jnp.int32),
        grid=(B,),
        in_specs=in_specs,
        out_specs=pl.BlockSpec((None, T, 1), lambda b: (b, 0, 0)),
        scratch_shapes=[pltpu.VMEM((T, D), jnp.float32),   # K cache
                        pltpu.VMEM((T, D), jnp.float32)],  # V cache
        compiler_params=pltpu.CompilerParams(
            dimension_semantics=("parallel",),              # 2 TCs on v7x
            vmem_limit_bytes=_VMEM_LIMIT),
    )(*args)
    return sent[:, :, 0]


# ----------------------------------------------------------------------------
# Encoder (ResNetFeats-style): conv+ReLU -> adaptive avg pool -> linear+BN
# ----------------------------------------------------------------------------
def encode(images, p):
    B, C, H, W = images.shape
    bf16 = jnp.bfloat16
    x = jnp.transpose(images, (0, 2, 3, 1))                # NCHW -> NHWC
    xp = jnp.pad(x, ((0, 0), (1, 1), (1, 1), (0, 0)))      # halo pad
    conv_w = p["conv_w"].reshape(9, C, -1).astype(bf16)
    conv = pallas_conv3x3_relu(xp, conv_w, p["conv_b"])    # (B, H*W, C_mid)
    C_mid = conv.shape[-1]
    conv = conv.reshape(B, H, W, C_mid)
    # adaptive average pool to 4x4 spatial grid (-> 16 "pixel" features)
    P = 4
    pooled = conv.reshape(B, P, H // P, P, W // P, C_mid).mean(axis=(2, 4))
    feats = pooled.reshape(B * P * P, C_mid).astype(bf16)
    # linear embed with eval-mode BatchNorm1d folded into (embed_w, embed_b)
    emb = pallas_linear(feats, p["embed_w"].astype(bf16), p["embed_b"])
    return emb.reshape(B, P * P, -1)


def sinusoidal_pos(T, D):
    pos = jnp.arange(T, dtype=jnp.float32)[:, None]
    i = jnp.arange(0, D, 2, dtype=jnp.float32)[None, :]
    angle = pos / jnp.power(10000.0, i / D)
    pe = jnp.zeros((T, D), jnp.float32)
    pe = pe.at[:, 0::2].set(jnp.sin(angle))
    pe = pe.at[:, 1::2].set(jnp.cos(angle))
    return pe


def labeldroid_forward(images, params, max_tokens, num_heads, head_dim):
    features = encode(images, params["encoder"])
    sentence_ids = pallas_greedy_decode(features, params["decoder"],
                                        max_tokens, num_heads, head_dim)
    return sentence_ids


# ----------------------------------------------------------------------------
# Deterministic synthetic parameters
# ----------------------------------------------------------------------------
def init_params(key, C_in=4, C_mid=128, D=128, F=256, V=256):
    ks = iter(jax.random.split(key, 64))

    def dense(shape):
        return jax.random.normal(next(ks), shape, jnp.float32) / math.sqrt(shape[0])

    # encoder
    conv_w = dense((9 * C_in, C_mid))
    conv_b = 0.01 * jax.random.normal(next(ks), (C_mid,), jnp.float32)
    embed_w = dense((C_mid, D))
    embed_b = 0.01 * jax.random.normal(next(ks), (D,), jnp.float32)
    # eval-mode BatchNorm1d (running_mean=0, running_var=1) folded into linear
    bn_g = 1.0 + 0.1 * jax.random.normal(next(ks), (D,), jnp.float32)
    bn_b = 0.1 * jax.random.normal(next(ks), (D,), jnp.float32)
    scale = bn_g / jnp.sqrt(1.0 + 1e-5)
    embed_w = embed_w * scale[None, :]
    embed_b = embed_b * scale + bn_b

    def attn_block():
        return dict(wq=dense((D, D)), bq=jnp.zeros((D,), jnp.float32),
                    wk=dense((D, D)), bk=jnp.zeros((D,), jnp.float32),
                    wv=dense((D, D)), bv=jnp.zeros((D,), jnp.float32),
                    wo=dense((D, D)), bo=jnp.zeros((D,), jnp.float32))

    decoder = dict(
        tok_emb=0.1 * jax.random.normal(next(ks), (V, D), jnp.float32),
        self_attn=attn_block(),
        cross_attn=attn_block(),
        ln1_g=jnp.ones((D,), jnp.float32), ln1_b=jnp.zeros((D,), jnp.float32),
        ln2_g=jnp.ones((D,), jnp.float32), ln2_b=jnp.zeros((D,), jnp.float32),
        ln3_g=jnp.ones((D,), jnp.float32), ln3_b=jnp.zeros((D,), jnp.float32),
        ffn_w1=dense((D, F)), ffn_b1=jnp.zeros((F,), jnp.float32),
        ffn_w2=dense((F, D)), ffn_b2=jnp.zeros((D,), jnp.float32),
        out_w=dense((D, V)), out_b=jnp.zeros((V,), jnp.float32),
    )
    encoder = dict(conv_w=conv_w, conv_b=conv_b,
                   embed_w=embed_w, embed_b=embed_b)
    return dict(encoder=encoder, decoder=decoder)


# ----------------------------------------------------------------------------
if __name__ == "__main__":
    B, C_IN, HW = 2, 4, 16
    D, NUM_HEADS, HEAD_DIM = 128, 4, 32      # lane-dense hidden size
    F, V = 256, 256
    MAX_TOKENS = 8

    key = jax.random.PRNGKey(0)
    pkey, xkey = jax.random.split(key)
    params = init_params(pkey, C_in=C_IN, C_mid=128, D=D, F=F, V=V)
    images = jax.random.normal(xkey, (B, C_IN, HW, HW), jnp.float32)

    fwd = jax.jit(functools.partial(labeldroid_forward,
                                    max_tokens=MAX_TOKENS,
                                    num_heads=NUM_HEADS, head_dim=HEAD_DIM))
    sentence_ids = jax.block_until_ready(fwd(images, params))
    assert sentence_ids.shape == (B, MAX_TOKENS)
    assert sentence_ids.dtype == jnp.int32
    print("KERNEL_OK")
</pallas_src>

<mosaic_0001>
module attributes {stable_mosaic.version = 11 : i64} {
  func.func @_matmul_bias_kernel(%arg0: i32, %arg1: i32, %arg2: memref<32x128xbf16, #tpu.memory_space<vmem>>, %arg3: memref<128x128xbf16, #tpu.memory_space<vmem>>, %arg4: memref<1x128xf32, #tpu.memory_space<vmem>>, %arg5: memref<32x128xf32, #tpu.memory_space<vmem>>) attributes {dimension_semantics = [#tpu.dimension_semantics<parallel>, #tpu.dimension_semantics<parallel>], iteration_bounds = array<i64: 1, 1>, scalar_prefetch = 0 : i64, scratch_operands = 0 : i64, tpu.core_type = #tpu.core_type<tc>, window_params = [{transform_indices = @transform_0, window_bounds = array<i64: 32, 128>}, {transform_indices = @transform_1, window_bounds = array<i64: 128, 128>}, {transform_indices = @transform_2, window_bounds = array<i64: 1, 128>}, {transform_indices = @transform_3, window_bounds = array<i64: 32, 128>}]} {
    %c0 = arith.constant 0 : index
    %c0_0 = arith.constant 0 : index
    %0 = vector.load %arg2[%c0, %c0_0] : memref<32x128xbf16, #tpu.memory_space<vmem>>, vector<32x128xbf16>
    %c0_1 = arith.constant 0 : index
    %c0_2 = arith.constant 0 : index
    %1 = vector.load %arg3[%c0_1, %c0_2] : memref<128x128xbf16, #tpu.memory_space<vmem>>, vector<128x128xbf16>
    %cst = arith.constant dense<0.000000e+00> : vector<32x128xf32>
    %2 = tpu.matmul %0, %1, %cst {dimension_numbers = #tpu.dot_dimension_numbers<[1], [0], [0], [1], [0, 0, 1, 1], [], []>} : vector<32x128xbf16>, vector<128x128xbf16>, vector<32x128xf32> -> vector<32x128xf32>
    %c0_3 = arith.constant 0 : index
    %c0_4 = arith.constant 0 : index
    %3 = vector.load %arg4[%c0_3, %c0_4] : memref<1x128xf32, #tpu.memory_space<vmem>>, vector<1x128xf32>
    %4 = vector.broadcast %3 : vector<1x128xf32> to vector<32x128xf32>
    %5 = arith.addf %2, %4 : vector<32x128xf32>
    %c0_5 = arith.constant 0 : index
    %c0_6 = arith.constant 0 : index
    %6 = vector.load %arg5[%c0_5, %c0_6] : memref<32x128xf32, #tpu.memory_space<vmem>>, vector<32x128xf32>
    tpu.vector_store %arg5[%c0_5, %c0_6], %5 {strides = array<i32>} : memref<32x128xf32, #tpu.memory_space<vmem>>, vector<32x128xf32>,
    return
  }
  func.func @transform_0(%arg0: i32, %arg1: i32) -> (i32, i32) {
    %c0_i32 = arith.constant 0 : i32
    %c0_i32_0 = arith.constant 0 : i32
    return %arg0, %c0_i32 : i32, i32
  }
  func.func @transform_1(%arg0: i32, %arg1: i32) -> (i32, i32) {
    %c0_i32 = arith.constant 0 : i32
    %c0_i32_0 = arith.constant 0 : i32
    return %c0_i32, %arg1 : i32, i32
  }
  func.func @transform_2(%arg0: i32, %arg1: i32) -> (i32, i32) {
    %c0_i32 = arith.constant 0 : i32
    %c0_i32_0 = arith.constant 0 : i32
    return %c0_i32, %arg1 : i32, i32
  }
  func.func @transform_3(%arg0: i32, %arg1: i32) -> (i32, i32) {
    %c0_i32 = arith.constant 0 : i32
    return %arg0, %arg1 : i32, i32
  }
}

module attributes {stable_mosaic.version = 11 : i64} {
  func.func @_conv3x3_relu_kernel(%arg0: i32, %arg1: memref<1x18x18x4xf32, #tpu.memory_space<vmem>>, %arg2: memref<9x4x128xbf16, #tpu.memory_space<vmem>>, %arg3: memref<1x128xf32, #tpu.memory_space<vmem>>, %arg4: memref<1x256x128xf32, #tpu.memory_space<vmem>>) attributes {dimension_semantics = [#tpu.dimension_semantics<parallel>], iteration_bounds = array<i64: 2>, scalar_prefetch = 0 : i64, scratch_operands = 0 : i64, tpu.core_type = #tpu.core_type<tc>, window_params = [{transform_indices = @transform_0, window_bounds = array<i64: 1, 18, 18, 4>}, {pipeline_mode = #tpu.pipeline_mode<synchronous>, transform_indices = @transform_1, window_bounds = array<i64: 9, 4, 128>}, {pipeline_mode = #tpu.pipeline_mode<synchronous>, transform_indices = @transform_2, window_bounds = array<i64: 1, 128>}, {transform_indices = @transform_3, window_bounds = array<i64: 1, 256, 128>}]} {
    %c0 = arith.constant 0 : index
    %c0_0 = arith.constant 0 : index
    %c0_1 = arith.constant 0 : index
    %c0_2 = arith.constant 0 : index
    %0 = vector.load %arg1[%c0, %c0_0, %c0_1, %c0_2] : memref<1x18x18x4xf32, #tpu.memory_space<vmem>>, vector<1x18x18x4xf32>
    %1 = vector.shape_cast %0 : vector<1x18x18x4xf32> to vector<18x18x4xf32>
    %cst = arith.constant 0.000000e+00 : f32
    %2 = vector.broadcast %cst : f32 to vector<256x128xf32>
    %3 = vector.extract_strided_slice %1 {offsets = [0, 0, 0], sizes = [16, 16, 4], strides = [1, 1, 1]} : vector<18x18x4xf32> to vector<16x16x4xf32>
    %4 = vector.shape_cast %3 : vector<16x16x4xf32> to vector<256x4xf32>
    %5 = arith.truncf %4 : vector<256x4xf32> to vector<256x4xbf16>
    %c0_3 = arith.constant 0 : index
    %c0_4 = arith.constant 0 : index
    %c0_5 = arith.constant 0 : index
    %6 = vector.load %arg2[%c0_3, %c0_4, %c0_5] : memref<9x4x128xbf16, #tpu.memory_space<vmem>>, vector<1x4x128xbf16>
    %7 = vector.shape_cast %6 : vector<1x4x128xbf16> to vector<4x128xbf16>
    %cst_6 = arith.constant dense<0.000000e+00> : vector<256x128xf32>
    %8 = tpu.matmul %5, %7, %cst_6 {dimension_numbers = #tpu.dot_dimension_numbers<[1], [0], [0], [1], [0, 0, 1, 1], [], []>} : vector<256x4xbf16>, vector<4x128xbf16>, vector<256x128xf32> -> vector<256x128xf32>
    %9 = arith.addf %2, %8 : vector<256x128xf32>
    %10 = vector.extract_strided_slice %1 {offsets = [0, 1, 0], sizes = [16, 16, 4], strides = [1, 1, 1]} : vector<18x18x4xf32> to vector<16x16x4xf32>
    %11 = vector.shape_cast %10 : vector<16x16x4xf32> to vector<256x4xf32>
    %12 = arith.truncf %11 : vector<256x4xf32> to vector<256x4xbf16>
    %c1 = arith.constant 1 : index
    %c0_7 = arith.constant 0 : index
    %c0_8 = arith.constant 0 : index
    %13 = vector.load %arg2[%c1, %c0_7, %c0_8] : memref<9x4x128xbf16, #tpu.memory_space<vmem>>, vector<1x4x128xbf16>
    %14 = vector.shape_cast %13 : vector<1x4x128xbf16> to vector<4x128xbf16>
    %cst_9 = arith.constant dense<0.000000e+00> : vector<256x128xf32>
    %15 = tpu.matmul %12, %14, %cst_9 {dimension_numbers = #tpu.dot_dimension_numbers<[1], [0], [0], [1], [0, 0, 1, 1], [], []>} : vector<256x4xbf16>, vector<4x128xbf16>, vector<256x128xf32> -> vector<256x128xf32>
    %16 = arith.addf %9, %15 : vector<256x128xf32>
    %17 = vector.extract_strided_slice %1 {offsets = [0, 2, 0], sizes = [16, 16, 4], strides = [1, 1, 1]} : vector<18x18x4xf32> to vector<16x16x4xf32>
    %18 = vector.shape_cast %17 : vector<16x16x4xf32> to vector<256x4xf32>
    %19 = arith.truncf %18 : vector<256x4xf32> to vector<256x4xbf16>
    %c2 = arith.constant 2 : index
    %c0_10 = arith.constant 0 : index
    %c0_11 = arith.constant 0 : index
    %20 = vector.load %arg2[%c2, %c0_10, %c0_11] : memref<9x4x128xbf16, #tpu.memory_space<vmem>>, vector<1x4x128xbf16>
    %21 = vector.shape_cast %20 : vector<1x4x128xbf16> to vector<4x128xbf16>
    %cst_12 = arith.constant dense<0.000000e+00> : vector<256x128xf32>
    %22 = tpu.matmul %19, %21, %cst_12 {dimension_numbers = #tpu.dot_dimension_numbers<[1], [0], [0], [1], [0, 0, 1, 1], [], []>} : vector<256x4xbf16>, vector<4x128xbf16>, vector<256x128xf32> -> vector<256x128xf32>
    %23 = arith.addf %16, %22 : vector<256x128xf32>
    %24 = vector.extract_strided_slice %1 {offsets = [1, 0, 0], sizes = [16, 16, 4], strides = [1, 1, 1]} : vector<18x18x4xf32> to vector<16x16x4xf32>
    %25 = vector.shape_cast %24 : vector<16x16x4xf32> to vector<256x4xf32>
    %26 = arith.truncf %25 : vector<256x4xf32> to vector<256x4xbf16>
    %c3 = arith.constant 3 : index
    %c0_13 = arith.constant 0 : index
    %c0_14 = arith.constant 0 : index
    %27 = vector.load %arg2[%c3, %c0_13, %c0_14] : memref<9x4x128xbf16, #tpu.memory_space<vmem>>, vector<1x4x128xbf16>
    %28 = vector.shape_cast %27 : vector<1x4x128xbf16> to vector<4x128xbf16>
    %cst_15 = arith.constant dense<0.000000e+00> : vector<256x128xf32>
    %29 = tpu.matmul %26, %28, %cst_15 {dimension_numbers = #tpu.dot_dimension_numbers<[1], [0], [0], [1], [0, 0, 1, 1], [], []>} : vector<256x4xbf16>, vector<4x128xbf16>, vector<256x128xf32> -> vector<256x128xf32>
    %30 = arith.addf %23, %29 : vector<256x128xf32>
    %31 = vector.extract_strided_slice %1 {offsets = [1, 1, 0], sizes = [16, 16, 4], strides = [1, 1, 1]} : vector<18x18x4xf32> to vector<16x16x4xf32>
    %32 = vector.shape_cast %31 : vector<16x16x4xf32> to vector<256x4xf32>
    %33 = arith.truncf %32 : vector<256x4xf32> to vector<256x4xbf16>
    %c4 = arith.constant 4 : index
    %c0_16 = arith.constant 0 : index
    %c0_17 = arith.constant 0 : index
    %34 = vector.load %arg2[%c4, %c0_16, %c0_17] : memref<9x4x128xbf16, #tpu.memory_space<vmem>>, vector<1x4x128xbf16>
    %35 = vector.shape_cast %34 : vector<1x4x128xbf16> to vector<4x128xbf16>
    %cst_18 = arith.constant dense<0.000000e+00> : vector<256x128xf32>
    %36 = tpu.matmul %33, %35, %cst_18 {dimension_numbers = #tpu.dot_dimension_numbers<[1], [0], [0], [1], [0, 0, 1, 1], [], []>} : vector<256x4xbf16>, vector<4x128xbf16>, vector<256x128xf32> -> vector<256x128xf32>
    %37 = arith.addf %30, %36 : vector<256x128xf32>
    %38 = vector.extract_strided_slice %1 {offsets = [1, 2, 0], sizes = [16, 16, 4], strides = [1, 1, 1]} : vector<18x18x4xf32> to vector<16x16x4xf32>
    %39 = vector.shape_cast %38 : vector<16x16x4xf32> to vector<256x4xf32>
    %40 = arith.truncf %39 : vector<256x4xf32> to vector<256x4xbf16>
    %c5 = arith.constant 5 : index
    %c0_19 = arith.constant 0 : index
    %c0_20 = arith.constant 0 : index
    %41 = vector.load %arg2[%c5, %c0_19, %c0_20] : memref<9x4x128xbf16, #tpu.memory_space<vmem>>, vector<1x4x128xbf16>
    %42 = vector.shape_cast %41 : vector<1x4x128xbf16> to vector<4x128xbf16>
    %cst_21 = arith.constant dense<0.000000e+00> : vector<256x128xf32>
    %43 = tpu.matmul %40, %42, %cst_21 {dimension_numbers = #tpu.dot_dimension_numbers<[1], [0], [0], [1], [0, 0, 1, 1], [], []>} : vector<256x4xbf16>, vector<4x128xbf16>, vector<256x128xf32> -> vector<256x128xf32>
    %44 = arith.addf %37, %43 : vector<256x128xf32>
    %45 = vector.extract_strided_slice %1 {offsets = [2, 0, 0], sizes = [16, 16, 4], strides = [1, 1, 1]} : vector<18x18x4xf32> to vector<16x16x4xf32>
    %46 = vector.shape_cast %45 : vector<16x16x4xf32> to vector<256x4xf32>
    %47 = arith.truncf %46 : vector<256x4xf32> to vector<256x4xbf16>
    %c6 = arith.constant 6 : index
    %c0_22 = arith.constant 0 : index
    %c0_23 = arith.constant 0 : index
    %48 = vector.load %arg2[%c6, %c0_22, %c0_23] : memref<9x4x128xbf16, #tpu.memory_space<vmem>>, vector<1x4x128xbf16>
    %49 = vector.shape_cast %48 : vector<1x4x128xbf16> to vector<4x128xbf16>
    %cst_24 = arith.constant dense<0.000000e+00> : vector<256x128xf32>
    %50 = tpu.matmul %47, %49, %cst_24 {dimension_numbers = #tpu.dot_dimension_numbers<[1], [0], [0], [1], [0, 0, 1, 1], [], []>} : vector<256x4xbf16>, vector<4x128xbf16>, vector<256x128xf32> -> vector<256x128xf32>
    %51 = arith.addf %44, %50 : vector<256x128xf32>
    %52 = vector.extract_strided_slice %1 {offsets = [2, 1, 0], sizes = [16, 16, 4], strides = [1, 1, 1]} : vector<18x18x4xf32> to vector<16x16x4xf32>
    %53 = vector.shape_cast %52 : vector<16x16x4xf32> to vector<256x4xf32>
    %54 = arith.truncf %53 : vector<256x4xf32> to vector<256x4xbf16>
    %c7 = arith.constant 7 : index
    %c0_25 = arith.constant 0 : index
    %c0_26 = arith.constant 0 : index
    %55 = vector.load %arg2[%c7, %c0_25, %c0_26] : memref<9x4x128xbf16, #tpu.memory_space<vmem>>, vector<1x4x128xbf16>
    %56 = vector.shape_cast %55 : vector<1x4x128xbf16> to vector<4x128xbf16>
    %cst_27 = arith.constant dense<0.000000e+00> : vector<256x128xf32>
    %57 = tpu.matmul %54, %56, %cst_27 {dimension_numbers = #tpu.dot_dimension_numbers<[1], [0], [0], [1], [0, 0, 1, 1], [], []>} : vector<256x4xbf16>, vector<4x128xbf16>, vector<256x128xf32> -> vector<256x128xf32>
    %58 = arith.addf %51, %57 : vector<256x128xf32>
    %59 = vector.extract_strided_slice %1 {offsets = [2, 2, 0], sizes = [16, 16, 4], strides = [1, 1, 1]} : vector<18x18x4xf32> to vector<16x16x4xf32>
    %60 = vector.shape_cast %59 : vector<16x16x4xf32> to vector<256x4xf32>
    %61 = arith.truncf %60 : vector<256x4xf32> to vector<256x4xbf16>
    %c8 = arith.constant 8 : index
    %c0_28 = arith.constant 0 : index
    %c0_29 = arith.constant 0 : index
    %62 = vector.load %arg2[%c8, %c0_28, %c0_29] : memref<9x4x128xbf16, #tpu.memory_space<vmem>>, vector<1x4x128xbf16>
    %63 = vector.shape_cast %62 : vector<1x4x128xbf16> to vector<4x128xbf16>
    %cst_30 = arith.constant dense<0.000000e+00> : vector<256x128xf32>
    %64 = tpu.matmul %61, %63, %cst_30 {dimension_numbers = #tpu.dot_dimension_numbers<[1], [0], [0], [1], [0, 0, 1, 1], [], []>} : vector<256x4xbf16>, vector<4x128xbf16>, vector<256x128xf32> -> vector<256x128xf32>
    %65 = arith.addf %58, %64 : vector<256x128xf32>
    %c0_31 = arith.constant 0 : index
    %c0_32 = arith.constant 0 : index
    %66 = vector.load %arg3[%c0_31, %c0_32] : memref<1x128xf32, #tpu.memory_space<vmem>>, vector<1x128xf32>
    %67 = vector.broadcast %66 : vector<1x128xf32> to vector<256x128xf32>
    %68 = arith.addf %65, %67 : vector<256x128xf32>
    %cst_33 = arith.constant 0.000000e+00 : f32
    %69 = vector.broadcast %cst_33 : f32 to vector<256x128xf32>
    %70 = arith.maximumf %68, %69 : vector<256x128xf32>
    %c0_34 = arith.constant 0 : index
    %c0_35 = arith.constant 0 : index
    %c0_36 = arith.constant 0 : index
    %71 = vector.load %arg4[%c0_34, %c0_35, %c0_36] : memref<1x256x128xf32, #tpu.memory_space<vmem>>, vector<1x256x128xf32>
    %72 = vector.shape_cast %71 : vector<1x256x128xf32> to vector<256x128xf32>
    %73 = vector.shape_cast %70 : vector<256x128xf32> to vector<1x256x128xf32>
    tpu.vector_store %arg4[%c0_34, %c0_35, %c0_36], %73 {strides = array<i32>} : memref<1x256x128xf32, #tpu.memory_space<vmem>>, vector<1x256x128xf32>,
    return
  }
  func.func @transform_0(%arg0: i32) -> (i32, i32, i32, i32) {
    %c0_i32 = arith.constant 0 : i32
    %c0_i32_0 = arith.constant 0 : i32
    %c0_i32_1 = arith.constant 0 : i32
    %c0_i32_2 = arith.constant 0 : i32
    return %arg0, %c0_i32, %c0_i32_0, %c0_i32_1 : i32, i32, i32, i32
  }
  func.func @transform_1(%arg0: i32) -> (i32, i32, i32) {
    %c0_i32 = arith.constant 0 : i32
    %c0_i32_0 = arith.constant 0 : i32
    %c0_i32_1 = arith.constant 0 : i32
    %c0_i32_2 = arith.constant 0 : i32
    return %c0_i32, %c0_i32_0, %c0_i32_1 : i32, i32, i32
  }
  func.func @transform_2(%arg0: i32) -> (i32, i32) {
    %c0_i32 = arith.constant 0 : i32
    %c0_i32_0 = arith.constant 0 : i32
    %c0_i32_1 = arith.constant 0 : i32
    return %c0_i32, %c0_i32_0 : i32, i32
  }
  func.func @transform_3(%arg0: i32) -> (i32, i32, i32) {
    %c0_i32 = arith.constant 0 : i32
    %c0_i32_0 = arith.constant 0 : i32
    %c0_i32_1 = arith.constant 0 : i32
    return %arg0, %c0_i32, %c0_i32_0 : i32, i32, i32
  }
}

module attributes {stable_mosaic.version = 11 : i64} {
  func.func @_matmul_bias_kernel(%arg0: i32, %arg1: i32, %arg2: memref<32x128xbf16, #tpu.memory_space<vmem>>, %arg3: memref<128x256xbf16, #tpu.memory_space<vmem>>, %arg4: memref<1x256xf32, #tpu.memory_space<vmem>>, %arg5: memref<32x256xf32, #tpu.memory_space<vmem>>) attributes {dimension_semantics = [#tpu.dimension_semantics<parallel>, #tpu.dimension_semantics<parallel>], iteration_bounds = array<i64: 1, 1>, scalar_prefetch = 0 : i64, scratch_operands = 0 : i64, tpu.core_type = #tpu.core_type<tc>, window_params = [{transform_indices = @transform_0, window_bounds = array<i64: 32, 128>}, {transform_indices = @transform_1, window_bounds = array<i64: 128, 256>}, {transform_indices = @transform_2, window_bounds = array<i64: 1, 256>}, {transform_indices = @transform_3, window_bounds = array<i64: 32, 256>}]} {
    %c0 = arith.constant 0 : index
    %c0_0 = arith.constant 0 : index
    %0 = vector.load %arg2[%c0, %c0_0] : memref<32x128xbf16, #tpu.memory_space<vmem>>, vector<32x128xbf16>
    %c0_1 = arith.constant 0 : index
    %c0_2 = arith.constant 0 : index
    %1 = vector.load %arg3[%c0_1, %c0_2] : memref<128x256xbf16, #tpu.memory_space<vmem>>, vector<128x256xbf16>
    %cst = arith.constant dense<0.000000e+00> : vector<32x256xf32>
    %2 = tpu.matmul %0, %1, %cst {dimension_numbers = #tpu.dot_dimension_numbers<[1], [0], [0], [1], [0, 0, 1, 1], [], []>} : vector<32x128xbf16>, vector<128x256xbf16>, vector<32x256xf32> -> vector<32x256xf32>
    %c0_3 = arith.constant 0 : index
    %c0_4 = arith.constant 0 : index
    %3 = vector.load %arg4[%c0_3, %c0_4] : memref<1x256xf32, #tpu.memory_space<vmem>>, vector<1x256xf32>
    %4 = vector.broadcast %3 : vector<1x256xf32> to vector<32x256xf32>
    %5 = arith.addf %2, %4 : vector<32x256xf32>
    %c0_5 = arith.constant 0 : index
    %c0_6 = arith.constant 0 : index
    %6 = vector.load %arg5[%c0_5, %c0_6] : memref<32x256xf32, #tpu.memory_space<vmem>>, vector<32x256xf32>
    tpu.vector_store %arg5[%c0_5, %c0_6], %5 {strides = array<i32>} : memref<32x256xf32, #tpu.memory_space<vmem>>, vector<32x256xf32>,
    return
  }
  func.func @transform_0(%arg0: i32, %arg1: i32) -> (i32, i32) {
    %c0_i32 = arith.constant 0 : i32
    %c0_i32_0 = arith.constant 0 : i32
    return %arg0, %c0_i32 : i32, i32
  }
  func.func @transform_1(%arg0: i32, %arg1: i32) -> (i32, i32) {
    %c0_i32 = arith.constant 0 : i32
    %c0_i32_0 = arith.constant 0 : i32
    return %c0_i32, %arg1 : i32, i32
  }
  func.func @transform_2(%arg0: i32, %arg1: i32) -> (i32, i32) {
    %c0_i32 = arith.constant 0 : i32
    %c0_i32_0 = arith.constant 0 : i32
    return %c0_i32, %arg1 : i32, i32
  }
  func.func @transform_3(%arg0: i32, %arg1: i32) -> (i32, i32) {
    %c0_i32 = arith.constant 0 : i32
    return %arg0, %arg1 : i32, i32
  }
}

module attributes {stable_mosaic.version = 11 : i64} {
  func.func @_greedy_decode_kernel(%arg0: i32, %arg1: memref<1x16x128xf32, #tpu.memory_space<vmem>>, %arg2: memref<1x16x128xf32, #tpu.memory_space<vmem>>, %arg3: memref<256x128xbf16, #tpu.memory_space<vmem>>, %arg4: memref<8x128xf32, #tpu.memory_space<vmem>>, %arg5: memref<128x384xbf16, #tpu.memory_space<vmem>>, %arg6: memref<1x384xf32, #tpu.memory_space<vmem>>, %arg7: memref<128x128xbf16, #tpu.memory_space<vmem>>, %arg8: memref<1x128xf32, #tpu.memory_space<vmem>>, %arg9: memref<128x128xbf16, #tpu.memory_space<vmem>>, %arg10: memref<1x128xf32, #tpu.memory_space<vmem>>, %arg11: memref<128x128xbf16, #tpu.memory_space<vmem>>, %arg12: memref<1x128xf32, #tpu.memory_space<vmem>>, %arg13: memref<1x128xf32, #tpu.memory_space<vmem>>, %arg14: memref<1x128xf32, #tpu.memory_space<vmem>>, %arg15: memref<1x128xf32, #tpu.memory_space<vmem>>, %arg16: memref<1x128xf32, #tpu.memory_space<vmem>>, %arg17: memref<1x128xf32, #tpu.memory_space<vmem>>, %arg18: memref<1x128xf32, #tpu.memory_space<vmem>>, %arg19: memref<128x256xbf16, #tpu.memory_space<vmem>>, %arg20: memref<1x256xf32, #tpu.memory_space<vmem>>, %arg21: memref<256x128xbf16, #tpu.memory_space<vmem>>, %arg22: memref<1x128xf32, #tpu.memory_space<vmem>>, %arg23: memref<128x256xbf16, #tpu.memory_space<vmem>>, %arg24: memref<1x256xf32, #tpu.memory_space<vmem>>, %arg25: memref<128x4xf32, #tpu.memory_space<vmem>>, %arg26: memref<4x128xf32, #tpu.memory_space<vmem>>, %arg27: memref<1x8x1xi32, #tpu.memory_space<vmem>>, %arg28: memref<8x128xf32, #tpu.memory_space<vmem>>, %arg29: memref<8x128xf32, #tpu.memory_space<vmem>>) attributes {dimension_semantics = [#tpu.dimension_semantics<parallel>], iteration_bounds = array<i64: 2>, scalar_prefetch = 0 : i64, scratch_operands = 2 : i64, tpu.core_type = #tpu.core_type<tc>, window_params = [{transform_indices = @transform_0, window_bounds = array<i64: 1, 16, 128>}, {transform_indices = @transform_1, window_bounds = array<i64: 1, 16, 128>}, {pipeline_mode = #tpu.pipeline_mode<synchronous>, transform_indices = @transform_2, window_bounds = array<i64: 256, 128>}, {pipeline_mode = #tpu.pipeline_mode<synchronous>, transform_indices = @transform_3, window_bounds = array<i64: 8, 128>}, {pipeline_mode = #tpu.pipeline_mode<synchronous>, transform_indices = @transform_4, window_bounds = array<i64: 128, 384>}, {pipeline_mode = #tpu.pipeline_mode<synchronous>, transform_indices = @transform_5, window_bounds = array<i64: 1, 384>}, {pipeline_mode = #tpu.pipeline_mode<synchronous>, transform_indices = @transform_6, window_bounds = array<i64: 128, 128>}, {pipeline_mode = #tpu.pipeline_mode<synchronous>, transform_indices = @transform_7, window_bounds = array<i64: 1, 128>}, {pipeline_mode = #tpu.pipeline_mode<synchronous>, transform_indices = @transform_8, window_bounds = array<i64: 128, 128>}, {pipeline_mode = #tpu.pipeline_mode<synchronous>, transform_indices = @transform_9, window_bounds = array<i64: 1, 128>}, {pipeline_mode = #tpu.pipeline_mode<synchronous>, transform_indices = @transform_10, window_bounds = array<i64: 128, 128>}, {pipeline_mode = #tpu.pipeline_mode<synchronous>, transform_indices = @transform_11, window_bounds = array<i64: 1, 128>}, {pipeline_mode = #tpu.pipeline_mode<synchronous>, transform_indices = @transform_12, window_bounds = array<i64: 1, 128>}, {pipeline_mode = #tpu.pipeline_mode<synchronous>, transform_indices = @transform_13, window_bounds = array<i64: 1, 128>}, {pipeline_mode = #tpu.pipeline_mode<synchronous>, transform_indices = @transform_14, window_bounds = array<i64: 1, 128>}, {pipeline_mode = #tpu.pipeline_mode<synchronous>, transform_indices = @transform_15, window_bounds = array<i64: 1, 128>}, {pipeline_mode = #tpu.pipeline_mode<synchronous>, transform_indices = @transform_16, window_bounds = array<i64: 1, 128>}, {pipeline_mode = #tpu.pipeline_mode<synchronous>, transform_indices = @transform_17, window_bounds = array<i64: 1, 128>}, {pipeline_mode = #tpu.pipeline_mode<synchronous>, transform_indices = @transform_18, window_bounds = array<i64: 128, 256>}, {pipeline_mode = #tpu.pipeline_mode<synchronous>, transform_indices = @transform_19, window_bounds = array<i64: 1, 256>}, {pipeline_mode = #tpu.pipeline_mode<synchronous>, transform_indices = @transform_20, window_bounds = array<i64: 256, 128>}, {pipeline_mode = #tpu.pipeline_mode<synchronous>, transform_indices = @transform_21, window_bounds = array<i64: 1, 128>}, {pipeline_mode = #tpu.pipeline_mode<synchronous>, transform_indices = @transform_22, window_bounds = array<i64: 128, 256>}, {pipeline_mode = #tpu.pipeline_mode<synchronous>, transform_indices = @transform_23, window_bounds = array<i64: 1, 256>}, {pipeline_mode = #tpu.pipeline_mode<synchronous>, transform_indices = @transform_24, window_bounds = array<i64: 128, 4>}, {pipeline_mode = #tpu.pipeline_mode<synchronous>, transform_indices = @transform_25, window_bounds = array<i64: 4, 128>}, {transform_indices = @transform_26, window_bounds = array<i64: 1, 8, 1>}]} {
    %cst = arith.constant 0.000000e+00 : f32
    %0 = vector.broadcast %cst : f32 to vector<8x128xf32>
    %c0 = arith.constant 0 : index
    %c0_0 = arith.constant 0 : index
    %1 = vector.load %arg28[%c0, %c0_0] : memref<8x128xf32, #tpu.memory_space<vmem>>, vector<8x128xf32>
    tpu.vector_store %arg28[%c0, %c0_0], %0 {strides = array<i32>} : memref<8x128xf32, #tpu.memory_space<vmem>>, vector<8x128xf32>,
    %cst_1 = arith.constant 0.000000e+00 : f32
    %2 = vector.broadcast %cst_1 : f32 to vector<8x128xf32>
    %c0_2 = arith.constant 0 : index
    %c0_3 = arith.constant 0 : index
    %3 = vector.load %arg29[%c0_2, %c0_3] : memref<8x128xf32, #tpu.memory_space<vmem>>, vector<8x128xf32>
    tpu.vector_store %arg29[%c0_2, %c0_3], %2 {strides = array<i32>} : memref<8x128xf32, #tpu.memory_space<vmem>>, vector<8x128xf32>,
    %c0_4 = arith.constant 0 : index
    %c0_5 = arith.constant 0 : index
    %c0_6 = arith.constant 0 : index
    %4 = vector.load %arg1[%c0_4, %c0_5, %c0_6] : memref<1x16x128xf32, #tpu.memory_space<vmem>>, vector<1x16x128xf32>
    %5 = vector.shape_cast %4 : vector<1x16x128xf32> to vector<16x128xf32>
    %c0_7 = arith.constant 0 : index
    %c0_8 = arith.constant 0 : index
    %c0_9 = arith.constant 0 : index
    %6 = vector.load %arg2[%c0_7, %c0_8, %c0_9] : memref<1x16x128xf32, #tpu.memory_space<vmem>>, vector<1x16x128xf32>
    %7 = vector.shape_cast %6 : vector<1x16x128xf32> to vector<16x128xf32>
    %c0_10 = arith.constant 0 : index
    %c0_11 = arith.constant 0 : index
    %8 = vector.load %arg25[%c0_10, %c0_11] : memref<128x4xf32, #tpu.memory_space<vmem>>, vector<128x4xf32>
    %c0_12 = arith.constant 0 : index
    %c0_13 = arith.constant 0 : index
    %9 = vector.load %arg26[%c0_12, %c0_13] : memref<4x128xf32, #tpu.memory_space<vmem>>, vector<4x128xf32>
    %c0_14 = arith.constant 0 : index
    %c0_15 = arith.constant 0 : index
    %10 = vector.load %arg13[%c0_14, %c0_15] : memref<1x128xf32, #tpu.memory_space<vmem>>, vector<1x128xf32>
    %c0_16 = arith.constant 0 : index
    %c0_17 = arith.constant 0 : index
    %11 = vector.load %arg14[%c0_16, %c0_17] : memref<1x128xf32, #tpu.memory_space<vmem>>, vector<1x128xf32>
    %c0_18 = arith.constant 0 : index
    %c0_19 = arith.constant 0 : index
    %12 = vector.load %arg15[%c0_18, %c0_19] : memref<1x128xf32, #tpu.memory_space<vmem>>, vector<1x128xf32>
    %c0_20 = arith.constant 0 : index
    %c0_21 = arith.constant 0 : index
    %13 = vector.load %arg16[%c0_20, %c0_21] : memref<1x128xf32, #tpu.memory_space<vmem>>, vector<1x128xf32>
    %c0_22 = arith.constant 0 : index
    %c0_23 = arith.constant 0 : index
    %14 = vector.load %arg17[%c0_22, %c0_23] : memref<1x128xf32, #tpu.memory_space<vmem>>, vector<1x128xf32>
    %c0_24 = arith.constant 0 : index
    %c0_25 = arith.constant 0 : index
    %15 = vector.load %arg18[%c0_24, %c0_25] : memref<1x128xf32, #tpu.memory_space<vmem>>, vector<1x128xf32>
    %16 = tpu.iota {dimensions = array<i32: 1>} : vector<1x256xi32>
    %17 = arith.sitofp %16 : vector<1x256xi32> to vector<1x256xf32>
    %18 = tpu.iota {dimensions = array<i32: 0>} : vector<8x1xi32>
    %c1_i32 = arith.constant 1 : i32
    %19 = vector.broadcast %c1_i32 : i32 to vector<1x256xi32>
    %20 = arith.cmpi eq, %16, %19 : vector<1x256xi32>
    %21 = arith.extui %20 : vector<1x256xi1> to vector<1x256xi32>
    %22 = arith.sitofp %21 : vector<1x256xi32> to vector<1x256xf32>
    %c0_i32 = arith.constant 0 : i32
    %c8_i32 = arith.constant 8 : i32
    %23 = arith.addi %c0_i32, %c8_i32 : i32
    %c1_i32_26 = arith.constant 1 : i32
    %24 = scf.for %arg30 = %c0_i32 to %23 step %c1_i32_26 iter_args(%arg31 = %22) -> (vector<1x256xf32>)  : i32 {
      %25 = arith.truncf %arg31 : vector<1x256xf32> to vector<1x256xbf16>
      %c0_28 = arith.constant 0 : index
      %c0_29 = arith.constant 0 : index
      %26 = vector.load %arg3[%c0_28, %c0_29] : memref<256x128xbf16, #tpu.memory_space<vmem>>, vector<256x128xbf16>
      %cst_30 = arith.constant dense<0.000000e+00> : vector<1x128xf32>
      %27 = tpu.matmul %25, %26, %cst_30 {dimension_numbers = #tpu.dot_dimension_numbers<[1], [0], [0], [1], [0, 0, 1, 1], [], []>} : vector<1x256xbf16>, vector<256x128xbf16>, vector<1x128xf32> -> vector<1x128xf32>
      %cst_31 = arith.constant 11.3137083 : f32
      %28 = vector.broadcast %cst_31 : f32 to vector<1x128xf32>
      %29 = arith.mulf %27, %28 : vector<1x128xf32>
      %30 = arith.index_cast %arg30 : i32 to index
      %c0_32 = arith.constant 0 : index
      %31 = vector.load %arg4[%30, %c0_32] : memref<8x128xf32, #tpu.memory_space<vmem>>, vector<1x128xf32>
      %32 = arith.addf %29, %31 : vector<1x128xf32>
      %33 = arith.truncf %32 : vector<1x128xf32> to vector<1x128xbf16>
      %c0_33 = arith.constant 0 : index
      %c0_34 = arith.constant 0 : index
      %34 = vector.load %arg5[%c0_33, %c0_34] : memref<128x384xbf16, #tpu.memory_space<vmem>>, vector<128x384xbf16>
      %cst_35 = arith.constant dense<0.000000e+00> : vector<1x384xf32>
      %35 = tpu.matmul %33, %34, %cst_35 {dimension_numbers = #tpu.dot_dimension_numbers<[1], [0], [0], [1], [0, 0, 1, 1], [], []>} : vector<1x128xbf16>, vector<128x384xbf16>, vector<1x384xf32> -> vector<1x384xf32>
      %c0_36 = arith.constant 0 : index
      %c0_37 = arith.constant 0 : index
      %36 = vector.load %arg6[%c0_36, %c0_37] : memref<1x384xf32, #tpu.memory_space<vmem>>, vector<1x384xf32>
      %37 = arith.addf %35, %36 : vector<1x384xf32>
      %38 = vector.extract_strided_slice %37 {offsets = [0, 0], sizes = [1, 128], strides = [1, 1]} : vector<1x384xf32> to vector<1x128xf32>
      %39 = vector.extract_strided_slice %37 {offsets = [0, 128], sizes = [1, 128], strides = [1, 1]} : vector<1x384xf32> to vector<1x128xf32>
      %40 = arith.index_cast %arg30 : i32 to index
      %c0_38 = arith.constant 0 : index
      %41 = vector.load %arg28[%40, %c0_38] : memref<8x128xf32, #tpu.memory_space<vmem>>, vector<1x128xf32>
      tpu.vector_store %arg28[%40, %c0_38], %39 {strides = array<i32>} : memref<8x128xf32, #tpu.memory_space<vmem>>, vector<1x128xf32>,
      %42 = vector.extract_strided_slice %37 {offsets = [0, 256], sizes = [1, 128], strides = [1, 1]} : vector<1x384xf32> to vector<1x128xf32>
      %43 = arith.index_cast %arg30 : i32 to index
      %c0_39 = arith.constant 0 : index
      %44 = vector.load %arg29[%43, %c0_39] : memref<8x128xf32, #tpu.memory_space<vmem>>, vector<1x128xf32>
      tpu.vector_store %arg29[%43, %c0_39], %42 {strides = array<i32>} : memref<8x128xf32, #tpu.memory_space<vmem>>, vector<1x128xf32>,
      %c0_40 = arith.constant 0 : index
      %c0_41 = arith.constant 0 : index
      %45 = vector.load %arg28[%c0_40, %c0_41] : memref<8x128xf32, #tpu.memory_space<vmem>>, vector<8x128xf32>
      %c0_42 = arith.constant 0 : index
      %c0_43 = arith.constant 0 : index
      %46 = vector.load %arg29[%c0_42, %c0_43] : memref<8x128xf32, #tpu.memory_space<vmem>>, vector<8x128xf32>
      %47 = vector.broadcast %arg30 : i32 to vector<8x1xi32>
      %48 = arith.cmpi sle, %18, %47 : vector<8x1xi32>
      %49 = vector.broadcast %38 : vector<1x128xf32> to vector<8x128xf32>
      %50 = arith.mulf %49, %45 : vector<8x128xf32>
      %cst_44 = arith.constant dense<0.000000e+00> : vector<8x4xf32>
      %51 = tpu.matmul %50, %8, %cst_44 {dimension_numbers = #tpu.dot_dimension_numbers<[1], [0], [0], [1], [0, 0, 1, 1], [], []>} : vector<8x128xf32>, vector<128x4xf32>, vector<8x4xf32> -> vector<8x4xf32>
      %cst_45 = arith.constant -1.000000e+30 : f32
      %52 = vector.shape_cast %48 : vector<8x1xi1> to vector<8x1xi1>
      %53 = vector.broadcast %52 : vector<8x1xi1> to vector<8x4xi1>
      %54 = vector.broadcast %cst_45 : f32 to vector<8x4xf32>
      %55 = arith.select %53, %51, %54 : vector<8x4xi1>, vector<8x4xf32>
      %cst_46 = arith.constant dense<0xFF800000> : vector<4xf32>
      %56 = vector.multi_reduction <maximumf>, %55, %cst_46 [0] : vector<8x4xf32> to vector<4xf32>
      %57 = vector.shape_cast %56 : vector<4xf32> to vector<1x4xf32>
      %58 = vector.broadcast %57 : vector<1x4xf32> to vector<8x4xf32>
      %59 = arith.subf %55, %58 : vector<8x4xf32>
      %60 = math.exp %59 : vector<8x4xf32>
      %cst_47 = arith.constant dense<0.000000e+00> : vector<4xf32>
      %61 = vector.multi_reduction <add>, %60, %cst_47 [0] : vector<8x4xf32> to vector<4xf32>
      %62 = vector.shape_cast %61 : vector<4xf32> to vector<1x4xf32>
      %63 = tpu.reciprocal %62 {approx = true} : vector<1x4xf32> -> vector<1x4xf32>
      %64 = vector.broadcast %63 : vector<1x4xf32> to vector<8x4xf32>
      %65 = arith.mulf %60, %64 : vector<8x4xf32>
      %cst_48 = arith.constant dense<0.000000e+00> : vector<8x128xf32>
      %66 = tpu.matmul %65, %9, %cst_48 {dimension_numbers = #tpu.dot_dimension_numbers<[1], [0], [0], [1], [0, 0, 1, 1], [], []>} : vector<8x4xf32>, vector<4x128xf32>, vector<8x128xf32> -> vector<8x128xf32>
      %67 = arith.mulf %66, %46 : vector<8x128xf32>
      %cst_49 = arith.constant dense<0.000000e+00> : vector<128xf32>
      %68 = vector.multi_reduction <add>, %67, %cst_49 [0] : vector<8x128xf32> to vector<128xf32>
      %69 = vector.shape_cast %68 : vector<128xf32> to vector<1x128xf32>
      %70 = arith.truncf %69 : vector<1x128xf32> to vector<1x128xbf16>
      %c0_50 = arith.constant 0 : index
      %c0_51 = arith.constant 0 : index
      %71 = vector.load %arg7[%c0_50, %c0_51] : memref<128x128xbf16, #tpu.memory_space<vmem>>, vector<128x128xbf16>
      %cst_52 = arith.constant dense<0.000000e+00> : vector<1x128xf32>
      %72 = tpu.matmul %70, %71, %cst_52 {dimension_numbers = #tpu.dot_dimension_numbers<[1], [0], [0], [1], [0, 0, 1, 1], [], []>} : vector<1x128xbf16>, vector<128x128xbf16>, vector<1x128xf32> -> vector<1x128xf32>
      %c0_53 = arith.constant 0 : index
      %c0_54 = arith.constant 0 : index
      %73 = vector.load %arg8[%c0_53, %c0_54] : memref<1x128xf32, #tpu.memory_space<vmem>>, vector<1x128xf32>
      %74 = arith.addf %72, %73 : vector<1x128xf32>
      %75 = arith.addf %32, %74 : vector<1x128xf32>
      %cst_55 = arith.constant dense<0.000000e+00> : vector<1xf32>
      %76 = vector.multi_reduction <add>, %75, %cst_55 [1] : vector<1x128xf32> to vector<1xf32>
      %77 = vector.shape_cast %76 : vector<1xf32> to vector<1x1xf32>
      %cst_56 = arith.constant 1.280000e+02 : f32
      %78 = vector.broadcast %cst_56 : f32 to vector<1x1xf32>
      %79 = arith.divf %77, %78 : vector<1x1xf32>
      %80 = vector.broadcast %79 : vector<1x1xf32> to vector<1x128xf32>
      %81 = arith.subf %75, %80 : vector<1x128xf32>
      %82 = arith.mulf %81, %81 : vector<1x128xf32>
      %cst_57 = arith.constant dense<0.000000e+00> : vector<1xf32>
      %83 = vector.multi_reduction <add>, %82, %cst_57 [1] : vector<1x128xf32> to vector<1xf32>
      %84 = vector.shape_cast %83 : vector<1xf32> to vector<1x1xf32>
      %cst_58 = arith.constant 1.280000e+02 : f32
      %85 = vector.broadcast %cst_58 : f32 to vector<1x1xf32>
      %86 = arith.divf %84, %85 : vector<1x1xf32>
      %cst_59 = arith.constant 9.99999974E-6 : f32
      %87 = vector.broadcast %cst_59 : f32 to vector<1x1xf32>
      %88 = arith.addf %86, %87 : vector<1x1xf32>
      %89 = math.rsqrt %88 : vector<1x1xf32>
      %90 = vector.broadcast %89 : vector<1x1xf32> to vector<1x128xf32>
      %91 = arith.mulf %81, %90 : vector<1x128xf32>
      %92 = arith.mulf %91, %10 : vector<1x128xf32>
      %93 = arith.addf %92, %11 : vector<1x128xf32>
      %94 = arith.truncf %93 : vector<1x128xf32> to vector<1x128xbf16>
      %c0_60 = arith.constant 0 : index
      %c0_61 = arith.constant 0 : index
      %95 = vector.load %arg9[%c0_60, %c0_61] : memref<128x128xbf16, #tpu.memory_space<vmem>>, vector<128x128xbf16>
      %cst_62 = arith.constant dense<0.000000e+00> : vector<1x128xf32>
      %96 = tpu.matmul %94, %95, %cst_62 {dimension_numbers = #tpu.dot_dimension_numbers<[1], [0], [0], [1], [0, 0, 1, 1], [], []>} : vector<1x128xbf16>, vector<128x128xbf16>, vector<1x128xf32> -> vector<1x128xf32>
      %c0_63 = arith.constant 0 : index
      %c0_64 = arith.constant 0 : index
      %97 = vector.load %arg10[%c0_63, %c0_64] : memref<1x128xf32, #tpu.memory_space<vmem>>, vector<1x128xf32>
      %98 = arith.addf %96, %97 : vector<1x128xf32>
      %99 = vector.broadcast %98 : vector<1x128xf32> to vector<16x128xf32>
      %100 = arith.mulf %99, %5 : vector<16x128xf32>
      %cst_65 = arith.constant dense<0.000000e+00> : vector<16x4xf32>
      %101 = tpu.matmul %100, %8, %cst_65 {dimension_numbers = #tpu.dot_dimension_numbers<[1], [0], [0], [1], [0, 0, 1, 1], [], []>} : vector<16x128xf32>, vector<128x4xf32>, vector<16x4xf32> -> vector<16x4xf32>
      %cst_66 = arith.constant dense<0xFF800000> : vector<4xf32>
      %102 = vector.multi_reduction <maximumf>, %101, %cst_66 [0] : vector<16x4xf32> to vector<4xf32>
      %103 = vector.shape_cast %102 : vector<4xf32> to vector<1x4xf32>
      %104 = vector.broadcast %103 : vector<1x4xf32> to vector<16x4xf32>
      %105 = arith.subf %101, %104 : vector<16x4xf32>
      %106 = math.exp %105 : vector<16x4xf32>
      %cst_67 = arith.constant dense<0.000000e+00> : vector<4xf32>
      %107 = vector.multi_reduction <add>, %106, %cst_67 [0] : vector<16x4xf32> to vector<4xf32>
      %108 = vector.shape_cast %107 : vector<4xf32> to vector<1x4xf32>
      %109 = tpu.reciprocal %108 {approx = true} : vector<1x4xf32> -> vector<1x4xf32>
      %110 = vector.broadcast %109 : vector<1x4xf32> to vector<16x4xf32>
      %111 = arith.mulf %106, %110 : vector<16x4xf32>
      %cst_68 = arith.constant dense<0.000000e+00> : vector<16x128xf32>
      %112 = tpu.matmul %111, %9, %cst_68 {dimension_numbers = #tpu.dot_dimension_numbers<[1], [0], [0], [1], [0, 0, 1, 1], [], []>} : vector<16x4xf32>, vector<4x128xf32>, vector<16x128xf32> -> vector<16x128xf32>
      %113 = arith.mulf %112, %7 : vector<16x128xf32>
      %cst_69 = arith.constant dense<0.000000e+00> : vector<128xf32>
      %114 = vector.multi_reduction <add>, %113, %cst_69 [0] : vector<16x128xf32> to vector<128xf32>
      %115 = vector.shape_cast %114 : vector<128xf32> to vector<1x128xf32>
      %116 = arith.truncf %115 : vector<1x128xf32> to vector<1x128xbf16>
      %c0_70 = arith.constant 0 : index
      %c0_71 = arith.constant 0 : index
      %117 = vector.load %arg11[%c0_70, %c0_71] : memref<128x128xbf16, #tpu.memory_space<vmem>>, vector<128x128xbf16>
      %cst_72 = arith.constant dense<0.000000e+00> : vector<1x128xf32>
      %118 = tpu.matmul %116, %117, %cst_72 {dimension_numbers = #tpu.dot_dimension_numbers<[1], [0], [0], [1], [0, 0, 1, 1], [], []>} : vector<1x128xbf16>, vector<128x128xbf16>, vector<1x128xf32> -> vector<1x128xf32>
      %c0_73 = arith.constant 0 : index
      %c0_74 = arith.constant 0 : index
      %119 = vector.load %arg12[%c0_73, %c0_74] : memref<1x128xf32, #tpu.memory_space<vmem>>, vector<1x128xf32>
      %120 = arith.addf %118, %119 : vector<1x128xf32>
      %121 = arith.addf %93, %120 : vector<1x128xf32>
      %cst_75 = arith.constant dense<0.000000e+00> : vector<1xf32>
      %122 = vector.multi_reduction <add>, %121, %cst_75 [1] : vector<1x128xf32> to vector<1xf32>
      %123 = vector.shape_cast %122 : vector<1xf32> to vector<1x1xf32>
      %cst_76 = arith.constant 1.280000e+02 : f32
      %124 = vector.broadcast %cst_76 : f32 to vector<1x1xf32>
      %125 = arith.divf %123, %124 : vector<1x1xf32>
      %126 = vector.broadcast %125 : vector<1x1xf32> to vector<1x128xf32>
      %127 = arith.subf %121, %126 : vector<1x128xf32>
      %128 = arith.mulf %127, %127 : vector<1x128xf32>
      %cst_77 = arith.constant dense<0.000000e+00> : vector<1xf32>
      %129 = vector.multi_reduction <add>, %128, %cst_77 [1] : vector<1x128xf32> to vector<1xf32>
      %130 = vector.shape_cast %129 : vector<1xf32> to vector<1x1xf32>
      %cst_78 = arith.constant 1.280000e+02 : f32
      %131 = vector.broadcast %cst_78 : f32 to vector<1x1xf32>
      %132 = arith.divf %130, %131 : vector<1x1xf32>
      %cst_79 = arith.constant 9.99999974E-6 : f32
      %133 = vector.broadcast %cst_79 : f32 to vector<1x1xf32>
      %134 = arith.addf %132, %133 : vector<1x1xf32>
      %135 = math.rsqrt %134 : vector<1x1xf32>
      %136 = vector.broadcast %135 : vector<1x1xf32> to vector<1x128xf32>
      %137 = arith.mulf %127, %136 : vector<1x128xf32>
      %138 = arith.mulf %137, %12 : vector<1x128xf32>
      %139 = arith.addf %138, %13 : vector<1x128xf32>
      %140 = arith.truncf %139 : vector<1x128xf32> to vector<1x128xbf16>
      %c0_80 = arith.constant 0 : index
      %c0_81 = arith.constant 0 : index
      %141 = vector.load %arg19[%c0_80, %c0_81] : memref<128x256xbf16, #tpu.memory_space<vmem>>, vector<128x256xbf16>
      %cst_82 = arith.constant dense<0.000000e+00> : vector<1x256xf32>
      %142 = tpu.matmul %140, %141, %cst_82 {dimension_numbers = #tpu.dot_dimension_numbers<[1], [0], [0], [1], [0, 0, 1, 1], [], []>} : vector<1x128xbf16>, vector<128x256xbf16>, vector<1x256xf32> -> vector<1x256xf32>
      %c0_83 = arith.constant 0 : index
      %c0_84 = arith.constant 0 : index
      %143 = vector.load %arg20[%c0_83, %c0_84] : memref<1x256xf32, #tpu.memory_space<vmem>>, vector<1x256xf32>
      %144 = arith.addf %142, %143 : vector<1x256xf32>
      %cst_85 = arith.constant 0.000000e+00 : f32
      %145 = vector.broadcast %cst_85 : f32 to vector<1x256xf32>
      %146 = arith.maximumf %144, %145 : vector<1x256xf32>
      %147 = arith.truncf %146 : vector<1x256xf32> to vector<1x256xbf16>
      %c0_86 = arith.constant 0 : index
      %c0_87 = arith.constant 0 : index
      %148 = vector.load %arg21[%c0_86, %c0_87] : memref<256x128xbf16, #tpu.memory_space<vmem>>, vector<256x128xbf16>
      %cst_88 = arith.constant dense<0.000000e+00> : vector<1x128xf32>
      %149 = tpu.matmul %147, %148, %cst_88 {dimension_numbers = #tpu.dot_dimension_numbers<[1], [0], [0], [1], [0, 0, 1, 1], [], []>} : vector<1x256xbf16>, vector<256x128xbf16>, vector<1x128xf32> -> vector<1x128xf32>
      %c0_89 = arith.constant 0 : index
      %c0_90 = arith.constant 0 : index
      %150 = vector.load %arg22[%c0_89, %c0_90] : memref<1x128xf32, #tpu.memory_space<vmem>>, vector<1x128xf32>
      %151 = arith.addf %149, %150 : vector<1x128xf32>
      %152 = arith.addf %139, %151 : vector<1x128xf32>
      %cst_91 = arith.constant dense<0.000000e+00> : vector<1xf32>
      %153 = vector.multi_reduction <add>, %152, %cst_91 [1] : vector<1x128xf32> to vector<1xf32>
      %154 = vector.shape_cast %153 : vector<1xf32> to vector<1x1xf32>
      %cst_92 = arith.constant 1.280000e+02 : f32
      %155 = vector.broadcast %cst_92 : f32 to vector<1x1xf32>
      %156 = arith.divf %154, %155 : vector<1x1xf32>
      %157 = vector.broadcast %156 : vector<1x1xf32> to vector<1x128xf32>
      %158 = arith.subf %152, %157 : vector<1x128xf32>
      %159 = arith.mulf %158, %158 : vector<1x128xf32>
      %cst_93 = arith.constant dense<0.000000e+00> : vector<1xf32>
      %160 = vector.multi_reduction <add>, %159, %cst_93 [1] : vector<1x128xf32> to vector<1xf32>
      %161 = vector.shape_cast %160 : vector<1xf32> to vector<1x1xf32>
      %cst_94 = arith.constant 1.280000e+02 : f32
      %162 = vector.broadcast %cst_94 : f32 to vector<1x1xf32>
      %163 = arith.divf %161, %162 : vector<1x1xf32>
      %cst_95 = arith.constant 9.99999974E-6 : f32
      %164 = vector.broadcast %cst_95 : f32 to vector<1x1xf32>
      %165 = arith.addf %163, %164 : vector<1x1xf32>
      %166 = math.rsqrt %165 : vector<1x1xf32>
      %167 = vector.broadcast %166 : vector<1x1xf32> to vector<1x128xf32>
      %168 = arith.mulf %158, %167 : vector<1x128xf32>
      %169 = arith.mulf %168, %14 : vector<1x128xf32>
      %170 = arith.addf %169, %15 : vector<1x128xf32>
      %171 = arith.truncf %170 : vector<1x128xf32> to vector<1x128xbf16>
      %c0_96 = arith.constant 0 : index
      %c0_97 = arith.constant 0 : index
      %172 = vector.load %arg23[%c0_96, %c0_97] : memref<128x256xbf16, #tpu.memory_space<vmem>>, vector<128x256xbf16>
      %cst_98 = arith.constant dense<0.000000e+00> : vector<1x256xf32>
      %173 = tpu.matmul %171, %172, %cst_98 {dimension_numbers = #tpu.dot_dimension_numbers<[1], [0], [0], [1], [0, 0, 1, 1], [], []>} : vector<1x128xbf16>, vector<128x256xbf16>, vector<1x256xf32> -> vector<1x256xf32>
      %c0_99 = arith.constant 0 : index
      %c0_100 = arith.constant 0 : index
      %174 = vector.load %arg24[%c0_99, %c0_100] : memref<1x256xf32, #tpu.memory_space<vmem>>, vector<1x256xf32>
      %175 = arith.addf %173, %174 : vector<1x256xf32>
      %cst_101 = arith.constant dense<0xFF800000> : vector<1xf32>
      %176 = vector.multi_reduction <maximumf>, %175, %cst_101 [1] : vector<1x256xf32> to vector<1xf32>
      %177 = vector.shape_cast %176 : vector<1xf32> to vector<1x1xf32>
      %178 = vector.broadcast %177 : vector<1x1xf32> to vector<1x256xf32>
      %179 = arith.cmpf oeq, %175, %178 : vector<1x256xf32>
      %cst_102 = arith.constant 2.560000e+02 : f32
      %180 = vector.broadcast %cst_102 : f32 to vector<1x256xf32>
      %181 = arith.select %179, %17, %180 : vector<1x256xi1>, vector<1x256xf32>
      %cst_103 = arith.constant dense<0x7F800000> : vector<1xf32>
      %182 = vector.multi_reduction <minimumf>, %181, %cst_103 [1] : vector<1x256xf32> to vector<1xf32>
      %183 = vector.shape_cast %182 : vector<1xf32> to vector<1x1xf32>
      %184 = arith.fptosi %183 : vector<1x1xf32> to vector<1x1xi32>
      %c0_104 = arith.constant 0 : index
      %185 = arith.index_cast %arg30 : i32 to index
      %c0_105 = arith.constant 0 : index
      %186 = vector.load %arg27[%c0_104, %185, %c0_105] : memref<1x8x1xi32, #tpu.memory_space<vmem>>, vector<1x1x1xi32>
      %187 = vector.shape_cast %186 : vector<1x1x1xi32> to vector<1x1xi32>
      %188 = vector.shape_cast %184 : vector<1x1xi32> to vector<1x1x1xi32>
      tpu.vector_store %arg27[%c0_104, %185, %c0_105], %188 {strides = array<i32>} : memref<1x8x1xi32, #tpu.memory_space<vmem>>, vector<1x1x1xi32>,
      %189 = vector.broadcast %184 : vector<1x1xi32> to vector<1x256xi32>
      %190 = arith.cmpi eq, %16, %189 : vector<1x256xi32>
      %191 = arith.extui %190 : vector<1x256xi1> to vector<1x256xi32>
      %192 = arith.sitofp %191 : vector<1x256xi32> to vector<1x256xf32>
      scf.yield %192 : vector<1x256xf32>
    }
    %c8_i32_27 = arith.constant 8 : i32
    return
  }
  func.func @transform_0(%arg0: i32) -> (i32, i32, i32) {
    %c0_i32 = arith.constant 0 : i32
    %c0_i32_0 = arith.constant 0 : i32
    %c0_i32_1 = arith.constant 0 : i32
    return %arg0, %c0_i32, %c0_i32_0 : i32, i32, i32
  }
  func.func @transform_1(%arg0: i32) -> (i32, i32, i32) {
    %c0_i32 = arith.constant 0 : i32
    %c0_i32_0 = arith.constant 0 : i32
    %c0_i32_1 = arith.constant 0 : i32
    return %arg0, %c0_i32, %c0_i32_0 : i32, i32, i32
  }
  func.func @transform_2(%arg0: i32) -> (i32, i32) {
    %c0_i32 = arith.constant 0 : i32
    %c0_i32_0 = arith.constant 0 : i32
    %c0_i32_1 = arith.constant 0 : i32
    return %c0_i32, %c0_i32_0 : i32, i32
  }
  func.func @transform_3(%arg0: i32) -> (i32, i32) {
    %c0_i32 = arith.constant 0 : i32
    %c0_i32_0 = arith.constant 0 : i32
    %c0_i32_1 = arith.constant 0 : i32
    return %c0_i32, %c0_i32_0 : i32, i32
  }
  func.func @transform_4(%arg0: i32) -> (i32, i32) {
    %c0_i32 = arith.constant 0 : i32
    %c0_i32_0 = arith.constant 0 : i32
    %c0_i32_1 = arith.constant 0 : i32
    return %c0_i32, %c0_i32_0 : i32, i32
  }
  func.func @transform_5(%arg0: i32) -> (i32, i32) {
    %c0_i32 = arith.constant 0 : i32
    %c0_i32_0 = arith.constant 0 : i32
    %c0_i32_1 = arith.constant 0 : i32
    return %c0_i32, %c0_i32_0 : i32, i32
  }
  func.func @transform_6(%arg0: i32) -> (i32, i32) {
    %c0_i32 = arith.constant 0 : i32
    %c0_i32_0 = arith.constant 0 : i32
    %c0_i32_1 = arith.constant 0 : i32
    return %c0_i32, %c0_i32_0 : i32, i32
  }
  func.func @transform_7(%arg0: i32) -> (i32, i32) {
    %c0_i32 = arith.constant 0 : i32
    %c0_i32_0 = arith.constant 0 : i32
    %c0_i32_1 = arith.constant 0 : i32
    return %c0_i32, %c0_i32_0 : i32, i32
  }
  func.func @transform_8(%arg0: i32) -> (i32, i32) {
    %c0_i32 = arith.constant 0 : i32
    %c0_i32_0 = arith.constant 0 : i32
    %c0_i32_1 = arith.constant 0 : i32
    return %c0_i32, %c0_i32_0 : i32, i32
  }
  func.func @transform_9(%arg0: i32) -> (i32, i32) {
    %c0_i32 = arith.constant 0 : i32
    %c0_i32_0 = arith.constant 0 : i32
    %c0_i32_1 = arith.constant 0 : i32
    return %c0_i32, %c0_i32_0 : i32, i32
  }
  func.func @transform_10(%arg0: i32) -> (i32, i32) {
    %c0_i32 = arith.constant 0 : i32
    %c0_i32_0 = arith.constant 0 : i32
    %c0_i32_1 = arith.constant 0 : i32
    return %c0_i32, %c0_i32_0 : i32, i32
  }
  func.func @transform_11(%arg0: i32) -> (i32, i32) {
    %c0_i32 = arith.constant 0 : i32
    %c0_i32_0 = arith.constant 0 : i32
    %c0_i32_1 = arith.constant 0 : i32
    return %c0_i32, %c0_i32_0 : i32, i32
  }
  func.func @transform_12(%arg0: i32) -> (i32, i32) {
    %c0_i32 = arith.constant 0 : i32
    %c0_i32_0 = arith.constant 0 : i32
    %c0_i32_1 = arith.constant 0 : i32
    return %c0_i32, %c0_i32_0 : i32, i32
  }
  func.func @transform_13(%arg0: i32) -> (i32, i32) {
    %c0_i32 = arith.constant 0 : i32
    %c0_i32_0 = arith.constant 0 : i32
    %c0_i32_1 = arith.constant 0 : i32
    return %c0_i32, %c0_i32_0 : i32, i32
  }
  func.func @transform_14(%arg0: i32) -> (i32, i32) {
    %c0_i32 = arith.constant 0 : i32
    %c0_i32_0 = arith.constant 0 : i32
    %c0_i32_1 = arith.constant 0 : i32
    return %c0_i32, %c0_i32_0 : i32, i32
  }
  func.func @transform_15(%arg0: i32) -> (i32, i32) {
    %c0_i32 = arith.constant 0 : i32
    %c0_i32_0 = arith.constant 0 : i32
    %c0_i32_1 = arith.constant 0 : i32
    return %c0_i32, %c0_i32_0 : i32, i32
  }
  func.func @transform_16(%arg0: i32) -> (i32, i32) {
    %c0_i32 = arith.constant 0 : i32
    %c0_i32_0 = arith.constant 0 : i32
    %c0_i32_1 = arith.constant 0 : i32
    return %c0_i32, %c0_i32_0 : i32, i32
  }
  func.func @transform_17(%arg0: i32) -> (i32, i32) {
    %c0_i32 = arith.constant 0 : i32
    %c0_i32_0 = arith.constant 0 : i32
    %c0_i32_1 = arith.constant 0 : i32
    return %c0_i32, %c0_i32_0 : i32, i32
  }
  func.func @transform_18(%arg0: i32) -> (i32, i32) {
    %c0_i32 = arith.constant 0 : i32
    %c0_i32_0 = arith.constant 0 : i32
    %c0_i32_1 = arith.constant 0 : i32
    return %c0_i32, %c0_i32_0 : i32, i32
  }
  func.func @transform_19(%arg0: i32) -> (i32, i32) {
    %c0_i32 = arith.constant 0 : i32
    %c0_i32_0 = arith.constant 0 : i32
    %c0_i32_1 = arith.constant 0 : i32
    return %c0_i32, %c0_i32_0 : i32, i32
  }
  func.func @transform_20(%arg0: i32) -> (i32, i32) {
    %c0_i32 = arith.constant 0 : i32
    %c0_i32_0 = arith.constant 0 : i32
    %c0_i32_1 = arith.constant 0 : i32
    return %c0_i32, %c0_i32_0 : i32, i32
  }
  func.func @transform_21(%arg0: i32) -> (i32, i32) {
    %c0_i32 = arith.constant 0 : i32
    %c0_i32_0 = arith.constant 0 : i32
    %c0_i32_1 = arith.constant 0 : i32
    return %c0_i32, %c0_i32_0 : i32, i32
  }
  func.func @transform_22(%arg0: i32) -> (i32, i32) {
    %c0_i32 = arith.constant 0 : i32
    %c0_i32_0 = arith.constant 0 : i32
    %c0_i32_1 = arith.constant 0 : i32
    return %c0_i32, %c0_i32_0 : i32, i32
  }
  func.func @transform_23(%arg0: i32) -> (i32, i32) {
    %c0_i32 = arith.constant 0 : i32
    %c0_i32_0 = arith.constant 0 : i32
    %c0_i32_1 = arith.constant 0 : i32
    return %c0_i32, %c0_i32_0 : i32, i32
  }
  func.func @transform_24(%arg0: i32) -> (i32, i32) {
    %c0_i32 = arith.constant 0 : i32
    %c0_i32_0 = arith.constant 0 : i32
    %c0_i32_1 = arith.constant 0 : i32
    return %c0_i32, %c0_i32_0 : i32, i32
  }
  func.func @transform_25(%arg0: i32) -> (i32, i32) {
    %c0_i32 = arith.constant 0 : i32
    %c0_i32_0 = arith.constant 0 : i32
    %c0_i32_1 = arith.constant 0 : i32
    return %c0_i32, %c0_i32_0 : i32, i32
  }
  func.func @transform_26(%arg0: i32) -> (i32, i32, i32) {
    %c0_i32 = arith.constant 0 : i32
    %c0_i32_0 = arith.constant 0 : i32
    %c0_i32_1 = arith.constant 0 : i32
    return %arg0, %c0_i32, %c0_i32_0 : i32, i32, i32
  }
}

</mosaic_0001>

<bundles_post_ra>
// kernel: labeldroid_forward.5
= control target key start
LH: loop header
LB: loop body
LE: loop exit
PB: predicated region body
PF: predicated region fallthrough
CT: control target
= control target key end

     0   :  { %s275_s1 = inlined_call_operand.vmem [shape: bf16[128,128], index: 1, kind: input, shape index: {}]   ;;  %s276_s0 = inlined_call_operand.vmem [shape: bf16[32,128], index: 0, kind: input, shape index: {}]   ;;  %s277_s2 = inlined_call_operand.vmem [shape: f32[1,128], index: 2, kind: input, shape index: {}]   ;;  %s278_s3 = inlined_call_operand.vmem [shape: f32[32,128], index: 3, kind: output, shape index: {}]  }
   0x1   :  { %v200_v0 = vld [vmem:[%s275_s1] sm:$0xff]   ;;  %v201_v1 = vld [vmem:[%s275_s1 + $0x8] sm:$0xff]   ;;  %v202_v2 = vld [vmem:[%s275_s1 + $0x10] sm:$0xff]  }
   0x2   :  { %180 = vmatprep.subr.bf16.mxu0 %v200_v0  ;;  %v203_v3 = vld [vmem:[%s275_s1 + $0x18] sm:$0xff]   ;;  %v208_v4 = vld [vmem:[%s276_s0] sm:$0xff]   ;;  %v205_v6 = vld [vmem:[%s275_s1 + $0x28] sm:$0xff]  }
   0x3   :  { %181 = vmatpush3.bf16.msra.mxu0 %v200_v0  ;;  %196 = vmatprep.mubr.bf16.mxu0 %v208_v4  ;;  %v204_v5 = vld [vmem:[%s275_s1 + $0x20] sm:$0xff]   ;;  %v206_v7 = vld [vmem:[%s275_s1 + $0x30] sm:$0xff]   ;;  %v207_v8 = vld [vmem:[%s275_s1 + $0x38] sm:$0xff]  }
   0x4   :  { %182 = vmatprep.subr.bf16.mxu0 %v201_v1  ;;  %v209_v9 = vld [vmem:[%s276_s0 + $0x8] sm:$0xff]   ;;  %v159_v10 = vld [vmem:[%s277_s2] ss:$0 sm:$0xff] }
   0x7   :  { %183 = vmatpush3.bf16.msra.mxu0 %v201_v1 }
   0x8   :  { %184 = vmatprep.subr.bf16.mxu0 %v202_v2 }
   0xb   :  { %185 = vmatpush3.bf16.msra.mxu0 %v202_v2 }
   0xc   :  { %186 = vmatprep.subr.bf16.mxu0 %v203_v3 }
   0xf   :  { %187 = vmatpush3.bf16.msra.mxu0 %v203_v3 }
  0x10   :  { %188 = vmatprep.subr.bf16.mxu0 %v204_v5 }
  0x13   :  { %189 = vmatpush3.bf16.msra.mxu0 %v204_v5 }
  0x14   :  { %190 = vmatprep.subr.bf16.mxu0 %v205_v6 }
  0x17   :  { %191 = vmatpush3.bf16.msra.mxu0 %v205_v6 }
  0x18   :  { %192 = vmatprep.subr.bf16.mxu0 %v206_v7 }
  0x1b   :  { %193 = vmatpush3.bf16.msra.mxu0 %v206_v7 }
  0x1c   :  { %194 = vmatprep.subr.bf16.mxu0 %v207_v8 }
  0x1f   :  { %195 = vmatpush3.bf16.msra.mxu0 %v207_v8 }
  0x22   :  { %197 = vmatmul.mubr.bf16.vlgmr.msra.gmra.mrb[0].mxu0 %v209_v9 }
  0xf5   :  { %v198_v11 = vpop.f32.mrb[0].mxu0 }
  0xf6   :  { %v145_v12 = vadd.f32 %v198_v11, %v159_v10  ;;  %v136_v13 = vpop.f32.mrb[1].mxu0 }
  0xf7   :  { %v137_v14 = vadd.f32 %v159_v10, %v136_v13  ;;  %v199_v15 = vpop.f32.mrb[2].mxu0 }
  0xf8   :  { %153 = vst [vmem:[%s278_s3 + $0x10] sm:$0xff] %v145_v12  ;;  %v148_v16 = vadd.f32 %v199_v15, %v159_v10  ;;  %v139_v17 = vpop.f32.mrb[3].mxu0 }
  0xf9   :  { %151 = vst [vmem:[%s278_s3] sm:$0xff] %v137_v14  ;;  %v140_v18 = vadd.f32 %v159_v10, %v139_v17 }
  0xfa   :  { %154 = vst [vmem:[%s278_s3 + $0x18] sm:$0xff] %v148_v16 }
  0xfb   :  { %152 = vst [vmem:[%s278_s3 + $0x8] sm:$0xff] %v140_v18 }

// kernel: labeldroid_forward.6
= control target key start
LH: loop header
LB: loop body
LE: loop exit
PB: predicated region body
PF: predicated region fallthrough
CT: control target
= control target key end

     0   :  { %v265_v1 = vmov 0   ;;  %v37_v19 = vlaneseq  ;;  %s367_s1 = inlined_call_operand.vmem [shape: bf16[128,256], index: 1, kind: input, shape index: {}]   ;;  %s368_s0 = inlined_call_operand.vmem [shape: bf16[32,128], index: 0, kind: input, shape index: {}]   ;;  %s369_s2 = inlined_call_operand.vmem [shape: f32[1,256], index: 2, kind: input, shape index: {}]   ;;  %s370_s3 = inlined_call_operand.vmem [shape: f32[32,256], index: 3, kind: output, shape index: {}]  }
   0x1   :  { %v239_v0 = vld [vmem:[%s367_s1 + $0x4] ss:$8 sps:$4 sm:$0xff]   ;;  %171 = vmatprep.mubr.bf16.mxu0 %v265_v1  ;;  %181 = vmatprep.mubr.bf16.mxu1 %v265_v1  ;;  %v241_v2 = vld [vmem:[%s367_s1] ss:$8 sps:$4 sm:$0xff]   ;;  %v242_v3 = vld [vmem:[%s367_s1 + $0x14] ss:$8 sps:$4 sm:$0xff]  }
   0x2   :  { %139 = vmatprep.subr.bf16.mxu0 %v239_v0  ;;  %222 = vmatprep.subr.bf16.mxu1 %v239_v0  ;;  %v244_v4 = vld [vmem:[%s367_s1 + $0x10] ss:$8 sps:$4 sm:$0xff]   ;;  %v245_v5 = vld [vmem:[%s367_s1 + $0x24] ss:$8 sps:$4 sm:$0xff]   ;;  %v247_v6 = vld [vmem:[%s367_s1 + $0x20] ss:$8 sps:$4 sm:$0xff]  }
   0x3   :  { %140 = vmatpush1.bf16.msra.mxu0 %v241_v2  ;;  %230 = vmatpush1.bf16.msra.mxu1 %v241_v2  ;;  %v248_v7 = vld [vmem:[%s367_s1 + $0x34] ss:$8 sps:$4 sm:$0xff]   ;;  %v250_v8 = vld [vmem:[%s367_s1 + $0x30] ss:$8 sps:$4 sm:$0xff]   ;;  %v251_v9 = vld [vmem:[%s367_s1 + $0x44] ss:$8 sps:$4 sm:$0xff]  }
   0x4   :  { %141 = vmatprep.subr.bf16.mxu0 %v242_v3  ;;  %223 = vmatprep.subr.bf16.mxu1 %v242_v3  ;;  %v253_v10 = vld [vmem:[%s367_s1 + $0x40] ss:$8 sps:$4 sm:$0xff]   ;;  %v254_v11 = vld [vmem:[%s367_s1 + $0x54] ss:$8 sps:$4 sm:$0xff]   ;;  %v256_v12 = vld [vmem:[%s367_s1 + $0x50] ss:$8 sps:$4 sm:$0xff]  }
   0x5   :  { %v257_v13 = vld [vmem:[%s367_s1 + $0x64] ss:$8 sps:$4 sm:$0xff]   ;;  %v259_v14 = vld [vmem:[%s367_s1 + $0x60] ss:$8 sps:$4 sm:$0xff]   ;;  %v260_v15 = vld [vmem:[%s367_s1 + $0x74] ss:$8 sps:$4 sm:$0xff]  }
   0x6   :  { %v262_v16 = vld [vmem:[%s367_s1 + $0x70] ss:$8 sps:$4 sm:$0xff]   ;;  %v263_v17 = vld [vmem:[%s368_s0] sm:$0xff]   ;;  %v264_v18 = vld [vmem:[%s368_s0 + $0x8] sm:$0xff]   ;;  %v38_v20 = vshrl.u32 %v37_v19, 7 }
   0x7   :  { %142 = vmatpush1.bf16.msra.mxu0 %v244_v4  ;;  %231 = vmatpush1.bf16.msra.mxu1 %v244_v4  ;;  %v35_v22 = vld [vmem:[%s369_s2] sm:$0x3] }
   0x8   :  { %143 = vmatprep.subr.bf16.mxu0 %v245_v5  ;;  %224 = vmatprep.subr.bf16.mxu1 %v245_v5  ;;  %v39_v21 = vsub.s32 0, %v38_v20  ;;  %v43_v23 = vsub.s32 1, %v38_v20 }
   0xa   :  { %v40_v24 = vrot.slane %v35_v22, %v39_v21  ;;  %v44_v25 = vrot.slane %v35_v22, %v43_v23 }
   0xb   :  { %144 = vmatpush1.bf16.msra.mxu0 %v247_v6  ;;  %232 = vmatpush1.bf16.msra.mxu1 %v247_v6 }
   0xc   :  { %145 = vmatprep.subr.bf16.mxu0 %v248_v7  ;;  %225 = vmatprep.subr.bf16.mxu1 %v248_v7 }
   0xf   :  { %146 = vmatpush1.bf16.msra.mxu0 %v250_v8  ;;  %233 = vmatpush1.bf16.msra.mxu1 %v250_v8 }
  0x10   :  { %147 = vmatprep.subr.bf16.mxu0 %v251_v9  ;;  %226 = vmatprep.subr.bf16.mxu1 %v251_v9 }
  0x13   :  { %148 = vmatpush1.bf16.msra.mxu0 %v253_v10  ;;  %234 = vmatpush1.bf16.msra.mxu1 %v253_v10 }
  0x14   :  { %149 = vmatprep.subr.bf16.mxu0 %v254_v11  ;;  %227 = vmatprep.subr.bf16.mxu1 %v254_v11 }
  0x17   :  { %150 = vmatpush1.bf16.msra.mxu0 %v256_v12  ;;  %235 = vmatpush1.bf16.msra.mxu1 %v256_v12 }
  0x18   :  { %151 = vmatprep.subr.bf16.mxu0 %v257_v13  ;;  %228 = vmatprep.subr.bf16.mxu1 %v257_v13 }
  0x1b   :  { %152 = vmatpush1.bf16.msra.mxu0 %v259_v14  ;;  %236 = vmatpush1.bf16.msra.mxu1 %v259_v14 }
  0x1c   :  { %153 = vmatprep.subr.bf16.mxu0 %v260_v15  ;;  %229 = vmatprep.subr.bf16.mxu1 %v260_v15 }
  0x1f   :  { %154 = vmatpush1.bf16.msra.mxu0 %v262_v16  ;;  %237 = vmatpush1.bf16.msra.mxu1 %v262_v16 }
  0x22   :  { %172 = vmatmul.mubr.bf16.vlgmr.msra.gmra.mrb[0].mxu0 %v263_v17  ;;  %182 = vmatmul.mubr.bf16.vlgmr.msra.gmra.mrb[0].mxu1 %v264_v18 }
  0xf5   :  { %v173_v26 = vpop.f32.mrb[0].mxu0  ;;  %v183_v27 = vpop.f32.mrb[0].mxu1 }
  0xf6   :  { %v174_v28 = vadd.f32 %v173_v26, %v40_v24  ;;  %v184_v29 = vadd.f32 %v183_v27, %v40_v24  ;;  %v175_v30 = vpop.f32.mrb[1].mxu0  ;;  %v185_v31 = vpop.f32.mrb[1].mxu1 }
  0xf7   :  { %v176_v32 = vadd.f32 %v175_v30, %v44_v25  ;;  %v186_v33 = vadd.f32 %v185_v31, %v44_v25  ;;  %v177_v34 = vpop.f32.mrb[2].mxu0  ;;  %v187_v35 = vpop.f32.mrb[2].mxu1 }
  0xf8   :  { %192 = vst [vmem:[%s370_s3] sm:$0xff] %v174_v28  ;;  %196 = vst [vmem:[%s370_s3 + $0x20] sm:$0xff] %v184_v29  ;;  %v178_v36 = vadd.f32 %v177_v34, %v40_v24  ;;  %v188_v37 = vadd.f32 %v187_v35, %v40_v24  ;;  %v179_v38 = vpop.f32.mrb[3].mxu0  ;;  %v189_v39 = vpop.f32.mrb[3].mxu1 }
  0xf9   :  { %193 = vst [vmem:[%s370_s3 + $0x8] sm:$0xff] %v176_v32  ;;  %197 = vst [vmem:[%s370_s3 + $0x28] sm:$0xff] %v186_v33  ;;  %v180_v40 = vadd.f32 %v179_v38, %v44_v25  ;;  %v190_v41 = vadd.f32 %v189_v39, %v44_v25 }
  0xfa   :  { %194 = vst [vmem:[%s370_s3 + $0x10] sm:$0xff] %v178_v36  ;;  %198 = vst [vmem:[%s370_s3 + $0x30] sm:$0xff] %v188_v37 }
  0xfb   :  { %195 = vst [vmem:[%s370_s3 + $0x18] sm:$0xff] %v180_v40  ;;  %199 = vst [vmem:[%s370_s3 + $0x38] sm:$0xff] %v190_v41 }

// kernel: labeldroid_forward.4
= control target key start
LH: loop header
LB: loop body
LE: loop exit
PB: predicated region body
PF: predicated region fallthrough
CT: control target
= control target key end

     0   :  { %s3555_s12 = smov 0   ;;  %s4474_s0 = inlined_call_operand.vmem [shape: f32[2,18,18,4], index: 0, kind: input, shape index: {}]   ;;  %s4475_s1 = inlined_call_operand.vmem [shape: bf16[9,4,128], index: 1, kind: input, shape index: {}]   ;;  %s4476_s2 = inlined_call_operand.vmem [shape: f32[1,128], index: 2, kind: input, shape index: {}]   ;;  %s4477_s3 = inlined_call_operand.vmem [shape: f32[2,256,128], index: 3, kind: output, shape index: {}]  }
   0x1 LB: > { %s2627_s13 = sadd.s32 4294967295, %s3533_s12   ;;  %p2631_p0 = scmp.ge.s32.totalorder %s3533_s12, 1  ;;  %s3533_s12 = sphi %s3555_s12, %s13_s12  }
   0x2   : > { %p137_p1 = scmp.lt.s32.totalorder %s3533_s12, 3 }
   0x4   : > { %p138_p2 = pnand %p2631_p0, %p137_p1 }
   0x6   : > { %141 = sbr.rel (%p138_p2) target bundleno = 531 (0x213), region = 32 }
   0xd   : > { %v2635_v0 = vld [vmem:[%s4475_s1 + $0x2] sm:$0x3]  ;;  %vm471_vm0 = vcmask 1041408   ;;  %v3569_v1 = vld [vmem:[%s4475_s1 + $0x8] sm:$0x3]  ;;  %p161_p3 = scmp.lt.s32.totalorder %s2627_s13, 1 }
   0xe   : > { %4503 = vst [vmem:[#allocation2_spill] sm:$0xff] %v3569_v1  ;;  %3508 = vmatprep.subr.msk.bf16.mxu1 %vm471_vm0, %v2635_v0  ;;  %3512 = vmatprep.subr.msk.bf16.mxu0 %vm471_vm0, %v3569_v1  ;;  %v473_v2 = vsel %vm471_vm0, %v2635_v0, 0  ;;  %v3577_v3 = vsel %vm471_vm0, %v3569_v1, 0  ;;  %v242_v4 = vld [vmem:[%s4475_s1] sm:$0x3]  ;;  %vm291_vm1 = vcmask 1046528  }
   0xf   : > { %4504 = vst [vmem:[#allocation3_spill] sm:$0xff] %v3577_v3  ;;  %2945 = vmatpush3.bf16.msra.mxu1 %v473_v2  ;;  %3081 = vmatpush3.bf16.msra.mxu0 %v3577_v3  ;;  %s4538_s13 = smov (!%p161_p3, %s2627_s13), 1  ;;  %v2719_v5 = vld [vmem:[%s4475_s1 + $0xa] sm:$0x3]  ;;  %vm422_vm2 = vcmask 31744   ;;  %v685_v25 = vsel %vm471_vm0, %v242_v4, 0 }
  0x10   : > { %3509 = vmatprep.subr.msk.bf16.mxu1 %vm471_vm0, %v242_v4  ;;  %3514 = vmatprep.subr.msk.bf16.mxu0 %vm471_vm0, %v2719_v5  ;;  %s3518_s22 = smul.u32 432, %s4538_s13  ;;  %v3666_v39 = vld [vmem:[%s4475_s1 + $0x4] sm:$0x3]  ;;  %v1651_v41 = vsel %vm471_vm0, %v2719_v5, 0  ;;  %v3695_v57 = vld [vmem:[%s4475_s1 + $0xc] sm:$0x3] }
  0x11   : > { %vm848_vm3 = vcmask 1045504   ;;  %s2790_s11 = sshll.u32 %s4538_s13, 8 }
  0x12   : > { %s3594_s25 = scalar_lea.vmem %s4474_s0, %s3518_s22  ;;  %s4402_s16 = scalar_lea.vmem %s4477_s3, %s2790_s11 }
  0x13   : > { %v3597_v6 = vld [vmem:[%s3594_s25] sm:$0xff]  ;;  %v3600_v7 = vld [vmem:[%s3594_s25 + $0x8] sm:$0xff]  ;;  %v3603_v8 = vld [vmem:[%s3594_s25 + $0x10] sm:$0x3] }
  0x14   : > { %v292_v9 = vrot.slane %v3597_v6, 1  ;;  %v293_v10 = vrot.slane %v3600_v7, 1  ;;  %v295_v11 = vrot.slane %v3603_v8, 1  ;;  %v3609_v12 = vld [vmem:[%s3594_s25 + $0x18] sm:$0xff]  ;;  %v3612_v13 = vld [vmem:[%s3594_s25 + $0x20] sm:$0xff]  ;;  %v3623_v17 = vld [vmem:[%s3594_s25 + $0x30] sm:$0xff] }
  0x15   : > { %v3615_v14 = vld [vmem:[%s3594_s25 + $0x28] sm:$0x3]  ;;  %v3619_v15 = vpack.c.bf16 %v3612_v13, %v3609_v12  ;;  %v297_v16 = vrot.slane %v3609_v12, 1  ;;  %v298_v20 = vrot.slane %v3612_v13, 1  ;;  %v3630_v22 = vld [vmem:[%s3594_s25 + $0x38] sm:$0xff]  ;;  %v3640_v27 = vld [vmem:[%s3594_s25 + $0x50] sm:$0xff] }
  0x16   : > { %v294_v18 = vsel %vm291_vm1, %v292_v9, %v293_v10  ;;  %v296_v19 = vsel %vm291_vm1, %v293_v10, %v295_v11  ;;  %v300_v21 = vrot.slane %v3615_v14, 1  ;;  %v3633_v23 = vld [vmem:[%s3594_s25 + $0x40] sm:$0x3]  ;;  %v3637_v26 = vld [vmem:[%s3594_s25 + $0x48] sm:$0xff]  ;;  %v302_v30 = vrot.slane %v3623_v17, 1  ;;  %v3661_v38 = vld [vmem:[%s3594_s25 + $0x78] sm:$0xff] }
  0x17   : > { %v404_v24 = vpack.c.bf16 %v296_v19, %v294_v18  ;;  %v299_v28 = vsel %vm291_vm1, %v297_v16, %v298_v20  ;;  %v303_v31 = vrot.slane %v3630_v22, 1  ;;  %v3647_v32 = vld [vmem:[%s3594_s25 + $0x58] sm:$0x3]  ;;  %v3650_v33 = vld [vmem:[%s3594_s25 + $0x60] sm:$0xff]  ;;  %v3653_v34 = vld [vmem:[%s3594_s25 + $0x68] sm:$0xff]  ;;  %v305_v36 = vrot.slane %v3633_v23, 1 }
  0x18   : > { %v301_v29 = vsel %vm291_vm1, %v298_v20, %v300_v21  ;;  %v3658_v37 = vld [vmem:[%s3594_s25 + $0x70] sm:$0x3]  ;;  %v307_v42 = vrot.slane %v3637_v26, 1  ;;  %v308_v43 = vrot.slane %v3640_v27, 1  ;;  %v3673_v44 = vld [vmem:[%s3594_s25 + $0x80] sm:$0xff]  ;;  %v310_v47 = vrot.slane %v3647_v32, 1 }
  0x19   : > { %2946 = vmatprep.mubr.msk.bf16.mxu1 %vm422_vm2, %v404_v24  ;;  %v405_v35 = vpack.c.bf16 %v301_v29, %v299_v28  ;;  %v304_v40 = vsel %vm291_vm1, %v302_v30, %v303_v31  ;;  %v3676_v45 = vld [vmem:[%s3594_s25 + $0x88] sm:$0x3]  ;;  %v306_v46 = vsel %vm291_vm1, %v303_v31, %v305_v36  ;;  %v312_v48 = vrot.slane %v3650_v33, 1  ;;  %v3712_v63 = vld [vmem:[%s3594_s25 + $0x90] sm:$0xff]  ;;  %v3715_v0 = vld [vmem:[%s3594_s25 + $0x98] sm:$0xff] }
  0x1a   : > { %v313_v49 = vrot.slane %v3653_v34, 1  ;;  %v3684_v50 = vpack.c.bf16 %v306_v46, %v304_v40  ;;  %v309_v51 = vsel %vm291_vm1, %v307_v42, %v308_v43  ;;  %v315_v52 = vrot.slane %v3658_v37, 1  ;;  %v3718_v2 = vld [vmem:[%s3594_s25 + $0xa0] sm:$0x3]  ;;  %v3723_v4 = vld [vmem:[%s3594_s25 + $0xa8] sm:$0xff]  ;;  %v3726_v5 = vld [vmem:[%s3594_s25 + $0xb0] sm:$0xff] }
  0x1b   : > { %3082 = vmatprep.mubr.msk.bf16.mxu0 %vm422_vm2, %v405_v35  ;;  %2947 = vmatmul.mubr.msk.bf16.vlgmr.msra.gmra.mrb[0].mxu1 %vm422_vm2, %v405_v35  ;;  %v317_v53 = vrot.slane %v3661_v38, 1  ;;  %v311_v54 = vsel %vm291_vm1, %v308_v43, %v310_v47  ;;  %v318_v55 = vrot.slane %v3673_v44, 1  ;;  %v320_v56 = vrot.slane %v3676_v45, 1  ;;  %v3729_v9 = vld [vmem:[%s3594_s25 + $0xb8] sm:$0x3]  ;;  %v3752_v29 = vld [vmem:[%s3594_s25 + $0xc0] sm:$0xff] }
  0x1c   : > { %2979 = vmatpush3.bf16.msra.mxu1 %v685_v25  ;;  %4505 = vst [vmem:[#allocation4_spill] sm:$0xff] %v3684_v50  ;;  %3083 = vmatmul.mubr.msk.bf16.vlgmr.msra.gmra.mrb[0].mxu0 %vm422_vm2, %v3684_v50  ;;  %v3703_v58 = vpack.c.bf16 %v311_v54, %v309_v51  ;;  %v314_v59 = vsel %vm291_vm1, %v312_v48, %v313_v49  ;;  %v322_v16 = vrot.slane %v3712_v63, 1  ;;  %v323_v18 = vrot.slane %v3715_v0, 1  ;;  %v3755_v30 = vld [vmem:[%s3594_s25 + $0xc8] sm:$0xff]  ;;  %v3760_v36 = vld [vmem:[%s3594_s25 + $0xd0] sm:$0x3] }
  0x1d   : > { %3510 = vmatprep.subr.msk.bf16.mxu1 %vm471_vm0, %v3666_v39  ;;  %2950 = vmatprep.mubr.msk.bf16.mxu1 %vm422_vm2, %v3684_v50  ;;  %v316_v60 = vsel %vm291_vm1, %v313_v49, %v315_v52  ;;  %v319_v61 = vsel %vm291_vm1, %v317_v53, %v318_v55  ;;  %v321_v62 = vsel %vm291_vm1, %v318_v55, %v320_v56  ;;  %v325_v19 = vrot.slane %v3718_v2, 1  ;;  %v3783_v49 = vld [vmem:[%s3594_s25 + $0xe8] sm:$0x3]  ;;  %v3788_v53 = vld [vmem:[%s3594_s25 + $0xf0] sm:$0xff]  ;;  %v3791_v54 = vld [vmem:[%s3594_s25 + $0xf8] sm:$0xff] }
  0x1e   : > { %4506 = vst [vmem:[#allocation5_spill] sm:$0xff] %v3703_v58  ;;  %3115 = vmatpush3.bf16.msra.mxu0 %v1651_v41  ;;  %3086 = vmatprep.mubr.msk.bf16.mxu0 %vm422_vm2, %v3703_v58  ;;  %v3731_v10 = vpack.c.bf16 %v316_v60, %v314_v59  ;;  %v3735_v11 = vpack.c.bf16 %v321_v62, %v319_v61  ;;  %v327_v20 = vrot.slane %v3723_v4, 1  ;;  %v328_v21 = vrot.slane %v3726_v5, 1  ;;  %v3800_v61 = vld [vmem:[%s3594_s25 + $0x100] sm:$0x3] }
  0x1f   : > { %3515 = vmatprep.subr.msk.bf16.mxu0 %vm471_vm0, %v3695_v57  ;;  %v330_v24 = vrot.slane %v3729_v9, 1  ;;  %v324_v25 = vsel %vm291_vm1, %v322_v16, %v323_v18  ;;  %v326_v28 = vsel %vm291_vm1, %v323_v18, %v325_v19  ;;  %v854_v40 = vrot.slane %v3609_v12, 2 }
  0x20   : > { %4507 = vst [vmem:[#allocation6_spill] sm:$0xff] %v3731_v10  ;;  %4508 = vst [vmem:[#allocation7_spill] sm:$0xff] %v3735_v11  ;;  %v329_v31 = vsel %vm291_vm1, %v327_v20, %v328_v21  ;;  %v855_v41 = vrot.slane %v3612_v13, 2  ;;  %v857_v42 = vrot.slane %v3615_v14, 2  ;;  %v3765_v43 = vpack.c.bf16 %v326_v28, %v324_v25  ;;  %v3777_v13 = vld [vmem:[%s3594_s25 + $0xd8] sm:$0xff]  ;;  %v3780_v14 = vld [vmem:[%s3594_s25 + $0xe0] sm:$0xff] }
  0x21   : > { %v331_v35 = vsel %vm291_vm1, %v328_v21, %v330_v24  ;;  %v332_v46 = vrot.slane %v3752_v29, 1  ;;  %v333_v47 = vrot.slane %v3755_v30, 1  ;;  %v335_v12 = vrot.slane %v3760_v36, 1  ;;  %v3816_v28 = vld [vmem:[%s3594_s25 + $0x108] sm:$0xff] }
  0x22   : > { %4509 = vst [vmem:[#allocation8_spill] sm:$0xff] %v3765_v43  ;;  %v3771_v48 = vpack.c.bf16 %v331_v35, %v329_v31  ;;  %v859_v51 = vrot.slane %v3623_v17, 2  ;;  %v860_v52 = vrot.slane %v3630_v22, 2  ;;  %v862_v55 = vrot.slane %v3633_v23, 2  ;;  %v3819_v31 = vld [vmem:[%s3594_s25 + $0x110] sm:$0xff] }
  0x23   : > { %2951 = vmatmul.mubr.msk.bf16.gmra.mrb[4].mxu1 %vm422_vm2, %v3703_v58  ;;  %v334_v56 = vsel %vm291_vm1, %v332_v46, %v333_v47  ;;  %v856_v59 = vsel %vm848_vm3, %v854_v40, %v855_v41  ;;  %v858_v60 = vsel %vm848_vm3, %v855_v41, %v857_v42  ;;  %v336_v62 = vsel %vm291_vm1, %v333_v47, %v335_v12  ;;  %v3822_v35 = vld [vmem:[%s3594_s25 + $0x118] sm:$0x3]  ;;  %v3831_v47 = vld [vmem:[%s3594_s25 + $0x120] sm:$0xff] }
  0x24   : > { %2954 = vmatprep.mubr.msk.bf16.mxu1 %vm422_vm2, %v3731_v10  ;;  %3087 = vmatmul.mubr.msk.bf16.gmra.mrb[4].mxu0 %vm422_vm2, %v3731_v10  ;;  %4510 = vst [vmem:[#allocation9_spill] sm:$0xff] %v3771_v48  ;;  %v337_v23 = vrot.slane %v3777_v13, 1  ;;  %v338_v16 = vrot.slane %v3780_v14, 1  ;;  %v340_v18 = vrot.slane %v3783_v49, 1  ;;  %v342_v19 = vrot.slane %v3788_v53, 1  ;;  %v3871_v10 = vld [vmem:[%s3594_s25 + $0x138] sm:$0xff] }
  0x25   : > { %3090 = vmatprep.mubr.msk.bf16.mxu0 %vm422_vm2, %v3735_v11  ;;  %v343_v20 = vrot.slane %v3791_v54, 1  ;;  %v345_v21 = vrot.slane %v3800_v61, 1  ;;  %v3811_v24 = vpack.c.bf16 %v336_v62, %v334_v56  ;;  %v3813_v25 = vpack.c.bf16 %v858_v60, %v856_v59  ;;  %v3840_v62 = vld [vmem:[%s3594_s25 + $0x128] sm:$0xff] }
  0x26   : > { %v339_v40 = vsel %vm291_vm1, %v337_v23, %v338_v16  ;;  %v341_v41 = vsel %vm291_vm1, %v338_v16, %v340_v18  ;;  %v861_v42 = vsel %vm848_vm3, %v859_v51, %v860_v52  ;;  %v863_v46 = vsel %vm848_vm3, %v860_v52, %v862_v55  ;;  %v3843_v23 = vld [vmem:[%s3594_s25 + $0x130] sm:$0x3] }
  0x27   : > { %4511 = vst [vmem:[#allocation10_spill] sm:$0xff] %v3811_v24  ;;  %v344_v12 = vsel %vm291_vm1, %v342_v19, %v343_v20  ;;  %v864_v56 = vrot.slane %v3637_v26, 2  ;;  %v865_v59 = vrot.slane %v3640_v27, 2  ;;  %v867_v60 = vrot.slane %v3647_v32, 2 }
  0x28   : > { %v346_v51 = vsel %vm291_vm1, %v343_v20, %v345_v21  ;;  %v347_v52 = vrot.slane %v3816_v28, 1  ;;  %v348_v55 = vrot.slane %v3819_v31, 1  ;;  %v350_v16 = vrot.slane %v3822_v35, 1 }
  0x29   : > { %v1853_v32 = vsel %vm471_vm0, %v3695_v57, 0  ;;  %v3855_v18 = vpack.c.bf16 %v341_v41, %v339_v40  ;;  %v352_v19 = vrot.slane %v3831_v47, 1  ;;  %v353_v20 = vrot.slane %v3840_v62, 1 }
  0x2a   : > { %v355_v21 = vrot.slane %v3843_v23, 1  ;;  %v3860_v3 = vpack.c.bf16 %v863_v46, %v861_v42  ;;  %v868_v57 = vsel %vm848_vm3, %v865_v59, %v867_v60  ;;  %v351_v40 = vsel %vm291_vm1, %v348_v55, %v350_v16  ;;  %v3874_v42 = vld [vmem:[%s3594_s25 + $0x140] sm:$0xff] }
  0x2b   : > { %2955 = vmatmul.mubr.msk.bf16.gmra.mrb[8].mxu1 %vm422_vm2, %v3735_v11  ;;  %4512 = vst [vmem:[#allocation11_spill] sm:$0xff] %v3855_v18  ;;  %v869_v41 = vrot.slane %v3650_v33, 2  ;;  %v870_v11 = vrot.slane %v3653_v34, 2  ;;  %v872_v46 = vrot.slane %v3658_v37, 2  ;;  %v3884_v60 = vpack.c.bf16 %v3630_v22, %v3623_v17  ;;  %v3898_v17 = vld [vmem:[%s3594_s25 + $0x150] sm:$0xff]  ;;  %v3901_v22 = vld [vmem:[%s3594_s25 + $0x158] sm:$0xff] }
  0x2c   : > { %2958 = vmatprep.mubr.msk.bf16.mxu1 %vm422_vm2, %v3765_v43  ;;  %3091 = vmatmul.mubr.msk.bf16.gmra.mrb[8].mxu0 %vm422_vm2, %v3765_v43  ;;  %4513 = vst [vmem:[#allocation12_spill] sm:$0xff] %v3860_v3  ;;  %v349_v43 = vsel %vm291_vm1, %v347_v52, %v348_v55  ;;  %v354_v52 = vsel %vm291_vm1, %v352_v19, %v353_v20  ;;  %v877_v37 = vrot.slane %v3676_v45, 2  ;;  %v357_v16 = vrot.slane %v3871_v10, 1 }
  0x2d   : > { %3094 = vmatprep.mubr.msk.bf16.mxu0 %vm422_vm2, %v3771_v48  ;;  %v356_v55 = vsel %vm291_vm1, %v353_v20, %v355_v21  ;;  %v358_v58 = vrot.slane %v3874_v42, 1  ;;  %v871_v19 = vsel %vm848_vm3, %v869_v41, %v870_v11  ;;  %v3912_v45 = vpack.c.bf16 %v3640_v27, %v3637_v26  ;;  %v3917_v21 = vld [vmem:[%s4475_s1 + $0xe] sm:$0x3] }
  0x2e   : > { %v3927_v41 = vpack.c.bf16 %v3653_v34, %v3650_v33  ;;  %v362_v27 = vrot.slane %v3898_v17, 1  ;;  %v880_v33 = vrot.slane %v3715_v0, 2  ;;  %v3940_v34 = vpack.c.bf16 %v3673_v44, %v3661_v38 }
  0x33   : > { %2959 = vmatmul.mubr.msk.bf16.gmra.mrb[12].mxu1 %vm422_vm2, %v3771_v48  ;;  %v3862_v48 = vpack.c.bf16 %v346_v51, %v344_v12  ;;  %v874_v12 = vrot.slane %v3661_v38, 2  ;;  %v3954_v38 = vld [vmem:[%s3594_s25 + $0x168] sm:$0xff] }
  0x34   : > { %2962 = vmatprep.mubr.msk.bf16.mxu1 %vm422_vm2, %v3811_v24  ;;  %3095 = vmatmul.mubr.msk.bf16.gmra.mrb[12].mxu0 %vm422_vm2, %v3811_v24  ;;  %v866_v24 = vsel %vm848_vm3, %v864_v56, %v865_v59  ;;  %v875_v56 = vrot.slane %v3673_v44, 2  ;;  %v3880_v59 = vld [vmem:[%s3594_s25 + $0x148] sm:$0x3]  ;;  %v3958_v44 = vpack.c.bf16 %v3715_v0, %v3712_v63  ;;  %v852_v0 = vrot.slane %v3603_v8, 2 }
  0x35   : > { %3116 = vmatprep.mubr.msk.bf16.mxu0 %vm422_vm2, %v3813_v25  ;;  %4514 = vst [vmem:[#allocation13_spill] sm:$0xff] %v3862_v48  ;;  %v3888_v51 = vpack.c.bf16 %v868_v57, %v866_v24  ;;  %v3906_v24 = vpack.c.bf16 %v351_v40, %v349_v43  ;;  %v360_v20 = vrot.slane %v3880_v59, 1  ;;  %v873_v57 = vsel %vm848_vm3, %v870_v11, %v872_v46 }
  0x36   : > { %v3922_v43 = vpack.c.bf16 %v356_v55, %v354_v52  ;;  %v876_v40 = vsel %vm848_vm3, %v874_v12, %v875_v56  ;;  %v878_v26 = vsel %vm848_vm3, %v875_v56, %v877_v37  ;;  %v359_v46 = vsel %vm291_vm1, %v357_v16, %v358_v58 }
  0x37   : > { %4515 = vst [vmem:[#allocation14_spill] sm:$0xff] %v3888_v51  ;;  %4516 = vst [vmem:[#allocation15_spill] sm:$0xff] %v3906_v24  ;;  %v879_v12 = vrot.slane %v3712_v63, 2  ;;  %v882_v56 = vrot.slane %v3718_v2, 2  ;;  %v884_v52 = vrot.slane %v3723_v4, 2  ;;  %v885_v55 = vrot.slane %v3726_v5, 2 }
  0x38   : > { %4517 = vst [vmem:[#allocation16_spill] sm:$0xff] %v3922_v43  ;;  %v849_v37 = vrot.slane %v3597_v6, 2  ;;  %v3949_v16 = vpack.c.bf16 %v873_v57, %v871_v19  ;;  %v3951_v50 = vpack.c.bf16 %v878_v26, %v876_v40  ;;  %v3969_v19 = vld [vmem:[%s3594_s25 + $0x178] sm:$0x3]  ;;  %v3973_v57 = vpack.c.bf16 %v3726_v5, %v3723_v4 }
  0x39   : > { %v850_v63 = vrot.slane %v3600_v7, 2  ;;  %v886_v26 = vsel %vm848_vm3, %v884_v52, %v885_v55  ;;  %v3987_v4 = vpack.c.bf16 %v3755_v30, %v3752_v29  ;;  %v4016_v52 = vpack.c.bf16 %v3874_v42, %v3871_v10 }
  0x3a   : > { %4518 = vst [vmem:[#allocation17_spill] sm:$0xff] %v3949_v16  ;;  %4519 = vst [vmem:[#allocation18_spill] sm:$0xff] %v3951_v50 }
  0x3b   : > { %2963 = vmatmul.mubr.msk.bf16.gmra.mrb[16].mxu1 %vm422_vm2, %v3855_v18  ;;  %v3904_v18 = vld [vmem:[%s3594_s25 + $0x160] sm:$0x3] }
  0x3c   : > { %2966 = vmatprep.mubr.msk.bf16.mxu1 %vm422_vm2, %v3862_v48  ;;  %3117 = vmatmul.mubr.msk.bf16.vlgmr.msra.gmra.mrb[0].mxu0 %vm422_vm2, %v3860_v3  ;;  %v363_v48 = vrot.slane %v3901_v22, 1  ;;  %v365_v11 = vrot.slane %v3904_v18, 1  ;;  %v892_v3 = vrot.slane %v3760_v36, 2 }
  0x3d   : > { %3149 = vmatpush3.bf16.msra.mxu0 %v1853_v32  ;;  %3120 = vmatprep.mubr.msk.bf16.mxu0 %vm422_vm2, %v3888_v51  ;;  %v361_v32 = vsel %vm291_vm1, %v358_v58, %v360_v20  ;;  %v887_v20 = vrot.slane %v3729_v9, 2  ;;  %v3966_v51 = vld [vmem:[%s3594_s25 + $0x170] sm:$0xff]  ;;  %v883_v9 = vsel %vm848_vm3, %v880_v33, %v882_v56  ;;  %v4012_v56 = vpack.c.bf16 %v3840_v62, %v3831_v47 }
  0x3e   : > { %3516 = vmatprep.subr.msk.bf16.mxu0 %vm471_vm0, %v3917_v21  ;;  %v364_v58 = vsel %vm291_vm1, %v362_v27, %v363_v48  ;;  %v366_v2 = vsel %vm291_vm1, %v363_v48, %v365_v11  ;;  %v3979_v40 = vpack.c.bf16 %v361_v32, %v359_v46  ;;  %v881_v48 = vsel %vm848_vm3, %v879_v12, %v880_v33 }
  0x3f   : > { %v367_v27 = vrot.slane %v3954_v38, 1  ;;  %v3991_v8 = vpack.c.bf16 %v366_v2, %v364_v58  ;;  %v368_v5 = vrot.slane %v3966_v51, 1  ;;  %v370_v11 = vrot.slane %v3969_v19, 1 }
  0x40   : > { %v3997_v46 = vpack.c.bf16 %v3780_v14, %v3777_v13  ;;  %v888_v12 = vsel %vm848_vm3, %v885_v55, %v887_v20  ;;  %v4004_v33 = vpack.c.bf16 %v3791_v54, %v3788_v53  ;;  %v4008_v32 = vpack.c.bf16 %v3819_v31, %v3816_v28 }
  0x41   : > { %v4020_v58 = vpack.c.bf16 %v3901_v22, %v3898_v17  ;;  %v4024_v55 = vpack.c.bf16 %v3966_v51, %v3954_v38  ;;  %v4027_v2 = vsel %vm848_vm3, %v849_v37, %v850_v63  ;;  %v4030_v20 = vsel %vm848_vm3, %v850_v63, %v852_v0 }
  0x42   : > { %v369_v1 = vsel %vm291_vm1, %v367_v27, %v368_v5  ;;  %v890_v37 = vrot.slane %v3755_v30, 2  ;;  %v371_v63 = vsel %vm291_vm1, %v368_v5, %v370_v11  ;;  %v895_v0 = vrot.slane %v3780_v14, 2 }
  0x43   : > { %2967 = vmatmul.mubr.msk.bf16.gmra.mrb[20].mxu1 %vm422_vm2, %v3906_v24  ;;  %v889_v24 = vrot.slane %v3752_v29, 2  ;;  %v894_v29 = vrot.slane %v3777_v13, 2  ;;  %v4054_v30 = vpack.c.bf16 %v371_v63, %v369_v1  ;;  %v899_v1 = vrot.slane %v3788_v53, 2 }
  0x44   : > { %2970 = vmatprep.mubr.msk.bf16.mxu1 %vm422_vm2, %v3922_v43  ;;  %3121 = vmatmul.mubr.msk.bf16.gmra.mrb[4].mxu0 %vm422_vm2, %v3949_v16  ;;  %v4032_v43 = vpack.c.bf16 %v883_v9, %v881_v48  ;;  %v4039_v16 = vpack.c.bf16 %v888_v12, %v886_v26  ;;  %v897_v48 = vrot.slane %v3783_v49, 2  ;;  %v893_v9 = vsel %vm848_vm3, %v890_v37, %v892_v3 }
  0x45   : > { %3124 = vmatprep.mubr.msk.bf16.mxu0 %vm422_vm2, %v3951_v50  ;;  %v961_v50 = vpack.c.bf16 %v4030_v20, %v4027_v2  ;;  %v891_v36 = vsel %vm848_vm3, %v889_v24, %v890_v37  ;;  %v226_v26 = vpack.c.bf16 %v3600_v7, %v3597_v6  ;;  %v896_v13 = vsel %vm848_vm3, %v894_v29, %v895_v0  ;;  %v4521_v2 = vld [vmem:[#allocation2_spill] sm:$0xff]  ;;  %v4523_v20 = vld [vmem:[#allocation17_spill] sm:$0xff] }
  0x46   : > { %v898_v14 = vsel %vm848_vm3, %v895_v0, %v897_v48  ;;  %v4062_v49 = vpack.c.bf16 %v893_v9, %v891_v36  ;;  %v900_v24 = vrot.slane %v3791_v54, 2  ;;  %v902_v3 = vrot.slane %v3800_v61, 2 }
  0x47   : > { %v4066_v27 = vpack.c.bf16 %v898_v14, %v896_v13  ;;  %v904_v6 = vrot.slane %v3816_v28, 2  ;;  %v905_v7 = vrot.slane %v3819_v31, 2  ;;  %v907_v5 = vrot.slane %v3822_v35, 2  ;;  %v4090_v35 = vld [vmem:[%s4475_s1 + $0x6] sm:$0x3] }
  0x48   : > { %v901_v53 = vsel %vm848_vm3, %v899_v1, %v900_v24  ;;  %v903_v54 = vsel %vm848_vm3, %v900_v24, %v902_v3  ;;  %v1028_v28 = vsel %vm471_vm0, %v3666_v39, 0  ;;  %v909_v37 = vrot.slane %v3831_v47, 2  ;;  %v220_v3 = vld [vmem:[%s3594_s25 + $0x180] sm:$0xff] }
  0x49   : > { %v906_v61 = vsel %vm848_vm3, %v904_v6, %v905_v7  ;;  %v908_v11 = vsel %vm848_vm3, %v905_v7, %v907_v5  ;;  %v4085_v31 = vpack.c.bf16 %v903_v54, %v901_v53  ;;  %v910_v63 = vrot.slane %v3840_v62, 2  ;;  %v222_v6 = vld [vmem:[%s3594_s25 + $0x190] sm:$0x3] }
  0x4a   : > { %v4094_v12 = vpack.c.bf16 %v908_v11, %v906_v61  ;;  %v912_v29 = vrot.slane %v3843_v23, 2  ;;  %v914_v39 = vrot.slane %v3871_v10, 2  ;;  %v915_v0 = vrot.slane %v3874_v42, 2 }
  0x4b   : > { %2971 = vmatmul.mubr.msk.bf16.gmra.mrb[24].mxu1 %vm422_vm2, %v3979_v40  ;;  %v917_v48 = vrot.slane %v3880_v59, 2  ;;  %v911_v47 = vsel %vm848_vm3, %v909_v37, %v910_v63  ;;  %v919_v36 = vrot.slane %v3898_v17, 2  ;;  %v920_v9 = vrot.slane %v3901_v22, 2 }
  0x4c   : > { %2974 = vmatprep.mubr.msk.bf16.mxu1 %vm422_vm2, %v3991_v8  ;;  %3125 = vmatmul.mubr.msk.bf16.gmra.mrb[8].mxu0 %vm422_vm2, %v4032_v43  ;;  %v913_v62 = vsel %vm848_vm3, %v910_v63, %v912_v29  ;;  %v916_v23 = vsel %vm848_vm3, %v914_v39, %v915_v0  ;;  %v924_v13 = vrot.slane %v3954_v38, 2  ;;  %v925_v14 = vrot.slane %v3966_v51, 2  ;;  %v221_v38 = vld [vmem:[%s3594_s25 + $0x188] sm:$0xff] }
  0x4d   : > { %3128 = vmatprep.mubr.msk.bf16.mxu0 %vm422_vm2, %v4039_v16  ;;  %v918_v10 = vsel %vm848_vm3, %v915_v0, %v917_v48  ;;  %v4114_v42 = vpack.c.bf16 %v913_v62, %v911_v47  ;;  %v927_v1 = vrot.slane %v3969_v19, 2  ;;  %v921_v17 = vsel %vm848_vm3, %v919_v36, %v920_v9  ;;  %v2770_v47 = vld [vmem:[%s4475_s1 + $0x10] sm:$0x3] }
  0x4e   : > { %v4118_v59 = vpack.c.bf16 %v918_v10, %v916_v23  ;;  %v1637_v7 = vrot.slane %v220_v3, 2  ;;  %v1638_v5 = vrot.slane %v221_v38, 2  ;;  %v1640_v53 = vrot.slane %v222_v6, 2  ;;  %v4520_v62 = vld [vmem:[#allocation12_spill] sm:$0xff]  ;;  %v223_v23 = vld [vmem:[%s3594_s25 + $0x198] sm:$0xff]  ;;  %v224_v10 = vld [vmem:[%s3594_s25 + $0x1a0] sm:$0xff] }
  0x4f   : > { %v928_v24 = vsel %vm848_vm3, %v925_v14, %v927_v1  ;;  %v1428_v54 = vrot.slane %v220_v3, 1  ;;  %v1429_v61 = vrot.slane %v221_v38, 1  ;;  %v1431_v11 = vrot.slane %v222_v6, 1  ;;  %v4528_v6 = vld [vmem:[#allocation7_spill] sm:$0xff] }
  0x50   : > { %v1641_v37 = vsel %vm848_vm3, %v1638_v5, %v1640_v53  ;;  %v2065_v48 = vsel %vm471_vm0, %v3917_v21, 0  ;;  %v1230_v21 = vsel %vm471_vm0, %v4090_v35, 0  ;;  %v2260_v36 = vrot.slane %v223_v23, 2  ;;  %v4531_v53 = vld [vmem:[#allocation10_spill] sm:$0xff] }
  0x51   : > { %v1430_v63 = vsel %vm291_vm1, %v1428_v54, %v1429_v61  ;;  %v1432_v29 = vsel %vm291_vm1, %v1429_v61, %v1431_v11  ;;  %v4532_v54 = vld [vmem:[#allocation11_spill] sm:$0xff]  ;;  %v4533_v61 = vld [vmem:[#allocation13_spill] sm:$0xff] }
  0x52   : > { %v4155_v39 = vpack.c.bf16 %v1432_v29, %v1430_v63  ;;  %v4534_v11 = vld [vmem:[#allocation3_spill] sm:$0xff] }
  0x53   : > { %2975 = vmatmul.mubr.msk.bf16.gmra.mrb[28].mxu1 %vm422_vm2, %v4054_v30 }
  0x54   : > { %2980 = vmatprep.mubr.msk.bf16.mxu1 %vm422_vm2, %v226_v26  ;;  %3129 = vmatmul.mubr.msk.bf16.gmra.mrb[12].mxu0 %vm422_vm2, %v4062_v49  ;;  %v922_v26 = vrot.slane %v3904_v18, 2  ;;  %v926_v18 = vsel %vm848_vm3, %v924_v13, %v925_v14  ;;  %v1846_v14 = vpack.c.bf16 %v224_v10, %v223_v23 }
  0x55   : > { %3132 = vmatprep.mubr.msk.bf16.mxu0 %vm422_vm2, %v4066_v27  ;;  %v4143_v19 = vpack.c.bf16 %v928_v24, %v926_v18  ;;  %v4525_v18 = vld [vmem:[#allocation4_spill] sm:$0xff]  ;;  %v2274_v24 = vsel %vm471_vm0, %v2770_v47, 0 }
  0x56   : > { %v923_v22 = vsel %vm848_vm3, %v920_v9, %v922_v26  ;;  %v2261_v9 = vrot.slane %v224_v10, 2  ;;  %v225_v26 = vld [vmem:[%s3594_s25 + $0x1a8] sm:$0x3] }
  0x57   : > { %v4139_v51 = vpack.c.bf16 %v923_v22, %v921_v17  ;;  %v2263_v13 = vrot.slane %v225_v26, 2 }
  0x58   : > { %v4243_v1 = vsel %vm848_vm3, %v2260_v36, %v2261_v9 }
  0x59   : > { %v4246_v17 = vsel %vm848_vm3, %v2261_v9, %v2263_v13 }
  0x5a   : > { %v2267_v22 = vpack.c.bf16 %v4246_v17, %v4243_v1 }
  0x5b   : > { %2981 = vmatmul.mubr.msk.bf16.vlgmr.msra.gmra.mrb[0].mxu1 %vm422_vm2, %v3619_v15 }
  0x5c   : > { %3013 = vmatpush3.bf16.msra.mxu1 %v1028_v28  ;;  %2984 = vmatprep.mubr.msk.bf16.mxu1 %vm422_vm2, %v3884_v60  ;;  %v1639_v28 = vsel %vm848_vm3, %v1637_v7, %v1638_v5  ;;  %v4529_v7 = vld [vmem:[#allocation8_spill] sm:$0xff]  ;;  %v4530_v5 = vld [vmem:[#allocation9_spill] sm:$0xff] }
  0x5d   : > { %3511 = vmatprep.subr.msk.bf16.mxu1 %vm471_vm0, %v4090_v35  ;;  %3133 = vmatmul.mubr.msk.bf16.gmra.mrb[16].mxu0 %vm422_vm2, %v4085_v31  ;;  %v4157_v0 = vpack.c.bf16 %v1641_v37, %v1639_v28  ;;  %v4229_v35 = vpack.c.bf16 %v221_v38, %v220_v3  ;;  %v4526_v3 = vld [vmem:[#allocation5_spill] sm:$0xff]  ;;  %v4527_v38 = vld [vmem:[#allocation6_spill] sm:$0xff]  ;;  %v4535_v28 = vld [vmem:[#allocation15_spill] sm:$0xff] }
  0x5e   : > { %3136 = vmatprep.mubr.msk.bf16.mxu0 %vm422_vm2, %v4094_v12  ;;  %v4536_v37 = vld [vmem:[#allocation16_spill] sm:$0xff] }
  0x63   : > { %2985 = vmatmul.mubr.msk.bf16.gmra.mrb[4].mxu1 %vm422_vm2, %v3912_v45 }
  0x64   : > { %2988 = vmatprep.mubr.msk.bf16.mxu1 %vm422_vm2, %v3927_v41 }
  0x65   : > { %3137 = vmatmul.mubr.msk.bf16.gmra.mrb[20].mxu0 %vm422_vm2, %v4114_v42 }
  0x66   : > { %3140 = vmatprep.mubr.msk.bf16.mxu0 %vm422_vm2, %v4118_v59 }
  0x6b   : > { %2989 = vmatmul.mubr.msk.bf16.gmra.mrb[8].mxu1 %vm422_vm2, %v3940_v34 }
  0x6c   : > { %2992 = vmatprep.mubr.msk.bf16.mxu1 %vm422_vm2, %v3958_v44 }
  0x6d   : > { %3141 = vmatmul.mubr.msk.bf16.gmra.mrb[24].mxu0 %vm422_vm2, %v4139_v51 }
  0x6e   : > { %3144 = vmatprep.mubr.msk.bf16.mxu0 %vm422_vm2, %v4143_v19 }
  0x73   : > { %2993 = vmatmul.mubr.msk.bf16.gmra.mrb[12].mxu1 %vm422_vm2, %v3973_v57 }
  0x74   : > { %2996 = vmatprep.mubr.msk.bf16.mxu1 %vm422_vm2, %v3987_v4 }
  0x75   : > { %3145 = vmatmul.mubr.msk.bf16.gmra.mrb[28].mxu0 %vm422_vm2, %v4157_v0 }
  0x76   : > { %3150 = vmatprep.mubr.msk.bf16.mxu0 %vm422_vm2, %v3884_v60 }
  0x7b   : > { %2997 = vmatmul.mubr.msk.bf16.gmra.mrb[16].mxu1 %vm422_vm2, %v3997_v46 }
  0x7c   : > { %3000 = vmatprep.mubr.msk.bf16.mxu1 %vm422_vm2, %v4004_v33 }
  0x7d   : > { %3151 = vmatmul.mubr.msk.bf16.vlgmr.msra.gmra.mrb[0].mxu0 %vm422_vm2, %v3912_v45 }
  0x7e   : > { %3183 = vmatpush3.bf16.msra.mxu0 %v2065_v48  ;;  %3154 = vmatprep.mubr.msk.bf16.mxu0 %vm422_vm2, %v3927_v41 }
  0x7f   : > { %3517 = vmatprep.subr.msk.bf16.mxu0 %vm471_vm0, %v2770_v47 }
  0x83   : > { %3001 = vmatmul.mubr.msk.bf16.gmra.mrb[20].mxu1 %vm422_vm2, %v4008_v32 }
  0x84   : > { %3004 = vmatprep.mubr.msk.bf16.mxu1 %vm422_vm2, %v4012_v56 }
  0x85   : > { %3155 = vmatmul.mubr.msk.bf16.gmra.mrb[4].mxu0 %vm422_vm2, %v3940_v34 }
  0x86   : > { %3158 = vmatprep.mubr.msk.bf16.mxu0 %vm422_vm2, %v3958_v44 }
  0x8b   : > { %3005 = vmatmul.mubr.msk.bf16.gmra.mrb[24].mxu1 %vm422_vm2, %v4016_v52 }
  0x8c   : > { %3008 = vmatprep.mubr.msk.bf16.mxu1 %vm422_vm2, %v4020_v58 }
  0x8d   : > { %3159 = vmatmul.mubr.msk.bf16.gmra.mrb[8].mxu0 %vm422_vm2, %v3973_v57 }
  0x8e   : > { %3162 = vmatprep.mubr.msk.bf16.mxu0 %vm422_vm2, %v3987_v4 }
  0x93   : > { %3009 = vmatmul.mubr.msk.bf16.gmra.mrb[28].mxu1 %vm422_vm2, %v4024_v55 }
  0x94   : > { %3014 = vmatprep.mubr.msk.bf16.mxu1 %vm422_vm2, %v961_v50  ;;  %v4522_v50 = vld [vmem:[#allocation14_spill] sm:$0xff] }
  0x95   : > { %3163 = vmatmul.mubr.msk.bf16.gmra.mrb[12].mxu0 %vm422_vm2, %v3997_v46 }
  0x96   : > { %3166 = vmatprep.mubr.msk.bf16.mxu0 %vm422_vm2, %v4004_v33 }
  0x9b   : > { %3015 = vmatmul.mubr.msk.bf16.vlgmr.msra.gmra.mrb[0].mxu1 %vm422_vm2, %v3813_v25  ;;  %v4524_v25 = vld [vmem:[#allocation18_spill] sm:$0xff] }
  0x9c   : > { %3047 = vmatpush3.bf16.msra.mxu1 %v1230_v21  ;;  %3018 = vmatprep.mubr.msk.bf16.mxu1 %vm422_vm2, %v4520_v62 }
  0x9d   : > { %3513 = vmatprep.subr.msk.bf16.mxu1 %vm471_vm0, %v4521_v2  ;;  %3167 = vmatmul.mubr.msk.bf16.gmra.mrb[16].mxu0 %vm422_vm2, %v4008_v32 }
  0x9e   : > { %3170 = vmatprep.mubr.msk.bf16.mxu0 %vm422_vm2, %v4012_v56 }
  0xa3   : > { %3019 = vmatmul.mubr.msk.bf16.gmra.mrb[4].mxu1 %vm422_vm2, %v4522_v50 }
  0xa4   : > { %3022 = vmatprep.mubr.msk.bf16.mxu1 %vm422_vm2, %v4523_v20 }
  0xa5   : > { %3171 = vmatmul.mubr.msk.bf16.gmra.mrb[20].mxu0 %vm422_vm2, %v4016_v52 }
  0xa6   : > { %3174 = vmatprep.mubr.msk.bf16.mxu0 %vm422_vm2, %v4020_v58 }
  0xab   : > { %3023 = vmatmul.mubr.msk.bf16.gmra.mrb[8].mxu1 %vm422_vm2, %v4524_v25 }
  0xac   : > { %3026 = vmatprep.mubr.msk.bf16.mxu1 %vm422_vm2, %v4032_v43 }
  0xad   : > { %3175 = vmatmul.mubr.msk.bf16.gmra.mrb[24].mxu0 %vm422_vm2, %v4024_v55 }
  0xae   : > { %3178 = vmatprep.mubr.msk.bf16.mxu0 %vm422_vm2, %v4229_v35 }
  0xb3   : > { %3027 = vmatmul.mubr.msk.bf16.gmra.mrb[12].mxu1 %vm422_vm2, %v4039_v16 }
  0xb4   : > { %3030 = vmatprep.mubr.msk.bf16.mxu1 %vm422_vm2, %v4062_v49 }
  0xb5   : > { %3179 = vmatmul.mubr.msk.bf16.gmra.mrb[28].mxu0 %vm422_vm2, %v1846_v14 }
  0xb6   : > { %3184 = vmatprep.mubr.msk.bf16.mxu0 %vm422_vm2, %v4525_v18 }
  0xbb   : > { %3031 = vmatmul.mubr.msk.bf16.gmra.mrb[16].mxu1 %vm422_vm2, %v4066_v27 }
  0xbc   : > { %3034 = vmatprep.mubr.msk.bf16.mxu1 %vm422_vm2, %v4085_v31 }
  0xbd   : > { %3185 = vmatmul.mubr.msk.bf16.vlgmr.msra.gmra.mrb[0].mxu0 %vm422_vm2, %v4526_v3 }
  0xbe   : > { %3217 = vmatpush3.bf16.msra.mxu0 %v2274_v24  ;;  %3188 = vmatprep.mubr.msk.bf16.mxu0 %vm422_vm2, %v4527_v38 }
  0xc3   : > { %3035 = vmatmul.mubr.msk.bf16.gmra.mrb[20].mxu1 %vm422_vm2, %v4094_v12 }
  0xc4   : > { %3038 = vmatprep.mubr.msk.bf16.mxu1 %vm422_vm2, %v4114_v42 }
  0xc5   : > { %3189 = vmatmul.mubr.msk.bf16.gmra.mrb[4].mxu0 %vm422_vm2, %v4528_v6 }
  0xc6   : > { %3192 = vmatprep.mubr.msk.bf16.mxu0 %vm422_vm2, %v4529_v7 }
  0xcb   : > { %3039 = vmatmul.mubr.msk.bf16.gmra.mrb[24].mxu1 %vm422_vm2, %v4118_v59 }
  0xcc   : > { %3042 = vmatprep.mubr.msk.bf16.mxu1 %vm422_vm2, %v4139_v51 }
  0xcd   : > { %3193 = vmatmul.mubr.msk.bf16.gmra.mrb[8].mxu0 %vm422_vm2, %v4530_v5 }
  0xce   : > { %3196 = vmatprep.mubr.msk.bf16.mxu0 %vm422_vm2, %v4531_v53 }
  0xd3   : > { %3043 = vmatmul.mubr.msk.bf16.gmra.mrb[28].mxu1 %vm422_vm2, %v4143_v19 }
  0xd4   : > { %3048 = vmatprep.mubr.msk.bf16.mxu1 %vm422_vm2, %v3619_v15  ;;  %v2051_v15 = vrot.slane %v223_v23, 1 }
  0xd5   : > { %3197 = vmatmul.mubr.msk.bf16.gmra.mrb[12].mxu0 %vm422_vm2, %v4532_v54 }
  0xd6   : > { %3200 = vmatprep.mubr.msk.bf16.mxu0 %vm422_vm2, %v4533_v61 }
  0xdb   : > { %3049 = vmatmul.mubr.msk.bf16.vlgmr.msra.gmra.mrb[0].mxu1 %vm422_vm2, %v3884_v60  ;;  %v2052_v60 = vrot.slane %v224_v10, 1 }
  0xdc   : > { %3251 = vmatpush3.bf16.msra.mxu1 %v4534_v11  ;;  %3052 = vmatprep.mubr.msk.bf16.mxu1 %vm422_vm2, %v3912_v45  ;;  %v2054_v45 = vrot.slane %v225_v26, 1 }
  0xdd   : > { %3201 = vmatmul.mubr.msk.bf16.gmra.mrb[16].mxu0 %vm422_vm2, %v4535_v28 }
  0xde   : > { %3204 = vmatprep.mubr.msk.bf16.mxu0 %vm422_vm2, %v4536_v37 }
  0xe3   : > { %3053 = vmatmul.mubr.msk.bf16.gmra.mrb[4].mxu1 %vm422_vm2, %v3927_v41  ;;  %v2053_v41 = vsel %vm291_vm1, %v2051_v15, %v2052_v60 }
  0xe4   : > { %3056 = vmatprep.mubr.msk.bf16.mxu1 %vm422_vm2, %v3940_v34  ;;  %v2055_v34 = vsel %vm291_vm1, %v2052_v60, %v2054_v45 }
  0xe5   : > { %3205 = vmatmul.mubr.msk.bf16.gmra.mrb[20].mxu0 %vm422_vm2, %v3979_v40  ;;  %v2058_v63 = vpack.c.bf16 %v2055_v34, %v2053_v41 }
  0xe6   : > { %3208 = vmatprep.mubr.msk.bf16.mxu0 %vm422_vm2, %v3991_v8 }
  0xeb   : > { %3057 = vmatmul.mubr.msk.bf16.gmra.mrb[8].mxu1 %vm422_vm2, %v3958_v44 }
  0xec   : > { %3060 = vmatprep.mubr.msk.bf16.mxu1 %vm422_vm2, %v3973_v57 }
  0xed   : > { %3209 = vmatmul.mubr.msk.bf16.gmra.mrb[24].mxu0 %vm422_vm2, %v4054_v30 }
  0xee   : > { %3212 = vmatprep.mubr.msk.bf16.mxu0 %vm422_vm2, %v4155_v39 }
  0xf3   : > { %3061 = vmatmul.mubr.msk.bf16.gmra.mrb[12].mxu1 %vm422_vm2, %v3987_v4 }
  0xf4   : > { %3064 = vmatprep.mubr.msk.bf16.mxu1 %vm422_vm2, %v3997_v46 }
  0xf5   : > { %3213 = vmatmul.mubr.msk.bf16.gmra.mrb[28].mxu0 %vm422_vm2, %v2058_v63 }
  0xf6   : > { %3218 = vmatprep.mubr.msk.bf16.mxu0 %vm422_vm2, %v4520_v62 }
  0xfb   : > { %3065 = vmatmul.mubr.msk.bf16.gmra.mrb[16].mxu1 %vm422_vm2, %v4004_v33 }
  0xfc   : > { %3068 = vmatprep.mubr.msk.bf16.mxu1 %vm422_vm2, %v4008_v32 }
  0xfd   : > { %3219 = vmatmul.mubr.msk.bf16.vlgmr.msra.gmra.mrb[0].mxu0 %vm422_vm2, %v4522_v50 }
  0xfe   : > { %3222 = vmatprep.mubr.msk.bf16.mxu0 %vm422_vm2, %v4523_v20 }
 0x103   : > { %3069 = vmatmul.mubr.msk.bf16.gmra.mrb[20].mxu1 %vm422_vm2, %v4012_v56 }
 0x104   : > { %3072 = vmatprep.mubr.msk.bf16.mxu1 %vm422_vm2, %v4016_v52 }
 0x105   : > { %3223 = vmatmul.mubr.msk.bf16.gmra.mrb[4].mxu0 %vm422_vm2, %v4524_v25 }
 0x106   : > { %3226 = vmatprep.mubr.msk.bf16.mxu0 %vm422_vm2, %v4032_v43 }
 0x10b   : > { %3073 = vmatmul.mubr.msk.bf16.gmra.mrb[24].mxu1 %vm422_vm2, %v4020_v58 }
 0x10c   : > { %3076 = vmatprep.mubr.msk.bf16.mxu1 %vm422_vm2, %v4024_v55 }
 0x10d   : > { %3227 = vmatmul.mubr.msk.bf16.gmra.mrb[8].mxu0 %vm422_vm2, %v4039_v16 }
 0x10e   : > { %3230 = vmatprep.mubr.msk.bf16.mxu0 %vm422_vm2, %v4062_v49 }
 0x113   : > { %3077 = vmatmul.mubr.msk.bf16.gmra.mrb[28].mxu1 %vm422_vm2, %v4229_v35 }
 0x114   : > { %3098 = vmatprep.mubr.msk.bf16.mxu1 %vm422_vm2, %v4532_v54 }
 0x115   : > { %3231 = vmatmul.mubr.msk.bf16.gmra.mrb[12].mxu0 %vm422_vm2, %v4066_v27 }
 0x116   : > { %3234 = vmatprep.mubr.msk.bf16.mxu0 %vm422_vm2, %v4085_v31  ;;  %v4395_v31 = vld [vmem:[%s4476_s2] ss:$0 sm:$0xff] }
 0x11b   : > { %3099 = vmatmul.mubr.msk.bf16.vlgmr.msra.gmra.mrb[16].mxu1 %vm422_vm2, %v4533_v61 }
 0x11c   : > { %3102 = vmatprep.mubr.msk.bf16.mxu1 %vm422_vm2, %v4535_v28 }
 0x11d   : > { %3235 = vmatmul.mubr.msk.bf16.gmra.mrb[16].mxu0 %vm422_vm2, %v4094_v12 }
 0x11e   : > { %3238 = vmatprep.mubr.msk.bf16.mxu0 %vm422_vm2, %v4114_v42 }
 0x123   : > { %3103 = vmatmul.mubr.msk.bf16.gmra.mrb[20].mxu1 %vm422_vm2, %v4536_v37 }
 0x124   : > { %3106 = vmatprep.mubr.msk.bf16.mxu1 %vm422_vm2, %v3979_v40 }
 0x125   : > { %3239 = vmatmul.mubr.msk.bf16.gmra.mrb[20].mxu0 %vm422_vm2, %v4118_v59 }
 0x126   : > { %3242 = vmatprep.mubr.msk.bf16.mxu0 %vm422_vm2, %v4139_v51 }
 0x12b   : > { %3107 = vmatmul.mubr.msk.bf16.gmra.mrb[24].mxu1 %vm422_vm2, %v3991_v8 }
 0x12c   : > { %3110 = vmatprep.mubr.msk.bf16.mxu1 %vm422_vm2, %v4054_v30 }
 0x12d   : > { %3243 = vmatmul.mubr.msk.bf16.gmra.mrb[24].mxu0 %vm422_vm2, %v4143_v19 }
 0x12e   : > { %3246 = vmatprep.mubr.msk.bf16.mxu0 %vm422_vm2, %v4157_v0 }
 0x133   : > { %3111 = vmatmul.mubr.msk.bf16.gmra.mrb[28].mxu1 %vm422_vm2, %v4155_v39 }
 0x135   : > { %3247 = vmatmul.mubr.msk.bf16.gmra.mrb[28].mxu0 %vm422_vm2, %v2267_v22 }
 0x1ae   : > { %v3050_v43 = vpop.f32.mrb[0].mxu1 }
 0x1af   : > { %v1266_v16 = vpop.f32.mrb[1].mxu1 }
 0x1b0   : > { %v3051_v44 = vpop.f32.mrb[2].mxu1 }
 0x1b1   : > { %v1269_v57 = vpop.f32.mrb[3].mxu1 }
 0x1b6   : > { %v3054_v40 = vpop.f32.mrb[4].mxu1 }
 0x1b7   : > { %v1282_v4 = vpop.f32.mrb[5].mxu1 }
 0x1b8   : > { %v3055_v8 = vpop.f32.mrb[6].mxu1 }
 0x1b9   : > { %v1285_v46 = vpop.f32.mrb[7].mxu1 }
 0x1be   : > { %v3058_v33 = vpop.f32.mrb[8].mxu1 }
 0x1bf   : > { %v1298_v32 = vpop.f32.mrb[9].mxu1 }
 0x1c0   : > { %v3059_v56 = vpop.f32.mrb[10].mxu1 }
 0x1c1   : > { %v1301_v52 = vpop.f32.mrb[11].mxu1 }
 0x1c6   : > { %v4384_v58 = vpop.f32.mrb[12].mxu1 }
 0x1c7   : > { %v4386_v55 = vpop.f32.mrb[13].mxu1 }
 0x1c8   : > { %v4388_v30 = vpop.f32.mrb[14].mxu1 }
 0x1c9   : > { %v4390_v49 = vpop.f32.mrb[15].mxu1 }
 0x1d0   : > { %v3220_v27 = vpop.f32.mrb[0].mxu0 }
 0x1d1   : > { %v3252_v12 = vadd.f32 %v3220_v27, %v3050_v43  ;;  %v2310_v42 = vpop.f32.mrb[1].mxu0 }
 0x1d2   : > { %v3253_v59 = vadd.f32 %v2310_v42, %v1266_v16  ;;  %v3221_v51 = vpop.f32.mrb[2].mxu0 }
 0x1d3   : > { %v2478_v19 = vadd.f32 %v3252_v12, %v4395_v31  ;;  %v3254_v29 = vadd.f32 %v3221_v51, %v3051_v44  ;;  %v2313_v39 = vpop.f32.mrb[3].mxu0 }
 0x1d4   : > { %v2476_v0 = vadd.f32 %v3253_v59, %v4395_v31  ;;  %v3255_v48 = vadd.f32 %v2313_v39, %v1269_v57 }
 0x1d5   : > { %v2510_v47 = vmax.f32 %v2478_v19, 0.0  ;;  %v2479_v21 = vadd.f32 %v3254_v29, %v4395_v31 }
 0x1d6   : > { %v2508_v62 = vmax.f32 %v2476_v0, 0.0  ;;  %v2477_v2 = vadd.f32 %v3255_v48, %v4395_v31 }
 0x1d7   : > { %2542 = vst [vmem:[%s4402_s16 + $0x10] sm:$0xff] %v2510_v47  ;;  %v2511_v50 = vmax.f32 %v2479_v21, 0.0 }
 0x1d8   : > { %2540 = vst [vmem:[%s4402_s16] sm:$0xff] %v2508_v62  ;;  %v2509_v20 = vmax.f32 %v2477_v2, 0.0  ;;  %v3224_v25 = vpop.f32.mrb[4].mxu0 }
 0x1d9   : > { %2543 = vst [vmem:[%s4402_s16 + $0x18] sm:$0xff] %v2511_v50  ;;  %v3256_v35 = vadd.f32 %v3224_v25, %v3054_v40  ;;  %v2326_v23 = vpop.f32.mrb[5].mxu0 }
 0x1da   : > { %2541 = vst [vmem:[%s4402_s16 + $0x8] sm:$0xff] %v2509_v20  ;;  %v3257_v10 = vadd.f32 %v2326_v23, %v1282_v4  ;;  %v3225_v36 = vpop.f32.mrb[6].mxu0 }
 0x1db   : > { %v2482_v9 = vadd.f32 %v3256_v35, %v4395_v31  ;;  %v3258_v26 = vadd.f32 %v3225_v36, %v3055_v8  ;;  %v2329_v13 = vpop.f32.mrb[7].mxu0 }
 0x1dc   : > { %v2480_v14 = vadd.f32 %v3257_v10, %v4395_v31  ;;  %v3259_v1 = vadd.f32 %v2329_v13, %v1285_v46 }
 0x1dd   : > { %v2514_v17 = vmax.f32 %v2482_v9, 0.0  ;;  %v2483_v22 = vadd.f32 %v3258_v26, %v4395_v31 }
 0x1de   : > { %v2512_v18 = vmax.f32 %v2480_v14, 0.0  ;;  %v2481_v24 = vadd.f32 %v3259_v1, %v4395_v31 }
 0x1df   : > { %2546 = vst [vmem:[%s4402_s16 + $0x30] sm:$0xff] %v2514_v17  ;;  %v2515_v3 = vmax.f32 %v2483_v22, 0.0 }
 0x1e0   : > { %2544 = vst [vmem:[%s4402_s16 + $0x20] sm:$0xff] %v2512_v18  ;;  %v2513_v38 = vmax.f32 %v2481_v24, 0.0  ;;  %v3228_v6 = vpop.f32.mrb[8].mxu0 }
 0x1e1   : > { %2547 = vst [vmem:[%s4402_s16 + $0x38] sm:$0xff] %v2515_v3  ;;  %v3260_v7 = vadd.f32 %v3228_v6, %v3058_v33  ;;  %v2342_v5 = vpop.f32.mrb[9].mxu0 }
 0x1e2   : > { %2545 = vst [vmem:[%s4402_s16 + $0x28] sm:$0xff] %v2513_v38  ;;  %v3261_v53 = vadd.f32 %v2342_v5, %v1298_v32  ;;  %v3229_v54 = vpop.f32.mrb[10].mxu0 }
 0x1e3   : > { %v2486_v61 = vadd.f32 %v3260_v7, %v4395_v31  ;;  %v3262_v11 = vadd.f32 %v3229_v54, %v3059_v56  ;;  %v2345_v28 = vpop.f32.mrb[11].mxu0 }
 0x1e4   : > { %v2484_v37 = vadd.f32 %v3261_v53, %v4395_v31  ;;  %v3263_v15 = vadd.f32 %v2345_v28, %v1301_v52 }
 0x1e5   : > { %v2518_v60 = vmax.f32 %v2486_v61, 0.0  ;;  %v2487_v45 = vadd.f32 %v3262_v11, %v4395_v31 }
 0x1e6   : > { %v2516_v41 = vmax.f32 %v2484_v37, 0.0  ;;  %v2485_v34 = vadd.f32 %v3263_v15, %v4395_v31 }
 0x1e7   : > { %2550 = vst [vmem:[%s4402_s16 + $0x50] sm:$0xff] %v2518_v60  ;;  %v2519_v63 = vmax.f32 %v2487_v45, 0.0 }
 0x1e8   : > { %2548 = vst [vmem:[%s4402_s16 + $0x40] sm:$0xff] %v2516_v41  ;;  %v2517_v43 = vmax.f32 %v2485_v34, 0.0  ;;  %v3232_v16 = vpop.f32.mrb[12].mxu0 }
 0x1e9   : > { %2551 = vst [vmem:[%s4402_s16 + $0x58] sm:$0xff] %v2519_v63  ;;  %v3264_v44 = vadd.f32 %v3232_v16, %v4384_v58  ;;  %v2358_v57 = vpop.f32.mrb[13].mxu0 }
 0x1ea   : > { %2549 = vst [vmem:[%s4402_s16 + $0x48] sm:$0xff] %v2517_v43  ;;  %v3265_v40 = vadd.f32 %v2358_v57, %v4386_v55  ;;  %v3233_v4 = vpop.f32.mrb[14].mxu0 }
 0x1eb   : > { %v2490_v8 = vadd.f32 %v3264_v44, %v4395_v31  ;;  %v3266_v46 = vadd.f32 %v3233_v4, %v4388_v30  ;;  %v2361_v33 = vpop.f32.mrb[15].mxu0 }
 0x1ec   : > { %v2488_v32 = vadd.f32 %v3265_v40, %v4395_v31  ;;  %v3267_v56 = vadd.f32 %v2361_v33, %v4390_v49 }
 0x1ed   : > { %v2522_v52 = vmax.f32 %v2490_v8, 0.0  ;;  %v2491_v58 = vadd.f32 %v3266_v46, %v4395_v31 }
 0x1ee   : > { %v3100_v27 = vpop.f32.mrb[16].mxu1  ;;  %v2520_v12 = vmax.f32 %v2488_v32, 0.0  ;;  %v2489_v55 = vadd.f32 %v3267_v56, %v4395_v31 }
 0x1ef   : > { %v1542_v42 = vpop.f32.mrb[17].mxu1  ;;  %2554 = vst [vmem:[%s4402_s16 + $0x70] sm:$0xff] %v2522_v52  ;;  %v2523_v59 = vmax.f32 %v2491_v58, 0.0 }
 0x1f0   : > { %v3101_v51 = vpop.f32.mrb[18].mxu1  ;;  %2552 = vst [vmem:[%s4402_s16 + $0x60] sm:$0xff] %v2520_v12  ;;  %v2521_v30 = vmax.f32 %v2489_v55, 0.0  ;;  %v3236_v19 = vpop.f32.mrb[16].mxu0 }
 0x1f1   : > { %v1545_v29 = vpop.f32.mrb[19].mxu1  ;;  %2555 = vst [vmem:[%s4402_s16 + $0x78] sm:$0xff] %v2523_v59  ;;  %v3268_v39 = vadd.f32 %v3236_v19, %v3100_v27  ;;  %v2374_v49 = vpop.f32.mrb[17].mxu0 }
 0x1f2   : > { %2553 = vst [vmem:[%s4402_s16 + $0x68] sm:$0xff] %v2521_v30  ;;  %v3269_v0 = vadd.f32 %v2374_v49, %v1542_v42  ;;  %v3237_v48 = vpop.f32.mrb[18].mxu0 }
 0x1f3   : > { %v2494_v47 = vadd.f32 %v3268_v39, %v4395_v31  ;;  %v3270_v21 = vadd.f32 %v3237_v48, %v3101_v51  ;;  %v2377_v62 = vpop.f32.mrb[19].mxu0 }
 0x1f4   : > { %v2492_v2 = vadd.f32 %v3269_v0, %v4395_v31  ;;  %v3271_v50 = vadd.f32 %v2377_v62, %v1545_v29 }
 0x1f5   : > { %v2526_v20 = vmax.f32 %v2494_v47, 0.0  ;;  %v2495_v25 = vadd.f32 %v3270_v21, %v4395_v31 }
 0x1f6   : > { %v3104_v35 = vpop.f32.mrb[20].mxu1  ;;  %v2524_v23 = vmax.f32 %v2492_v2, 0.0  ;;  %v2493_v10 = vadd.f32 %v3271_v50, %v4395_v31 }
 0x1f7   : > { %v1558_v36 = vpop.f32.mrb[21].mxu1  ;;  %2558 = vst [vmem:[%s4402_s16 + $0x90] sm:$0xff] %v2526_v20  ;;  %v2527_v9 = vmax.f32 %v2495_v25, 0.0 }
 0x1f8   : > { %v3105_v26 = vpop.f32.mrb[22].mxu1  ;;  %2556 = vst [vmem:[%s4402_s16 + $0x80] sm:$0xff] %v2524_v23  ;;  %v2525_v13 = vmax.f32 %v2493_v10, 0.0  ;;  %v3240_v14 = vpop.f32.mrb[20].mxu0 }
 0x1f9   : > { %v1561_v1 = vpop.f32.mrb[23].mxu1  ;;  %2559 = vst [vmem:[%s4402_s16 + $0x98] sm:$0xff] %v2527_v9  ;;  %v3272_v17 = vadd.f32 %v3240_v14, %v3104_v35  ;;  %v2390_v22 = vpop.f32.mrb[21].mxu0 }
 0x1fa   : > { %2557 = vst [vmem:[%s4402_s16 + $0x88] sm:$0xff] %v2525_v13  ;;  %v3273_v18 = vadd.f32 %v2390_v22, %v1558_v36  ;;  %v3241_v24 = vpop.f32.mrb[22].mxu0 }
 0x1fb   : > { %v2498_v3 = vadd.f32 %v3272_v17, %v4395_v31  ;;  %v3274_v38 = vadd.f32 %v3241_v24, %v3105_v26  ;;  %v2393_v6 = vpop.f32.mrb[23].mxu0 }
 0x1fc   : > { %v2496_v7 = vadd.f32 %v3273_v18, %v4395_v31  ;;  %v3275_v5 = vadd.f32 %v2393_v6, %v1561_v1 }
 0x1fd   : > { %v2530_v53 = vmax.f32 %v2498_v3, 0.0  ;;  %v2499_v54 = vadd.f32 %v3274_v38, %v4395_v31 }
 0x1fe   : > { %v3108_v61 = vpop.f32.mrb[24].mxu1  ;;  %v2528_v11 = vmax.f32 %v2496_v7, 0.0  ;;  %v2497_v28 = vadd.f32 %v3275_v5, %v4395_v31 }
 0x1ff   : > { %v1574_v37 = vpop.f32.mrb[25].mxu1  ;;  %2562 = vst [vmem:[%s4402_s16 + $0xb0] sm:$0xff] %v2530_v53  ;;  %v2531_v15 = vmax.f32 %v2499_v54, 0.0 }
 0x200   : > { %v3109_v60 = vpop.f32.mrb[26].mxu1  ;;  %2560 = vst [vmem:[%s4402_s16 + $0xa0] sm:$0xff] %v2528_v11  ;;  %v2529_v45 = vmax.f32 %v2497_v28, 0.0  ;;  %v3244_v41 = vpop.f32.mrb[24].mxu0 }
 0x201   : > { %v1577_v34 = vpop.f32.mrb[27].mxu1  ;;  %2563 = vst [vmem:[%s4402_s16 + $0xb8] sm:$0xff] %v2531_v15  ;;  %v3276_v63 = vadd.f32 %v3244_v41, %v3108_v61  ;;  %v2406_v43 = vpop.f32.mrb[25].mxu0 }
 0x202   : > { %2561 = vst [vmem:[%s4402_s16 + $0xa8] sm:$0xff] %v2529_v45  ;;  %v3277_v16 = vadd.f32 %v2406_v43, %v1574_v37  ;;  %v3245_v44 = vpop.f32.mrb[26].mxu0 }
 0x203   : > { %v2502_v57 = vadd.f32 %v3276_v63, %v4395_v31  ;;  %v3278_v40 = vadd.f32 %v3245_v44, %v3109_v60  ;;  %v2409_v4 = vpop.f32.mrb[27].mxu0 }
 0x204   : > { %v2500_v8 = vadd.f32 %v3277_v16, %v4395_v31  ;;  %v3279_v46 = vadd.f32 %v2409_v4, %v1577_v34 }
 0x205   : > { %v2534_v33 = vmax.f32 %v2502_v57, 0.0  ;;  %v2503_v32 = vadd.f32 %v3278_v40, %v4395_v31 }
 0x206   : > { %v3112_v56 = vpop.f32.mrb[28].mxu1  ;;  %v2532_v52 = vmax.f32 %v2500_v8, 0.0  ;;  %v2501_v58 = vadd.f32 %v3279_v46, %v4395_v31 }
 0x207   : > { %v1590_v27 = vpop.f32.mrb[29].mxu1  ;;  %2566 = vst [vmem:[%s4402_s16 + $0xd0] sm:$0xff] %v2534_v33  ;;  %v2535_v12 = vmax.f32 %v2503_v32, 0.0 }
 0x208   : > { %v3113_v55 = vpop.f32.mrb[30].mxu1  ;;  %2564 = vst [vmem:[%s4402_s16 + $0xc0] sm:$0xff] %v2532_v52  ;;  %v2533_v42 = vmax.f32 %v2501_v58, 0.0  ;;  %v3248_v59 = vpop.f32.mrb[28].mxu0 }
 0x209   : > { %v1593_v51 = vpop.f32.mrb[31].mxu1  ;;  %2567 = vst [vmem:[%s4402_s16 + $0xd8] sm:$0xff] %v2535_v12  ;;  %v3280_v30 = vadd.f32 %v3248_v59, %v3112_v56  ;;  %v2422_v19 = vpop.f32.mrb[29].mxu0 }
 0x20a   : > { %2565 = vst [vmem:[%s4402_s16 + $0xc8] sm:$0xff] %v2533_v42  ;;  %v3281_v29 = vadd.f32 %v2422_v19, %v1590_v27  ;;  %v3249_v39 = vpop.f32.mrb[30].mxu0 }
 0x20b   : > { %v2506_v49 = vadd.f32 %v3280_v30, %v4395_v31  ;;  %v3282_v0 = vadd.f32 %v3249_v39, %v3113_v55  ;;  %v2425_v48 = vpop.f32.mrb[31].mxu0 }
 0x20c   : > { %v2504_v47 = vadd.f32 %v3281_v29, %v4395_v31  ;;  %v3283_v21 = vadd.f32 %v2425_v48, %v1593_v51 }
 0x20d   : > { %v2538_v62 = vmax.f32 %v2506_v49, 0.0  ;;  %v2507_v2 = vadd.f32 %v3282_v0, %v4395_v31 }
 0x20e   : > { %v2536_v50 = vmax.f32 %v2504_v47, 0.0  ;;  %v2505_v20 = vadd.f32 %v3283_v21, %v4395_v31 }
 0x20f   : > { %2570 = vst [vmem:[%s4402_s16 + $0xf0] sm:$0xff] %v2538_v62  ;;  %v2539_v25 = vmax.f32 %v2507_v2, 0.0 }
 0x210   : > { %2568 = vst [vmem:[%s4402_s16 + $0xe0] sm:$0xff] %v2536_v50  ;;  %v2537_v35 = vmax.f32 %v2505_v20, 0.0 }
 0x211   : > { %2571 = vst [vmem:[%s4402_s16 + $0xf8] sm:$0xff] %v2539_v25 }
 0x212   : > { %2569 = vst [vmem:[%s4402_s16 + $0xe8] sm:$0xff] %v2537_v35 }
 0x213 PF: > { %s13_s12 = sadd.s32 1, %s3533_s12  }
 0x214   : > { %p10_p4 = scmp.ge.s32.totalorder %s13_s12, 4  }
 0x216   :  { %12 = sbr.rel (!%p10_p4) target bundleno = 1 (0x1), region = 70 }

// kernel: labeldroid_forward.7
= control target key start
LH: loop header
LB: loop body
LE: loop exit
PB: predicated region body
PF: predicated region fallthrough
CT: control target
= control target key end

     0   :  { %s3460_s27 = smov 0   ;;  %s4172_s0 = inlined_call_operand.vmem [shape: f32[2,16,128], index: 0, kind: input, shape index: {}]   ;;  %s4173_s1 = inlined_call_operand.vmem [shape: f32[2,16,128], index: 1, kind: input, shape index: {}]   ;;  %s4174_s2 = inlined_call_operand.vmem [shape: bf16[256,128], index: 2, kind: input, shape index: {}]   ;;  %s4175_s3 = inlined_call_operand.vmem [shape: f32[8,128], index: 3, kind: input, shape index: {}]   ;;  %s4176_s4 = inlined_call_operand.vmem [shape: bf16[128,384], index: 4, kind: input, shape index: {}]   ;;  %s4177_s5 = inlined_call_operand.vmem [shape: f32[1,384], index: 5, kind: input, shape index: {}]   ;;  %s4178_s6 = inlined_call_operand.vmem [shape: bf16[128,128], index: 6, kind: input, shape index: {}]   ;;  %s4179_s7 = inlined_call_operand.vmem [shape: f32[1,128], index: 7, kind: input, shape index: {}]   ;;  %s4180_s8 = inlined_call_operand.vmem [shape: bf16[128,128], index: 8, kind: input, shape index: {}]   ;;  %s4181_s9 = inlined_call_operand.vmem [shape: f32[1,128], index: 9, kind: input, shape index: {}]   ;;  %s4182_s10 = inlined_call_operand.vmem [shape: bf16[128,128], index: 10, kind: input, shape index: {}]   ;;  %s4183_s11 = inlined_call_operand.vmem [shape: f32[1,128], index: 11, kind: input, shape index: {}]   ;;  %s4184_s12 = inlined_call_operand.vmem [shape: f32[1,128], index: 12, kind: input, shape index: {}]   ;;  %s4185_s13 = inlined_call_operand.vmem [shape: f32[1,128], index: 13, kind: input, shape index: {}]   ;;  %s4186_s14 = inlined_call_operand.vmem [shape: f32[1,128], index: 14, kind: input, shape index: {}]   ;;  %s4187_s15 = inlined_call_operand.vmem [shape: f32[1,128], index: 15, kind: input, shape index: {}]   ;;  %s4188_s16 = inlined_call_operand.vmem [shape: f32[1,128], index: 16, kind: input, shape index: {}]   ;;  %s4189_s17 = inlined_call_operand.vmem [shape: f32[1,128], index: 17, kind: input, shape index: {}]   ;;  %s4190_s18 = inlined_call_operand.vmem [shape: bf16[128,256], index: 18, kind: input, shape index: {}]   ;;  %s4191_s19 = inlined_call_operand.vmem [shape: f32[1,256], index: 19, kind: input, shape index: {}]   ;;  %s4192_s20 = inlined_call_operand.vmem [shape: bf16[256,128], index: 20, kind: input, shape index: {}]   ;;  %s4193_s21 = inlined_call_operand.vmem [shape: f32[1,128], index: 21, kind: input, shape index: {}]   ;;  %s4194_s22 = inlined_call_operand.vmem [shape: bf16[128,256], index: 22, kind: input, shape index: {}]   ;;  %s4195_s23 = inlined_call_operand.vmem [shape: f32[1,256], index: 23, kind: input, shape index: {}]   ;;  %s4196_s24 = inlined_call_operand.vmem [shape: f32[128,4], index: 24, kind: input, shape index: {}]   ;;  %s4197_s25 = inlined_call_operand.vmem [shape: f32[4,128], index: 25, kind: input, shape index: {}]   ;;  %s4198_s26 = inlined_call_operand.vmem [shape: s32[2,8,1], index: 26, kind: output, shape index: {}]  }
   0x1   :  { %4206 = sst [smem:[#allocation5_spill]] %s4172_s0 }
   0x2   :  { %4207 = sst [smem:[#allocation6_spill]] %s4173_s1 }
   0x3   :  { %4208 = sst [smem:[#allocation7_spill]] %s4174_s2 }
   0x4   :  { %4209 = sst [smem:[#allocation8_spill]] %s4175_s3 }
   0x5   :  { %4210 = sst [smem:[#allocation9_spill]] %s4176_s4 }
   0x6   :  { %4211 = sst [smem:[#allocation10_spill]] %s4177_s5 }
   0x7   :  { %4212 = sst [smem:[#allocation11_spill]] %s4178_s6 }
   0x8   :  { %4213 = sst [smem:[#allocation12_spill]] %s4179_s7 }
   0x9   :  { %4214 = sst [smem:[#allocation13_spill]] %s4180_s8 }
   0xa   :  { %4215 = sst [smem:[#allocation14_spill]] %s4181_s9 }
   0xb   :  { %4216 = sst [smem:[#allocation15_spill]] %s4182_s10 }
   0xc   :  { %4217 = sst [smem:[#allocation16_spill]] %s4195_s23 }
   0xd LB: > { %4218 = sst [smem:[#allocation4_spill]] %s3306_s27  ;;  %s2627_s3 = sadd.s32 4294967295, %s3306_s27   ;;  %s3306_s27 = sphi %s3460_s27, %s36_s27  }
   0xe   : > { %p2631_p0 = scmp.ge.s32.totalorder %s3306_s27, 1  ;;  %p722_p1 = scmp.lt.s32.totalorder %s3306_s27, 3 }
  0x10   : > { %p723_p2 = pnand %p2631_p0, %p722_p1 }
  0x11   : > { %p796_p3 = scmp.lt.s32.totalorder (!%p723_p2), %s2627_s3, 1  ;;  %v840_v0 = vlaneseq (!%p723_p2)  ;;  %v3471_v1 = vld [vmem:[%s4196_s24] sm:$0xff] (!%p723_p2)  ;;  %v3476_v2 = vld [vmem:[%s4196_s24 + $0x8] sm:$0xff] (!%p723_p2)  ;;  %v3481_v3 = vld [vmem:[%s4196_s24 + $0x10] sm:$0xff] (!%p723_p2)  ;;  %v3320_v4 = vmov (!%p723_p2), 0.0   ;;  %s4220_s5 = sld [smem:[#allocation6_spill]] (!%p723_p2) }
  0x12   : > { %726 = sbr.rel (%p723_p2) target bundleno = 4067 (0xfe3), region = 124  ;;  %811 = vst [vmem:[#allocation2] sm:$0xff] (!%p723_p2), %v3320_v4  ;;  %812 = vst [vmem:[#allocation3] sm:$0xff] (!%p723_p2), %v3320_v4  ;;  %v3486_v5 = vld [vmem:[%s4196_s24 + $0x18] sm:$0xff] (!%p723_p2)  ;;  %v3491_v6 = vld [vmem:[%s4196_s24 + $0x20] sm:$0xff] (!%p723_p2)  ;;  %v3612_v35 = vmov (!%p723_p2), 0.0  }
  0x13   : > { %v3496_v7 = vld [vmem:[%s4196_s24 + $0x28] sm:$0xff] (!%p723_p2)  ;;  %v3498_v8 = vand.u32 (!%p723_p2), 127, %v840_v0  ;;  %v3500_v9 = vshrl.u32 (!%p723_p2), %v840_v0, 7  ;;  %v3505_v10 = vld [vmem:[%s4196_s24 + $0x30] sm:$0xff] (!%p723_p2)  ;;  %v3510_v11 = vld [vmem:[%s4196_s24 + $0x38] sm:$0xff] (!%p723_p2)  ;;  %s3616_s4 = smov (!%p723_p2), 0  }
  0x14   : > { %v3515_v12 = vld [vmem:[%s4196_s24 + $0x40] sm:$0xff] (!%p723_p2)  ;;  %v3520_v13 = vld [vmem:[%s4196_s24 + $0x48] sm:$0xff] (!%p723_p2)  ;;  %v3525_v14 = vld [vmem:[%s4196_s24 + $0x50] sm:$0xff] (!%p723_p2) }
  0x15   : > { %v3530_v15 = vld [vmem:[%s4196_s24 + $0x58] sm:$0xff] (!%p723_p2)  ;;  %v3533_v16 = vadd.s32 (!%p723_p2), 128, %v3498_v8  ;;  %v843_v17 = vcvt.s32.f32 (!%p723_p2), %v3498_v8  ;;  %vm847_vm0 = vcmp.eq.s32.totalorder (!%p723_p2), %v3498_v8, 1  ;;  %v3540_v18 = vld [vmem:[%s4196_s24 + $0x60] sm:$0xff] (!%p723_p2)  ;;  %v3545_v19 = vld [vmem:[%s4196_s24 + $0x68] sm:$0xff] (!%p723_p2) }
  0x16   : > { %v2637_v20 = vsel (!%p723_p2), %vm847_vm0, 1.0, %v3320_v4   ;;  %v3556_v21 = vld [vmem:[%s4196_s24 + $0x70] sm:$0xff] (!%p723_p2)  ;;  %v3561_v22 = vld [vmem:[%s4196_s24 + $0x78] sm:$0xff] (!%p723_p2)  ;;  %v3566_v23 = vld [vmem:[%s4197_s25] sm:$0xf] (!%p723_p2) }
  0x17   : > { %v3585_v29 = vld [vmem:[%s4184_s12] sm:$0x1] (!%p723_p2) }
  0x18   : > { %v3590_v30 = vld [vmem:[%s4185_s13] sm:$0x1] (!%p723_p2) }
  0x19   : > { %s4235_s3 = smov (!%p796_p3, %s2627_s3), 1  ;;  %v3595_v31 = vld [vmem:[%s4186_s14] sm:$0x1] }
  0x1a   : > { %s2759_s6 = sshll.u32 %s4235_s3, 4  ;;  %s2636_s1 = sshll.u32 %s4235_s3, 3  ;;  %v3600_v32 = vld [vmem:[%s4187_s15] sm:$0x1] }
  0x1b   : > { %s4219_s3 = sld [smem:[#allocation5_spill]]  ;;  %s805_s10 = scalar_lea.vmem %s4220_s5, %s2759_s6  ;;  %v3605_v33 = vld [vmem:[%s4188_s16] sm:$0x1] }
  0x1c   : > { %v3578_v27 = vld [vmem:[%s805_s10] sm:$0xff]  ;;  %v3580_v28 = vld [vmem:[%s805_s10 + $0x8] sm:$0xff] }
  0x1d   : > { %v3610_v34 = vld [vmem:[%s4189_s17] sm:$0x1] }
  0x21   : > { %s800_s9 = scalar_lea.vmem %s4219_s3, %s2759_s6  ;;  %s3571_s6 = scalar_lea.vmem %s4198_s26, %s2636_s1 }
  0x22   : > { %v3574_v25 = vld [vmem:[%s800_s9] sm:$0xff]  ;;  %v3576_v26 = vld [vmem:[%s800_s9 + $0x8] sm:$0xff] }
  0x23 LB: >> { %s4221_s23 = sld [smem:[#allocation7_spill]]  ;;  %v862_v39 = vpack.c.bf16 %v3310_v35, %v3310_v35  ;;  %s4222_s28 = sld [smem:[#allocation9_spill]]  ;;  %v861_v0 = vpack.c.bf16 %v3314_v20, %v3314_v20  ;;  %v3321_v35 = vmov 0.0   ;;  %vm3323_vm1 = vmmov 0   ;;  %s3318_s4 = sphi %s3616_s4, %s858_s4   ;;  %v3314_v20 = vphi %v2637_v20, %v2755_v20   ;;  %v3310_v35 = vphi %v3612_v35, %v2756_v35  }
  0x24   : >> { %s4223_s10 = sld [smem:[#allocation8_spill]]  ;;  %s4224_s0 = sld [smem:[#allocation10_spill]]  ;;  %vm1403_vm2 = vcmask 1043456   ;;  %vm1380_vm4 = vcmask 31744   ;;  %vm1591_vm5 = vcmask 1040384   ;;  %vm2539_vm8 = vcmask 0  }
  0x25   : >> { %1023 = vmatprep.mubr.bf16.mxu0 %v862_v39  ;;  %s1296_s27 = scalar_lea.vmem [#allocation3], %s3318_s4  ;;  %s1294_s3 = scalar_lea.vmem [#allocation2], %s3318_s4 }
  0x26   : >> { %s4225_s2 = sld [smem:[#allocation11_spill]]  ;;  %s4226_s29 = sld [smem:[#allocation12_spill]] }
  0x27   : >> { %s4228_s8 = sld [smem:[#allocation14_spill]]  ;;  %s4231_s1 = sld [smem:[#allocation16_spill]] }
  0x28   : >> { %s2538_s9 = scalar_lea.vmem %s3571_s6, %s3318_s4 }
  0x29   : >> { %v3136_v36 = vld [vmem:[%s4221_s23 + $0x40] sm:$0xff]   ;;  %v3138_v38 = vld [vmem:[%s4221_s23 + $0x48] sm:$0xff]   ;;  %v3140_v41 = vld [vmem:[%s4221_s23 + $0x50] sm:$0xff]  }
  0x2a   : >> { %v3137_v37 = vld [vmem:[%s4221_s23] sm:$0xff]   ;;  %2761 = vmatprep.subr.bf16.mxu0 %v3136_v36  ;;  %v3139_v40 = vld [vmem:[%s4221_s23 + $0x8] sm:$0xff]   ;;  %v3141_v42 = vld [vmem:[%s4221_s23 + $0x10] sm:$0xff]   ;;  %s1032_s7 = scalar_lea.vmem %s4223_s10, %s3318_s4 }
  0x2b   : >> { %2762 = vmatpush3.bf16.msra.mxu0 %v3137_v37  ;;  %v3142_v43 = vld [vmem:[%s4221_s23 + $0x58] sm:$0xff]   ;;  %v3144_v45 = vld [vmem:[%s4221_s23 + $0x60] sm:$0xff]   ;;  %v3146_v47 = vld [vmem:[%s4221_s23 + $0x68] sm:$0xff]  }
  0x2c   : >> { %2763 = vmatprep.subr.bf16.mxu0 %v3138_v38  ;;  %v3143_v44 = vld [vmem:[%s4221_s23 + $0x18] sm:$0xff]   ;;  %v3145_v46 = vld [vmem:[%s4221_s23 + $0x20] sm:$0xff]   ;;  %v3147_v50 = vld [vmem:[%s4221_s23 + $0x28] sm:$0xff]  }
  0x2d   : >> { %v3152_v48 = vld [vmem:[%s4222_s28 + $0x4] ss:$12 sps:$4 sm:$0xff]   ;;  %v3154_v49 = vld [vmem:[%s4222_s28] ss:$12 sps:$4 sm:$0xff]   ;;  %v3156_v51 = vld [vmem:[%s4222_s28 + $0x1c] ss:$12 sps:$4 sm:$0xff]  }
  0x2e   : >> { %1213 = vmatprep.subr.bf16.mxu1 %v3152_v48  ;;  %v3158_v52 = vld [vmem:[%s4222_s28 + $0x18] ss:$12 sps:$4 sm:$0xff]   ;;  %v3148_v53 = vld [vmem:[%s4221_s23 + $0x70] sm:$0xff]   ;;  %v3170_v63 = vld [vmem:[%s4222_s28 + $0x60] ss:$12 sps:$4 sm:$0xff]   ;;  %v3324_v48 = vmov 0.0|0.0  }
  0x2f   : >> { %2764 = vmatpush3.bf16.msra.mxu0 %v3139_v40  ;;  %1214 = vmatpush1.bf16.msra.mxu1 %v3154_v49  ;;  %v3149_v54 = vld [vmem:[%s4221_s23 + $0x30] sm:$0xff]   ;;  %v3150_v56 = vld [vmem:[%s4221_s23 + $0x78] sm:$0xff]   ;;  %v3159_v36 = vld [vmem:[%s4222_s28 + $0x20] ss:$12 sps:$4 sm:$0xff]  }
  0x30   : >> { %2765 = vmatprep.subr.bf16.mxu0 %v3140_v41  ;;  %1215 = vmatprep.subr.bf16.mxu1 %v3156_v51  ;;  %v3160_v55 = vld [vmem:[%s4222_s28 + $0x34] ss:$12 sps:$4 sm:$0xff]   ;;  %v3162_v57 = vld [vmem:[%s4222_s28 + $0x30] ss:$12 sps:$4 sm:$0xff]   ;;  %v3164_v58 = vld [vmem:[%s4222_s28 + $0x4c] ss:$12 sps:$4 sm:$0xff]  }
  0x31   : >> { %v3151_v59 = vld [vmem:[%s4221_s23 + $0x38] sm:$0xff]   ;;  %v3166_v60 = vld [vmem:[%s4222_s28 + $0x48] ss:$12 sps:$4 sm:$0xff]   ;;  %v3168_v61 = vld [vmem:[%s4222_s28 + $0x64] ss:$12 sps:$4 sm:$0xff]  }
  0x32   : >> { %v3155_v62 = vld [vmem:[%s4222_s28 + $0x8] ss:$12 sps:$4 sm:$0xff]   ;;  %v3174_v37 = vld [vmem:[%s4222_s28 + $0x78] ss:$12 sps:$4 sm:$0xff]   ;;  %v3167_v38 = vld [vmem:[%s4222_s28 + $0x50] ss:$12 sps:$4 sm:$0xff]  }
  0x33   : >> { %2766 = vmatpush3.bf16.msra.mxu0 %v3141_v42  ;;  %1216 = vmatpush1.bf16.msra.mxu1 %v3158_v52  ;;  %v3172_v4 = vld [vmem:[%s4222_s28 + $0x7c] ss:$12 sps:$4 sm:$0xff]   ;;  %v3163_v20 = vld [vmem:[%s4222_s28 + $0x38] ss:$12 sps:$4 sm:$0xff]   ;;  %v3175_v40 = vld [vmem:[%s4222_s28 + $0x80] ss:$12 sps:$4 sm:$0xff]  }
  0x34   : >> { %2767 = vmatprep.subr.bf16.mxu0 %v3142_v43  ;;  %1217 = vmatprep.subr.bf16.mxu1 %v3160_v55  ;;  %v3171_v39 = vld [vmem:[%s4222_s28 + $0x68] ss:$12 sps:$4 sm:$0xff]   ;;  %v3178_v42 = vld [vmem:[%s4222_s28 + $0x90] ss:$12 sps:$4 sm:$0xff]   ;;  %v3179_v43 = vld [vmem:[%s4222_s28 + $0x98] ss:$12 sps:$4 sm:$0xff]  }
  0x35   : >> { %v3176_v41 = vld [vmem:[%s4222_s28 + $0x94] ss:$12 sps:$4 sm:$0xff]  }
  0x37   : >> { %2768 = vmatpush3.bf16.msra.mxu0 %v3143_v44  ;;  %1218 = vmatpush1.bf16.msra.mxu1 %v3162_v57  ;;  %v3180_v44 = vld [vmem:[%s4222_s28 + $0xac] ss:$12 sps:$4 sm:$0xff]   ;;  %v3763_v57 = vpack.c.bf16 %v3476_v2, %v3471_v1 }
  0x38   : >> { %2769 = vmatprep.subr.bf16.mxu0 %v3144_v45  ;;  %1219 = vmatprep.subr.bf16.mxu1 %v3164_v58  ;;  %v3182_v45 = vld [vmem:[%s4222_s28 + $0xa8] ss:$12 sps:$4 sm:$0xff]  }
  0x3b   : >> { %2770 = vmatpush3.bf16.msra.mxu0 %v3145_v46  ;;  %1220 = vmatpush1.bf16.msra.mxu1 %v3166_v60  ;;  %v3183_v46 = vld [vmem:[%s4222_s28 + $0xb0] ss:$12 sps:$4 sm:$0xff]   ;;  %v3779_v60 = vpack.c.bf16 %v3496_v7, %v3491_v6 }
  0x3c   : >> { %2771 = vmatprep.subr.bf16.mxu0 %v3146_v47  ;;  %1221 = vmatprep.subr.bf16.mxu1 %v3168_v61  ;;  %v3322_v47 = vmov 0   ;;  %v3784_v61 = vpack.c.bf16 %v3510_v11, %v3505_v10 }
  0x3d   : >> { %1245 = vmatprep.mubr.bf16.mxu1 %v3322_v47 }
  0x3f   : >> { %2772 = vmatpush3.bf16.msra.mxu0 %v3147_v50  ;;  %1222 = vmatpush1.bf16.msra.mxu1 %v3170_v63  ;;  %v3794_v63 = vpack.c.bf16 %v3530_v15, %v3525_v14 }
  0x40   : >> { %2773 = vmatprep.subr.bf16.mxu0 %v3148_v53  ;;  %1223 = vmatprep.subr.bf16.mxu1 %v3172_v4  ;;  %v1033_v53 = vld [vmem:[%s1032_s7] sm:$0x1]  ;;  %v3804_v4 = vpack.c.bf16 %v3561_v22, %v3556_v21 }
  0x43   : >> { %2774 = vmatpush3.bf16.msra.mxu0 %v3149_v54  ;;  %1224 = vmatpush1.bf16.msra.mxu1 %v3174_v37  ;;  %v1068_v37 = vld [vmem:[%s4224_s0] sm:$0x7] }
  0x44   : >> { %2775 = vmatprep.subr.bf16.mxu0 %v3150_v56  ;;  %1225 = vmatprep.subr.bf16.mxu1 %v3176_v41 }
  0x47   : >> { %2776 = vmatpush3.bf16.msra.mxu0 %v3151_v59  ;;  %1226 = vmatpush1.bf16.msra.mxu1 %v3178_v42  ;;  %v3770_v59 = vpack.c.bf16 %v3486_v5, %v3481_v3 }
  0x48   : >> { %2881 = vmatprep.subr.bf16.mxu0 %v3321_v35  ;;  %1227 = vmatprep.subr.bf16.mxu1 %v3180_v44 }
  0x4a   : >> { %1024 = vmatmul.mubr.bf16.vlgmr.msra.gmra.mrb[0].mxu0 %v861_v0  ;;  %v3799_v0 = vpack.c.bf16 %v3545_v19, %v3540_v18 }
  0x4b   : >> { %2882 = vmatpush3.bf16.msra.mxu0 %v3155_v62  ;;  %1228 = vmatpush1.bf16.msra.mxu1 %v3182_v45  ;;  %v3789_v62 = vpack.c.bf16 %v3520_v13, %v3515_v12 }
  0x4c   : >> { %2883 = vmatprep.subr.bf16.mxu0 %v3321_v35  ;;  %2897 = vmatprep.mubr.msk.bf16.mxu0 %vm3323_vm1, %v3321_v35 }
  0x4d   : >> { %3041 = vmatprep.subr.bf16.mxu1 %v3324_v48 }
  0x4f   : >> { %2884 = vmatpush3.bf16.msra.mxu0 %v3159_v36  ;;  %v1208_v36 = vsub.s32 2, %v3500_v9 }
  0x50   : >> { %2885 = vmatprep.subr.bf16.mxu0 %v3321_v35 }
  0x53   : >> { %2886 = vmatpush3.bf16.msra.mxu0 %v3163_v20  ;;  %v3813_v20 = vsub.s32 1, %v3500_v9 }
  0x54   : >> { %2887 = vmatprep.subr.bf16.mxu0 %v3321_v35 }
  0x57   : >> { %2888 = vmatpush3.bf16.msra.mxu0 %v3167_v38  ;;  %v1209_v38 = vrot.slane %v1068_v37, %v1208_v36  ;;  %v3184_v36 = vld [vmem:[%s4225_s2] sm:$0xff]  }
  0x58   : >> { %2889 = vmatprep.subr.bf16.mxu0 %v3321_v35 }
  0x5b   : >> { %2890 = vmatpush3.bf16.msra.mxu0 %v3171_v39  ;;  %v3816_v39 = vsub.s32 0, %v3500_v9 }
  0x5c   : >> { %2891 = vmatprep.subr.bf16.mxu0 %v3321_v35 }
  0x5f   : >> { %2892 = vmatpush3.bf16.msra.mxu0 %v3175_v40  ;;  %v1205_v40 = vrot.slane %v1068_v37, %v3813_v20 }
  0x60   : >> { %2893 = vmatprep.subr.bf16.mxu0 %v3321_v35 }
  0x63   : >> { %2894 = vmatpush3.bf16.msra.mxu0 %v3179_v43 }
  0x64   : >> { %2895 = vmatprep.subr.bf16.mxu0 %v3321_v35 }
  0x67   : >> { %2896 = vmatpush3.bf16.msra.mxu0 %v3183_v46  ;;  %v1201_v46 = vrot.slane %v1068_v37, %v3816_v39  ;;  %v3185_v37 = vld [vmem:[%s4225_s2 + $0x8] sm:$0xff]  }
  0x68   : >> { %2941 = vmatprep.subr.bf16.mxu0 %v3321_v35 }
 0x11d   : >> { %v2777_v49 = vpop.f32.mrb[0].mxu0 }
 0x11e   : >> { %v2778_v50 = vpop.f32.mrb[1].mxu0 }
 0x11f   : >> { %v2779_v51 = vadd.f32 %v2778_v50, %v2777_v49  ;;  %v2780_v52 = vpop.f32.mrb[2].mxu0 }
 0x120   : >> { %v2781_v54 = vpop.f32.mrb[3].mxu0 }
 0x121   : >> { %v1031_v55 = vmul.f32 11.313708, %v2779_v51 }
 0x123   : >> { %v3759_v56 = vadd.f32 %v1033_v53, %v1031_v55 }
 0x125   : >> { %v1035_v58 = vpack.c.bf16 %v3759_v56, %v3759_v56 }
 0x127   : >> { %1246 = vmatmul.mubr.bf16.vlgmr.msra.gmra.mrb[0].mxu1 %v1035_v58  ;;  %2898 = vmatmul.mubr.bf16.vlgmr.msra.gmra.mrb[4].mxu0 %v1035_v58 }
 0x128   : >> { %3043 = vmatpush3.bf16.msra.mxu1 %v3763_v57  ;;  %2933 = vmatprep.mubr.msk.f32.mxu1 %vm3323_vm1, %v3321_v35 }
 0x129   : >> { %3044 = vmatprep.subr.bf16.mxu1 %v3324_v48  ;;  %2957 = vmatprep.mubr.msk.bf16.mxu0 %vm3323_vm1, %v3321_v35 }
 0x12a   : >> { %2942 = vmatpush3.bf16.msra.mxu0 %v3184_v36 }
 0x12b   : >> { %2943 = vmatprep.subr.bf16.mxu0 %v3321_v35 }
 0x12c   : >> { %3046 = vmatpush3.bf16.msra.mxu1 %v3770_v59 }
 0x12d   : >> { %3047 = vmatprep.subr.bf16.mxu1 %v3324_v48 }
 0x12e   : >> { %2944 = vmatpush3.bf16.msra.mxu0 %v3185_v37 }
 0x12f   : >> { %2945 = vmatprep.subr.bf16.mxu0 %v3321_v35 }
 0x130   : >> { %3049 = vmatpush3.bf16.msra.mxu1 %v3779_v60 }
 0x131   : >> { %3050 = vmatprep.subr.bf16.mxu1 %v3324_v48 }
 0x134   : >> { %3052 = vmatpush3.bf16.msra.mxu1 %v3784_v61 }
 0x135   : >> { %3053 = vmatprep.subr.bf16.mxu1 %v3324_v48 }
 0x138   : >> { %3055 = vmatpush3.bf16.msra.mxu1 %v3789_v62 }
 0x139   : >> { %3056 = vmatprep.subr.bf16.mxu1 %v3324_v48 }
 0x13c   : >> { %3058 = vmatpush3.bf16.msra.mxu1 %v3794_v63 }
 0x13d   : >> { %3059 = vmatprep.subr.bf16.mxu1 %v3324_v48 }
 0x140   : >> { %3061 = vmatpush3.bf16.msra.mxu1 %v3799_v0 }
 0x141   : >> { %3062 = vmatprep.subr.bf16.mxu1 %v3324_v48 }
 0x144   : >> { %3064 = vmatpush3.bf16.msra.mxu1 %v3804_v4 }
 0x145   : >> { %2936 = vmatprep.subr.mxu1 %v3321_v35 }
 0x1fa   : >> { %v1247_v41 = vpop.f32.mrb[0].mxu1  ;;  %v1288_v42 = vpop.f32.mrb[4].mxu0 }
 0x1fb   : >> { %v1289_v43 = vadd.f32 %v1288_v42, %v1209_v38  ;;  %v1249_v44 = vpop.f32.mrb[1].mxu1  ;;  %v2899_v45 = vpop.f32.mrb[5].mxu0  ;;  %v1248_v53 = vadd.f32 %v1247_v41, %v1201_v46  ;;  %v3186_v38 = vld [vmem:[%s4225_s2 + $0x10] sm:$0xff]   ;;  %v1300_v41 = vstv %s3318_s4  ;;  %s858_s4 = sadd.s32 1, %s3318_s4  }
 0x1fc   : >> { %v1250_v48 = vadd.f32 %v1249_v44, %v1205_v40  ;;  %v1251_v49 = vpop.f32.mrb[2].mxu1  ;;  %v1291_v50 = vpop.f32.mrb[6].mxu0  ;;  %2946 = vmatpush3.bf16.msra.mxu0 %v3186_v38  ;;  %v3187_v40 = vld [vmem:[%s4225_s2 + $0x18] sm:$0xff]   ;;  %vm1301_vm3 = vcmp.le.s32.totalorder %v3500_v9, %v1300_v41  ;;  %p855_p4 = scmp.ge.s32.totalorder %s858_s4, 8  }
 0x1fd   : >> { %1297 = vst [vmem:[%s1296_s27] sm:$0x1] %v1289_v43  ;;  %v1252_v51 = vpop.f32.mrb[3].mxu1  ;;  %v2900_v52 = vpop.f32.mrb[7].mxu0  ;;  %v1305_v54 = vrot.slane %v1248_v53, %v3816_v39  ;;  %2947 = vmatprep.subr.bf16.mxu0 %v3321_v35  ;;  %s4229_s27 = sld [smem:[#allocation15_spill]] }
 0x1fe   : >> { %1295 = vst [vmem:[%s1294_s3] sm:$0x1] %v1250_v48  ;;  %s4227_s3 = sld [smem:[#allocation13_spill]] }
 0x200   : >> { %2948 = vmatpush3.bf16.msra.mxu0 %v3187_v40 }
 0x201   : >> { %2949 = vmatprep.subr.bf16.mxu0 %v3321_v35 }
 0x203   : >> { %s4230_s30 = smov %s4229_s27 }
 0x205   : >> { %v1298_v55 = vld [vmem:[#allocation2] sm:$0xff] }
 0x206   : >> { %v1306_v58 = vmul.f32 %v1305_v54, %v1298_v55 }
 0x208   : >> { %2934 = vmatmul.mubr.f32.vlgmr.msra.gmra.mrb[4].mxu1 %v1306_v58 }
 0x209   : >> { %2938 = vmatprep.mubr.msk.f32.mxu1 %vm3323_vm1, %v3321_v35  ;;  %2937 = vmatpush3.msk.msra.mxu1 %vm1403_vm2, %v3566_v23 }
 0x20a   : >> { %2961 = vmatprep.subr.bf16.mxu1 %v3321_v35 }
 0x2db   : >> { %v1373_v42 = vpop.f32.mrb[4].mxu1 }
 0x2dc   : >> { %v1379_v43 = vsel %vm1301_vm3, %v1373_v42, -1e+30  ;;  %v2935_v44 = vpop.f32.mrb[5].mxu1 }
 0x2dd   : >> { %v1381_v45 = vsel %vm1380_vm4, %v1379_v43, -inf }
 0x2de   : >> { %v1382_v46 = vrot.slane %v1381_v45, 4 }
 0x2e0   : >> { %v1383_v48 = vmax.f32 %v1381_v45, %v1382_v46  ;;  %v3189_v45 = vld [vmem:[%s4225_s2 + $0x28] sm:$0xff]   ;;  %v3191_v46 = vld [vmem:[%s4225_s2 + $0x38] sm:$0xff]  }
 0x2e2   : >> { %v1384_v49 = vrot.slane %v1383_v48, 2 }
 0x2e4   : >> { %v1385_v50 = vmax.f32 %v1383_v48, %v1384_v49  ;;  %v1299_v48 = vld [vmem:[#allocation3] sm:$0xff] }
 0x2e6   : >> { %v1386_v51 = vrot.slane %v1385_v50, 1 }
 0x2e8   : >> { %v1387_v52 = vmax.f32 %v1385_v50, %v1386_v51 }
 0x2ea   : >> { %v1388_v53 = vsub.f32 %v1379_v43, %v1387_v52  ;;  %v3188_v43 = vld [vmem:[%s4225_s2 + $0x20] sm:$0xff]  }
 0x2eb   : >> { %2950 = vmatpush3.bf16.msra.mxu0 %v3188_v43 }
 0x2ec   : >> { %v1389_v54 = vmul.f32 1.442695, %v1388_v53  ;;  %2951 = vmatprep.subr.bf16.mxu0 %v3321_v35 }
 0x2ee   : >> { %3272 = vpow2.f32 %v1389_v54 }
 0x2ef   : >> { %2952 = vmatpush3.bf16.msra.mxu0 %v3189_v45  ;;  %v3194_v45 = vld [vmem:[%s4227_s3 + $0x10] sm:$0xff]  }
 0x2f0   : >> { %2953 = vmatprep.subr.bf16.mxu0 %v3321_v35 }
 0x2f8   : >> { %v3273_v55 = vpop.eup %3272 }
 0x2f9   : >> { %v1391_v58 = vsel %vm1380_vm4, %v3273_v55, 0.0 }
 0x2fa   : >> { %v1392_v36 = vrot.slane %v1391_v58, 4 }
 0x2fc   : >> { %v1393_v37 = vadd.f32 %v1392_v36, %v1391_v58 }
 0x2fe   : >> { %v1394_v38 = vrot.slane %v1393_v37, 2 }
 0x300   : >> { %v1395_v40 = vadd.f32 %v1394_v38, %v1393_v37 }
 0x302   : >> { %v1396_v41 = vrot.slane %v1395_v40, 1 }
 0x304   : >> { %v1397_v42 = vadd.f32 %v1396_v41, %v1395_v40 }
 0x306   : >> { %3274 = vrcp.f32 %v1397_v42 }
 0x310   : >> { %v3275_v44 = vpop.eup %3274 }
 0x311   : >> { %v1399_v24 = vmul.f32 %v3275_v44, %v3273_v55 }
 0x313   : >> { %2939 = vmatmul.mubr.msk.f32.vlgmr.msra.gmra.mrb[6].mxu1 %vm1380_vm4, %v1399_v24  ;;  %v3190_v24 = vld [vmem:[%s4225_s2 + $0x30] sm:$0xff]  }
 0x314   : >> { %2977 = vmatprep.mubr.msk.bf16.mxu1 %vm3323_vm1, %v3321_v35  ;;  %2954 = vmatpush3.bf16.msra.mxu0 %v3190_v24  ;;  %v3195_v24 = vld [vmem:[%s4227_s3 + $0x18] sm:$0xff]  }
 0x315   : >> { %2955 = vmatprep.subr.bf16.mxu0 %v3321_v35 }
 0x318   : >> { %2956 = vmatpush3.bf16.msra.mxu0 %v3191_v46  ;;  %v3196_v46 = vld [vmem:[%s4227_s3 + $0x20] sm:$0xff]  }
 0x319   : >> { %3066 = vmatprep.subr.bf16.mxu0 %v3763_v57 }
 0x3e6   : >> { %v1473_v49 = vpop.f32.mrb[6].mxu1 }
 0x3e7   : >> { %v1477_v50 = vmul.f32 %v1473_v49, %v1299_v48  ;;  %v2940_v51 = vpop.f32.mrb[7].mxu1  ;;  %v3197_v48 = vld [vmem:[%s4227_s3 + $0x28] sm:$0xff]   ;;  %v3198_v49 = vld [vmem:[%s4227_s3 + $0x30] sm:$0xff]  }
 0x3e9   : >> { %v1478_v52 = vrot.slane %v1477_v50, 4 }
 0x3eb   : >> { %v1479_v53 = vadd.f32 %v1478_v52, %v1477_v50  ;;  %v3199_v50 = vld [vmem:[%s4227_s3 + $0x38] sm:$0xff]  }
 0x3ed   : >> { %v1480_v54 = vrot.slane %v1479_v53, 2 }
 0x3ef   : >> { %v1481_v55 = vadd.f32 %v1480_v54, %v1479_v53 }
 0x3f1   : >> { %v1482_v58 = vrot.slane %v1481_v55, 1 }
 0x3f3   : >> { %v1483_v36 = vadd.f32 %v1482_v58, %v1481_v55 }
 0x3f5   : >> { %v1484_v37 = vpack.c.bf16 %v1483_v36, %v1483_v36 }
 0x3f7   : >> { %2958 = vmatmul.mubr.bf16.vlgmr.msra.gmra.mrb[8].mxu0 %v1484_v37 }
 0x3f8   : >> { %3068 = vmatpush3.bf16.msra.mxu0 %v3763_v57  ;;  %v1501_v57 = vld [vmem:[%s4226_s29] sm:$0x1] }
 0x3f9   : >> { %3070 = vmatprep.subr.bf16.mxu0 %v3770_v59 }
 0x3fc   : >> { %3072 = vmatpush3.bf16.msra.mxu0 %v3770_v59 }
 0x3fd   : >> { %3074 = vmatprep.subr.bf16.mxu0 %v3779_v60 }
 0x400   : >> { %3076 = vmatpush3.bf16.msra.mxu0 %v3779_v60 }
 0x401   : >> { %3078 = vmatprep.subr.bf16.mxu0 %v3784_v61 }
 0x404   : >> { %3080 = vmatpush3.bf16.msra.mxu0 %v3784_v61 }
 0x405   : >> { %3082 = vmatprep.subr.bf16.mxu0 %v3789_v62 }
 0x408   : >> { %3084 = vmatpush3.bf16.msra.mxu0 %v3789_v62 }
 0x409   : >> { %3086 = vmatprep.subr.bf16.mxu0 %v3794_v63 }
 0x40c   : >> { %3088 = vmatpush3.bf16.msra.mxu0 %v3794_v63 }
 0x40d   : >> { %3090 = vmatprep.subr.bf16.mxu0 %v3799_v0 }
 0x410   : >> { %3092 = vmatpush3.bf16.msra.mxu0 %v3799_v0  ;;  %v3192_v0 = vld [vmem:[%s4227_s3] sm:$0xff]  }
 0x411   : >> { %3094 = vmatprep.subr.bf16.mxu0 %v3804_v4  ;;  %2962 = vmatpush3.bf16.msra.mxu1 %v3192_v0 }
 0x412   : >> { %2963 = vmatprep.subr.bf16.mxu1 %v3321_v35 }
 0x414   : >> { %3096 = vmatpush3.bf16.msra.mxu0 %v3804_v4  ;;  %v3193_v4 = vld [vmem:[%s4227_s3 + $0x8] sm:$0xff]  }
 0x415   : >> { %2964 = vmatpush3.bf16.msra.mxu1 %v3193_v4 }
 0x416   : >> { %2965 = vmatprep.subr.bf16.mxu1 %v3321_v35 }
 0x419   : >> { %2966 = vmatpush3.bf16.msra.mxu1 %v3194_v45 }
 0x41a   : >> { %2967 = vmatprep.subr.bf16.mxu1 %v3321_v35 }
 0x41d   : >> { %2968 = vmatpush3.bf16.msra.mxu1 %v3195_v24 }
 0x41e   : >> { %2969 = vmatprep.subr.bf16.mxu1 %v3321_v35 }
 0x421   : >> { %2970 = vmatpush3.bf16.msra.mxu1 %v3196_v46 }
 0x422   : >> { %2971 = vmatprep.subr.bf16.mxu1 %v3321_v35 }
 0x425   : >> { %2972 = vmatpush3.bf16.msra.mxu1 %v3197_v48 }
 0x426   : >> { %2973 = vmatprep.subr.bf16.mxu1 %v3321_v35 }
 0x429   : >> { %2974 = vmatpush3.bf16.msra.mxu1 %v3198_v49 }
 0x42a   : >> { %2975 = vmatprep.subr.bf16.mxu1 %v3321_v35 }
 0x42d   : >> { %2976 = vmatpush3.bf16.msra.mxu1 %v3199_v50 }
 0x42e   : >> { %3016 = vmatprep.subr.msk.mxu1 %vm1403_vm2, %v3566_v23 }
 0x4ca   : >> { %v1584_v59 = vpop.f32.mrb[8].mxu0 }
 0x4cb   : >> { %v1585_v60 = vadd.f32 %v1584_v59, %v1501_v57  ;;  %v2959_v61 = vpop.f32.mrb[9].mxu0  ;;  %v1625_v57 = vld [vmem:[%s4228_s8] sm:$0x1] }
 0x4cc   : >> { %v1587_v62 = vpop.f32.mrb[10].mxu0 }
 0x4cd   : >> { %v2960_v38 = vpop.f32.mrb[11].mxu0  ;;  %v1590_v63 = vadd.f32 %v1585_v60, %v3759_v56 }
 0x4cf   : >> { %v1592_v40 = vsel %vm1591_vm5, %v1590_v63, 0.0 }
 0x4d0   : >> { %1593 = vadd.xlane.f32.xlu0 %v1592_v40 }
 0x55d   : >> { %v1594_v41 = vpop.xlane.xlu0 %1593 }
 0x55e   : >> { %v1596_v42 = vmul.f32 0.0078125, %v1594_v41 }
 0x560   : >> { %v1597_v56 = vsub.f32 %v1590_v63, %v1596_v42 }
 0x562   : >> { %v1598_v44 = vmul.f32 %v1597_v56, %v1597_v56 }
 0x564   : >> { %v1599_v43 = vsel %vm1591_vm5, %v1598_v44, 0.0 }
 0x565   : >> { %1600 = vadd.xlane.f32.xlu0 %v1599_v43 }
 0x5f2   : >> { %v1601_v51 = vpop.xlane.xlu0 %1600 }
 0x5f3   : >> { %v1602_v52 = vmul.f32 0.0078125, %v1601_v51 }
 0x5f5   : >> { %v1603_v53 = vadd.f32 1e-05, %v1602_v52 }
 0x5f7   : >> { %3276 = vrsqrt.f32 %v1603_v53 }
 0x601   : >> { %v3277_v54 = vpop.eup %3276 }
 0x602   : >> { %v1605_v55 = vmul.f32 %v3277_v54, %v1597_v56 }
 0x604   : >> { %v1606_v58 = vmul.f32 %v1605_v55, %v3585_v29 }
 0x606   : >> { %v3923_v36 = vadd.f32 %v1606_v58, %v3590_v30 }
 0x608   : >> { %v1608_v37 = vpack.c.bf16 %v3923_v36, %v3923_v36 }
 0x60a   : >> { %2978 = vmatmul.mubr.bf16.vlgmr.msra.gmra.mrb[8].mxu1 %v1608_v37 }
 0x60b   : >> { %3017 = vmatpush3.msk.msra.mxu1 %vm1403_vm2, %v3566_v23 }
 0x60c   : >> { %3021 = vmatprep.subr.bf16.mxu1 %v3321_v35 }
 0x6dd   : >> { %v1708_v59 = vpop.f32.mrb[8].mxu1 }
 0x6de   : >> { %v1709_v60 = vadd.f32 %v1708_v59, %v1625_v57  ;;  %v2979_v61 = vpop.f32.mrb[9].mxu1 }
 0x6df   : >> { %v1711_v62 = vpop.f32.mrb[10].mxu1 }
 0x6e0   : >> { %v1717_v38 = vrot.slane %v1709_v60, %v3816_v39  ;;  %v2980_v63 = vpop.f32.mrb[11].mxu1 }
 0x6e2   : >> { %v1719_v40 = vmul.f32 %v1717_v38, %v3576_v26  ;;  %v1718_v0 = vmul.f32 %v1717_v38, %v3574_v25 }
 0x6e4   : >> { %3013 = vmatprep.mubr.f32.mxu0 %v1718_v0 }
 0x6e5   : >> { %3014 = vmatmul.mubr.f32.vlgmr.msra.gmra.mrb[12].mxu0 %v1719_v40 }
 0x6e6   : >> { %2175 = vmatprep.mubr.bf16.mxu0 %v3322_v47 }
 0x7b8   : >> { %v3015_v4 = vpop.f32.mrb[12].mxu0 }
 0x7b9   : >> { %v1796_v41 = vsel %vm1380_vm4, %v3015_v4, -inf  ;;  %v1786_v42 = vpop.f32.mrb[13].mxu0 }
 0x7ba   : >> { %v1795_v56 = vsel %vm1380_vm4, %v1786_v42, -inf }
 0x7bb   : >> { %v1797_v44 = vmax.f32 %v1795_v56, %v1796_v41  ;;  %v3200_v41 = vld [vmem:[%s4229_s27] sm:$0xff]   ;;  %v3202_v56 = vld [vmem:[%s4230_s30 + $0x10] sm:$0xff]  }
 0x7bd   : >> { %v1798_v43 = vrot.slane %v1797_v44, 4 }
 0x7bf   : >> { %v1799_v45 = vmax.f32 %v1797_v44, %v1798_v43  ;;  %v3203_v44 = vld [vmem:[%s4230_s30 + $0x18] sm:$0xff]   ;;  %v3204_v43 = vld [vmem:[%s4230_s30 + $0x20] sm:$0xff]  }
 0x7c1   : >> { %v1800_v24 = vrot.slane %v1799_v45, 2 }
 0x7c3   : >> { %v1801_v46 = vmax.f32 %v1799_v45, %v1800_v24  ;;  %v3205_v45 = vld [vmem:[%s4230_s30 + $0x28] sm:$0xff]   ;;  %v3206_v24 = vld [vmem:[%s4230_s30 + $0x30] sm:$0xff]  }
 0x7c5   : >> { %v1802_v48 = vrot.slane %v1801_v46, 1 }
 0x7c7   : >> { %v1803_v49 = vmax.f32 %v1801_v46, %v1802_v48  ;;  %v3207_v46 = vld [vmem:[%s4230_s30 + $0x38] sm:$0xff]  }
 0x7c9   : >> { %v1804_v50 = vsub.f32 %v1786_v42, %v1803_v49  ;;  %v1805_v51 = vsub.f32 %v3015_v4, %v1803_v49  ;;  %v3201_v42 = vld [vmem:[%s4230_s30 + $0x8] sm:$0xff]  }
 0x7cb   : >> { %v1806_v52 = vmul.f32 1.442695, %v1804_v50  ;;  %v1808_v53 = vmul.f32 1.442695, %v1805_v51 }
 0x7cd   : >> { %3278 = vpow2.f32 %v1806_v52 }
 0x7ce   : >> { %3280 = vpow2.f32 %v1808_v53 }
 0x7d7   : >> { %v3279_v54 = vpop.eup %3278 }
 0x7d8   : >> { %v3281_v55 = vpop.eup %3280  ;;  %v1810_v58 = vsel %vm1380_vm4, %v3279_v54, 0.0 }
 0x7d9   : >> { %v1811_v37 = vsel %vm1380_vm4, %v3281_v55, 0.0 }
 0x7da   : >> { %v1812_v57 = vadd.f32 %v1811_v37, %v1810_v58 }
 0x7dc   : >> { %v1813_v59 = vrot.slane %v1812_v57, 4 }
 0x7de   : >> { %v1814_v60 = vadd.f32 %v1813_v59, %v1812_v57 }
 0x7e0   : >> { %v1815_v61 = vrot.slane %v1814_v60, 2 }
 0x7e2   : >> { %v1816_v62 = vadd.f32 %v1815_v61, %v1814_v60  ;;  %v1929_v60 = vld [vmem:[%s4183_s11] sm:$0x1] }
 0x7e4   : >> { %v1817_v38 = vrot.slane %v1816_v62, 1 }
 0x7e6   : >> { %v1818_v63 = vadd.f32 %v1817_v38, %v1816_v62 }
 0x7e8   : >> { %3282 = vrcp.f32 %v1818_v63 }
 0x7f2   : >> { %v3283_v40 = vpop.eup %3282 }
 0x7f3   : >> { %v1820_v0 = vmul.f32 %v3283_v40, %v3279_v54  ;;  %v1821_v4 = vmul.f32 %v3283_v40, %v3281_v55 }
 0x7f5   : >> { %3018 = vmatprep.mubr.msk.f32.mxu1 %vm1380_vm4, %v1820_v0 }
 0x7f6   : >> { %3019 = vmatmul.mubr.msk.f32.vlgmr.msra.gmra.mrb[12].mxu1 %vm1380_vm4, %v1821_v4 }
 0x7f7   : >> { %3022 = vmatpush3.bf16.msra.mxu1 %v3200_v41  ;;  %3037 = vmatprep.mubr.msk.bf16.mxu1 %vm3323_vm1, %v3321_v35  ;;  %v3208_v41 = vld [vmem:[%s4190_s18] ss:$8 sps:$4 sm:$0xff]  }
 0x7f8   : >> { %3023 = vmatprep.subr.bf16.mxu1 %v3321_v35 }
 0x7fb   : >> { %3024 = vmatpush3.bf16.msra.mxu1 %v3201_v42  ;;  %v3210_v42 = vld [vmem:[%s4190_s18 + $0x4] ss:$8 sps:$4 sm:$0xff]  }
 0x7fc   : >> { %3025 = vmatprep.subr.bf16.mxu1 %v3321_v35  ;;  %2143 = vmatprep.subr.bf16.mxu0 %v3210_v42  ;;  %v3241_v42 = vld [vmem:[%s4192_s20 + $0x20] sm:$0xff]  }
 0x7fd   : >> { %2144 = vmatpush1.bf16.msra.mxu0 %v3208_v41  ;;  %v3240_v41 = vld [vmem:[%s4192_s20 + $0x60] sm:$0xff]  }
 0x7ff   : >> { %3026 = vmatpush3.bf16.msra.mxu1 %v3202_v56  ;;  %v3213_v56 = vld [vmem:[%s4190_s18 + $0x14] ss:$8 sps:$4 sm:$0xff]  }
 0x800   : >> { %3027 = vmatprep.subr.bf16.mxu1 %v3321_v35  ;;  %2145 = vmatprep.subr.bf16.mxu0 %v3213_v56  ;;  %v3242_v56 = vld [vmem:[%s4192_s20 + $0x68] sm:$0xff]  }
 0x803   : >> { %3028 = vmatpush3.bf16.msra.mxu1 %v3203_v44  ;;  %v3216_v44 = vld [vmem:[%s4190_s18 + $0x24] ss:$8 sps:$4 sm:$0xff]  }
 0x804   : >> { %3029 = vmatprep.subr.bf16.mxu1 %v3321_v35 }
 0x807   : >> { %3030 = vmatpush3.bf16.msra.mxu1 %v3204_v43  ;;  %v3214_v43 = vld [vmem:[%s4190_s18 + $0x20] ss:$8 sps:$4 sm:$0xff]  }
 0x808   : >> { %3031 = vmatprep.subr.bf16.mxu1 %v3321_v35 }
 0x80b   : >> { %3032 = vmatpush3.bf16.msra.mxu1 %v3205_v45 }
 0x80c   : >> { %3033 = vmatprep.subr.bf16.mxu1 %v3321_v35 }
 0x80f   : >> { %3034 = vmatpush3.bf16.msra.mxu1 %v3206_v24 }
 0x810   : >> { %3035 = vmatprep.subr.bf16.mxu1 %v3321_v35 }
 0x813   : >> { %3036 = vmatpush3.bf16.msra.mxu1 %v3207_v46 }
 0x8c9   : >> { %v3020_v48 = vpop.f32.mrb[12].mxu1 }
 0x8ca   : >> { %v1904_v49 = vmul.f32 %v3020_v48, %v3580_v28  ;;  %v1894_v50 = vpop.f32.mrb[13].mxu1 }
 0x8cb   : >> { %v1903_v51 = vmul.f32 %v1894_v50, %v3578_v27  ;;  %v3219_v50 = vld [vmem:[%s4190_s18 + $0x34] ss:$8 sps:$4 sm:$0xff]  }
 0x8cd   : >> { %v1905_v52 = vadd.f32 %v1904_v49, %v1903_v51  ;;  %v3217_v51 = vld [vmem:[%s4190_s18 + $0x30] ss:$8 sps:$4 sm:$0xff]  }
 0x8cf   : >> { %v1906_v53 = vrot.slane %v1905_v52, 4 }
 0x8d1   : >> { %v1907_v54 = vadd.f32 %v1906_v53, %v1905_v52  ;;  %v3220_v52 = vld [vmem:[%s4190_s18 + $0x40] ss:$8 sps:$4 sm:$0xff]   ;;  %v3222_v53 = vld [vmem:[%s4190_s18 + $0x44] ss:$8 sps:$4 sm:$0xff]  }
 0x8d3   : >> { %v1908_v55 = vrot.slane %v1907_v54, 2 }
 0x8d5   : >> { %v1909_v58 = vadd.f32 %v1908_v55, %v1907_v54  ;;  %v3225_v54 = vld [vmem:[%s4190_s18 + $0x54] ss:$8 sps:$4 sm:$0xff]   ;;  %v3223_v55 = vld [vmem:[%s4190_s18 + $0x50] ss:$8 sps:$4 sm:$0xff]  }
 0x8d7   : >> { %v1910_v37 = vrot.slane %v1909_v58, 1 }
 0x8d9   : >> { %v1911_v57 = vadd.f32 %v1910_v37, %v1909_v58  ;;  %v3228_v58 = vld [vmem:[%s4190_s18 + $0x64] ss:$8 sps:$4 sm:$0xff]   ;;  %v3226_v37 = vld [vmem:[%s4190_s18 + $0x60] ss:$8 sps:$4 sm:$0xff]  }
 0x8db   : >> { %v1912_v59 = vpack.c.bf16 %v1911_v57, %v1911_v57  ;;  %v3231_v57 = vld [vmem:[%s4190_s18 + $0x74] ss:$8 sps:$4 sm:$0xff]  }
 0x8dd   : >> { %3038 = vmatmul.mubr.bf16.vlgmr.msra.gmra.mrb[16].mxu1 %v1912_v59  ;;  %v3229_v59 = vld [vmem:[%s4190_s18 + $0x70] ss:$8 sps:$4 sm:$0xff]  }
 0x9b0   : >> { %v2012_v61 = vpop.f32.mrb[16].mxu1 }
 0x9b1   : >> { %v2013_v62 = vadd.f32 %v2012_v61, %v1929_v60  ;;  %v3039_v38 = vpop.f32.mrb[17].mxu1  ;;  %v3232_v60 = vld [vmem:[%s4192_s20 + $0x40] sm:$0xff]  }
 0x9b2   : >> { %v2015_v63 = vpop.f32.mrb[18].mxu1  ;;  %v3233_v61 = vld [vmem:[%s4192_s20] sm:$0xff]   ;;  %2859 = vmatprep.subr.bf16.mxu1 %v3232_v60  ;;  %v3235_v38 = vld [vmem:[%s4192_s20 + $0x8] sm:$0xff]  }
 0x9b3   : >> { %v3040_v40 = vpop.f32.mrb[19].mxu1  ;;  %v2018_v0 = vadd.f32 %v2013_v62, %v3923_v36  ;;  %v3211_v36 = vld [vmem:[%s4190_s18 + $0x10] ss:$8 sps:$4 sm:$0xff]   ;;  %v3234_v62 = vld [vmem:[%s4192_s20 + $0x48] sm:$0xff]   ;;  %2860 = vmatpush3.bf16.msra.mxu1 %v3233_v61 }
 0x9b4   : >> { %2146 = vmatpush1.bf16.msra.mxu0 %v3211_v36  ;;  %2861 = vmatprep.subr.bf16.mxu1 %v3234_v62  ;;  %v3236_v63 = vld [vmem:[%s4192_s20 + $0x50] sm:$0xff]   ;;  %v3243_v36 = vld [vmem:[%s4192_s20 + $0x28] sm:$0xff]  }
 0x9b5   : >> { %v2019_v4 = vsel %vm1591_vm5, %v2018_v0, 0.0  ;;  %2147 = vmatprep.subr.bf16.mxu0 %v3216_v44  ;;  %v3237_v40 = vld [vmem:[%s4192_s20 + $0x10] sm:$0xff]  }
 0x9b6   : >> { %2020 = vadd.xlane.f32.xlu1 %v2019_v4  ;;  %v3239_v4 = vld [vmem:[%s4192_s20 + $0x18] sm:$0xff]  }
 0x9b7   : >> { %2862 = vmatpush3.bf16.msra.mxu1 %v3235_v38 }
 0x9b8   : >> { %2148 = vmatpush1.bf16.msra.mxu0 %v3214_v43  ;;  %2863 = vmatprep.subr.bf16.mxu1 %v3236_v63 }
 0x9b9   : >> { %2149 = vmatprep.subr.bf16.mxu0 %v3219_v50 }
 0x9bb   : >> { %2864 = vmatpush3.bf16.msra.mxu1 %v3237_v40 }
 0x9bc   : >> { %2150 = vmatpush1.bf16.msra.mxu0 %v3217_v51 }
 0x9bd   : >> { %2151 = vmatprep.subr.bf16.mxu0 %v3222_v53  ;;  %v3245_v53 = vld [vmem:[%s4192_s20 + $0x30] sm:$0xff]  }
 0x9c0   : >> { %2152 = vmatpush1.bf16.msra.mxu0 %v3220_v52  ;;  %v3244_v52 = vld [vmem:[%s4192_s20 + $0x70] sm:$0xff]  }
 0x9c1   : >> { %2153 = vmatprep.subr.bf16.mxu0 %v3225_v54  ;;  %v3247_v54 = vld [vmem:[%s4192_s20 + $0x38] sm:$0xff]  }
 0x9c4   : >> { %2154 = vmatpush1.bf16.msra.mxu0 %v3223_v55 }
 0x9c5   : >> { %2155 = vmatprep.subr.bf16.mxu0 %v3228_v58 }
 0x9c8   : >> { %2156 = vmatpush1.bf16.msra.mxu0 %v3226_v37 }
 0x9c9   : >> { %2157 = vmatprep.subr.bf16.mxu0 %v3231_v57 }
 0x9cc   : >> { %2158 = vmatpush1.bf16.msra.mxu0 %v3229_v59 }
 0xa43   : >> { %v2021_v45 = vpop.xlane.xlu1 %2020 }
 0xa44   : >> { %v2022_v24 = vmul.f32 0.0078125, %v2021_v45 }
 0xa46   : >> { %v2023_v46 = vsub.f32 %v2018_v0, %v2022_v24  ;;  %v3238_v0 = vld [vmem:[%s4192_s20 + $0x58] sm:$0xff]  }
 0xa47   : >> { %2865 = vmatprep.subr.bf16.mxu1 %v3238_v0 }
 0xa48   : >> { %v2024_v48 = vmul.f32 %v2023_v46, %v2023_v46  ;;  %2866 = vmatpush3.bf16.msra.mxu1 %v3239_v4 }
 0xa49   : >> { %2867 = vmatprep.subr.bf16.mxu1 %v3240_v41  ;;  %v2220_v41 = vld [vmem:[%s4193_s21] sm:$0x1] }
 0xa4a   : >> { %v2025_v49 = vsel %vm1591_vm5, %v2024_v48, 0.0 }
 0xa4b   : >> { %2026 = vadd.xlane.f32.xlu1 %v2025_v49 }
 0xa4c   : >> { %2868 = vmatpush3.bf16.msra.mxu1 %v3241_v42 }
 0xa4d   : >> { %2869 = vmatprep.subr.bf16.mxu1 %v3242_v56 }
 0xa50   : >> { %2870 = vmatpush3.bf16.msra.mxu1 %v3243_v36 }
 0xa51   : >> { %2871 = vmatprep.subr.bf16.mxu1 %v3244_v52  ;;  %v3256_v52 = vld [vmem:[%s4194_s22 + $0x24] ss:$8 sps:$4 sm:$0xff]  }
 0xa54   : >> { %2872 = vmatpush3.bf16.msra.mxu1 %v3245_v53  ;;  %v3254_v53 = vld [vmem:[%s4194_s22 + $0x20] ss:$8 sps:$4 sm:$0xff]  }
 0xad8   : >> { %v2027_v44 = vpop.xlane.xlu1 %2026 }
 0xad9   : >> { %v2028_v43 = vmul.f32 0.0078125, %v2027_v44 }
 0xadb   : >> { %v2029_v45 = vadd.f32 1e-05, %v2028_v43 }
 0xadd   : >> { %3284 = vrsqrt.f32 %v2029_v45 }
 0xae7   : >> { %v3285_v24 = vpop.eup %3284 }
 0xae8   : >> { %v2031_v48 = vmul.f32 %v3285_v24, %v2023_v46  ;;  %v3246_v46 = vld [vmem:[%s4192_s20 + $0x78] sm:$0xff]  }
 0xae9   : >> { %2873 = vmatprep.subr.bf16.mxu1 %v3246_v46 }
 0xaea   : >> { %v2032_v49 = vmul.f32 %v2031_v48, %v3595_v31  ;;  %2874 = vmatpush3.bf16.msra.mxu1 %v3247_v54  ;;  %v3248_v48 = vld [vmem:[%s4194_s22] ss:$8 sps:$4 sm:$0xff]  }
 0xaec   : >> { %v2033_v50 = vadd.f32 %v2032_v49, %v3600_v32  ;;  %v3250_v49 = vld [vmem:[%s4194_s22 + $0x4] ss:$8 sps:$4 sm:$0xff]  }
 0xaed   : >> { %2482 = vmatprep.subr.bf16.mxu0 %v3250_v49 }
 0xaee   : >> { %v2034_v51 = vpack.c.bf16 %v2033_v50, %v2033_v50 }
 0xaf0   : >> { %2176 = vmatmul.mubr.bf16.vlgmr.msra.gmra.mrb[16].mxu0 %v2034_v51  ;;  %v3253_v51 = vld [vmem:[%s4194_s22 + $0x14] ss:$8 sps:$4 sm:$0xff]  }
 0xaf1   : >> { %2514 = vmatprep.mubr.bf16.mxu0 %v3322_v47  ;;  %v2051_v47 = vld [vmem:[%s4191_s19] sm:$0x3]  ;;  %2483 = vmatpush1.bf16.msra.mxu0 %v3248_v48 }
 0xaf2   : >> { %v2136_v55 = vrot.slane %v2051_v47, %v3816_v39  ;;  %v2140_v58 = vrot.slane %v2051_v47, %v3813_v20  ;;  %2484 = vmatprep.subr.bf16.mxu0 %v3253_v51 }
 0xbc3   : >> { %v2177_v37 = vpop.f32.mrb[16].mxu0 }
 0xbc4   : >> { %v2178_v57 = vadd.f32 %v2177_v37, %v2136_v55  ;;  %v2179_v59 = vpop.f32.mrb[17].mxu0  ;;  %v3259_v37 = vld [vmem:[%s4194_s22 + $0x34] ss:$8 sps:$4 sm:$0xff]  }
 0xbc5   : >> { %v2180_v60 = vadd.f32 %v2179_v59, %v2140_v58  ;;  %v2181_v61 = vpop.f32.mrb[18].mxu0  ;;  %v3260_v59 = vld [vmem:[%s4194_s22 + $0x40] ss:$8 sps:$4 sm:$0xff]  }
 0xbc6   : >> { %v2184_v62 = vmax.f32 %v2178_v57, 0.0  ;;  %v2182_v38 = vpop.f32.mrb[19].mxu0  ;;  %v3257_v57 = vld [vmem:[%s4194_s22 + $0x30] ss:$8 sps:$4 sm:$0xff]   ;;  %v3265_v61 = vld [vmem:[%s4194_s22 + $0x54] ss:$8 sps:$4 sm:$0xff]  }
 0xbc7   : >> { %v2185_v63 = vmax.f32 %v2180_v60, 0.0  ;;  %v3262_v60 = vld [vmem:[%s4194_s22 + $0x44] ss:$8 sps:$4 sm:$0xff]  }
 0xbc8   : >> { %v2186_v0 = vpack.c.bf16 %v2184_v62, %v2184_v62  ;;  %v3263_v62 = vld [vmem:[%s4194_s22 + $0x50] ss:$8 sps:$4 sm:$0xff]   ;;  %v3268_v38 = vld [vmem:[%s4194_s22 + $0x64] ss:$8 sps:$4 sm:$0xff]  }
 0xbc9   : >> { %v2187_v40 = vpack.c.bf16 %v2185_v63, %v2185_v63  ;;  %v3266_v63 = vld [vmem:[%s4194_s22 + $0x60] ss:$8 sps:$4 sm:$0xff]  }
 0xbcb   : >> { %2349 = vmatprep.mubr.bf16.mxu1 %v2187_v40  ;;  %v3271_v40 = vld [vmem:[%s4194_s22 + $0x74] ss:$8 sps:$4 sm:$0xff]  }
 0xbcc   : >> { %2350 = vmatmul.mubr.bf16.vlgmr.msra.gmra.mrb[20].mxu1 %v2186_v0  ;;  %v3269_v0 = vld [vmem:[%s4194_s22 + $0x70] ss:$8 sps:$4 sm:$0xff]  }
 0xc9f   : >> { %v2875_v4 = vpop.f32.mrb[20].mxu1 }
 0xca0   : >> { %v2876_v42 = vpop.f32.mrb[21].mxu1 }
 0xca1   : >> { %v2877_v56 = vadd.f32 %v2876_v42, %v2875_v4  ;;  %v2878_v36 = vpop.f32.mrb[22].mxu1 }
 0xca2   : >> { %v2879_v44 = vpop.f32.mrb[23].mxu1 }
 0xca3   : >> { %v2352_v43 = vadd.f32 %v2877_v56, %v2220_v41 }
 0xca5   : >> { %v2357_v45 = vadd.f32 %v2352_v43, %v2033_v50  ;;  %v3251_v50 = vld [vmem:[%s4194_s22 + $0x10] ss:$8 sps:$4 sm:$0xff]  }
 0xca6   : >> { %2485 = vmatpush1.bf16.msra.mxu0 %v3251_v50 }
 0xca7   : >> { %v2358_v24 = vsel %vm1591_vm5, %v2357_v45, 0.0  ;;  %2486 = vmatprep.subr.bf16.mxu0 %v3256_v52 }
 0xca8   : >> { %2359 = vadd.xlane.f32.xlu0 %v2358_v24  ;;  %v2390_v24 = vld [vmem:[%s4231_s1] sm:$0x3] }
 0xca9   : >> { %v2475_v48 = vrot.slane %v2390_v24, %v3816_v39  ;;  %v2479_v49 = vrot.slane %v2390_v24, %v3813_v20  ;;  %v4232_v39 = vcvt.s32.f32 %v3533_v16 }
 0xcaa   : >> { %2487 = vmatpush1.bf16.msra.mxu0 %v3254_v53 }
 0xcab   : >> { %2488 = vmatprep.subr.bf16.mxu0 %v3259_v37 }
 0xcae   : >> { %2489 = vmatpush1.bf16.msra.mxu0 %v3257_v57 }
 0xcaf   : >> { %2490 = vmatprep.subr.bf16.mxu0 %v3262_v60 }
 0xcb2   : >> { %2491 = vmatpush1.bf16.msra.mxu0 %v3260_v59 }
 0xcb3   : >> { %2492 = vmatprep.subr.bf16.mxu0 %v3265_v61 }
 0xcb6   : >> { %2493 = vmatpush1.bf16.msra.mxu0 %v3263_v62 }
 0xcb7   : >> { %2494 = vmatprep.subr.bf16.mxu0 %v3268_v38 }
 0xcba   : >> { %2495 = vmatpush1.bf16.msra.mxu0 %v3266_v63 }
 0xcbb   : >> { %2496 = vmatprep.subr.bf16.mxu0 %v3271_v40 }
 0xcbe   : >> { %2497 = vmatpush1.bf16.msra.mxu0 %v3269_v0 }
 0xd35   : >> { %v2360_v46 = vpop.xlane.xlu0 %2359 }
 0xd36   : >> { %v2361_v54 = vmul.f32 0.0078125, %v2360_v46 }
 0xd38   : >> { %v2362_v47 = vsub.f32 %v2357_v45, %v2361_v54 }
 0xd3a   : >> { %v2363_v55 = vmul.f32 %v2362_v47, %v2362_v47 }
 0xd3c   : >> { %v2364_v58 = vsel %vm1591_vm5, %v2363_v55, 0.0 }
 0xd3d   : >> { %2365 = vadd.xlane.f32.xlu1 %v2364_v58 }
 0xdca   : >> { %v2366_v4 = vpop.xlane.xlu1 %2365 }
 0xdcb   : >> { %v2367_v41 = vmul.f32 0.0078125, %v2366_v4 }
 0xdcd   : >> { %v2368_v42 = vadd.f32 1e-05, %v2367_v41 }
 0xdcf   : >> { %3286 = vrsqrt.f32 %v2368_v42 }
 0xdd9   : >> { %v3287_v56 = vpop.eup %3286 }
 0xdda   : >> { %v2370_v36 = vmul.f32 %v3287_v56, %v2362_v47 }
 0xddc   : >> { %v2371_v44 = vmul.f32 %v2370_v36, %v3605_v33 }
 0xdde   : >> { %v2372_v43 = vadd.f32 %v2371_v44, %v3610_v34 }
 0xde0   : >> { %v2373_v45 = vpack.c.bf16 %v2372_v43, %v2372_v43 }
 0xde2   : >> { %2515 = vmatmul.mubr.bf16.vlgmr.msra.gmra.mrb[20].mxu0 %v2373_v45 }
 0xeb5   : >> { %v2516_v51 = vpop.f32.mrb[20].mxu0 }
 0xeb6   : >> { %v2517_v50 = vadd.f32 %v2516_v51, %v2475_v48  ;;  %v2518_v52 = vpop.f32.mrb[21].mxu0 }
 0xeb7   : >> { %v2519_v53 = vadd.f32 %v2518_v52, %v2479_v49  ;;  %v2520_v46 = vpop.f32.mrb[22].mxu0 }
 0xeb8   : >> { %v2521_v54 = vpop.f32.mrb[23].mxu0  ;;  %v2523_v47 = vsel %vm1591_vm5, %v2517_v50, -inf }
 0xeb9   : >> { %v2524_v55 = vsel %vm1591_vm5, %v2519_v53, -inf }
 0xeba   : >> { %v2525_v58 = vmax.f32 %v2523_v47, %v2524_v55 }
 0xebc   : >> { %2526 = vmax.xlane.f32.xlu0 %v2525_v58 }
 0xf49   : >> { %v2527_v37 = vpop.xlane.xlu0 %2526 }
 0xf4a   : >> { %vm2528_vm6 = vcmp.eq.f32.partialorder %v2517_v50, %v2527_v37  ;;  %vm2529_vm7 = vcmp.eq.f32.partialorder %v2519_v53, %v2527_v37 }
 0xf4b   : >> { %v2530_v20 = vsel %vm2528_vm6, %v843_v17, 256.0  ;;  %v2531_v57 = vsel %vm2529_vm7, %v4232_v39, 256.0 }
 0xf4c   : >> { %v2532_v59 = vsel %vm1591_vm5, %v2530_v20, inf  ;;  %v2533_v60 = vsel %vm1591_vm5, %v2531_v57, inf }
 0xf4d   : >> { %v2534_v61 = vmin.f32 %v2532_v59, %v2533_v60 }
 0xf4f   : >> { %2535 = vmin.xlane.f32.xlu1 %v2534_v61 }
 0xfdc   : >> { %v2536_v62 = vpop.xlane.xlu1 %2535  ;;  %857 = sbr.rel (!%p855_p4) target bundleno = 35 (0x23), region = 168 }
 0xfdd   : >> { %v3097_v38 = vtrunc.f32 %v2536_v62 }
 0xfdf   : >> { %v3098_v63 = vcvt.f32.s32 %v3097_v38 }
 0xfe1   : >> { %2540 = vst.msk [vmem:[%s2538_s9] sm:$0x1] %vm2539_vm8, %v3098_v63  ;;  %vm2541_vm9 = vcmp.eq.s32.totalorder %v3498_v8, %v3098_v63  ;;  %vm2542_vm10 = vcmp.eq.s32.totalorder %v3533_v16, %v3098_v63 }
 0xfe2   : >> { %v2755_v20 = vsel %vm2541_vm9, 1.0, %v3321_v35   ;;  %v2756_v35 = vsel %vm2542_vm10, 1.0, %v3321_v35  }
 0xfe3 PF: > { %s4233_s2 = sld [smem:[#allocation4_spill]] }
 0xfe9   : > { %s36_s27 = sadd.s32 1, %s4233_s2  }
 0xfea   : > { %p33_p5 = scmp.ge.s32.totalorder %s36_s27, 4  }
 0xfec   :  { %35 = sbr.rel (!%p33_p5) target bundleno = 13 (0xd), region = 179 }

</bundles_post_ra>
